<compile_context>
chip_gen: v6e
topology: v6e:2x2x1
jax: 0.10.0
libtpu: 0.0.40
codegen_flags: <defaults>
</compile_context>

<pallas_src>
import functools

import numpy as np
import jax
import jax.numpy as jnp
from jax.experimental import pallas as pl
from jax.experimental.pallas import tpu as pltpu


SLAB_ROWS = 144          # 128 weight rows + 1 bias row + pad (multiple of 16)
W_ROWS = 128             # padded contraction dim for every layer (max real fan-in 64)
HID = 128                # padded feature/lane width for every hidden activation
FUSED_MAX_NODES = 2048   # A_hat bf16 <= 8 MiB -> safely VMEM-resident even on v7x
VMEM_LIMIT_FUSED = 48 * 1024 * 1024   # v7x-safe (64 MiB physical per TensorCore)
VMEM_LIMIT_STREAM = 32 * 1024 * 1024


def _round_up(x, m):
    return (x + m - 1) // m * m


def _pad2(x, rows, cols, dtype):
    out = jnp.zeros((rows, cols), dtype)
    return out.at[: x.shape[0], : x.shape[1]].set(x.astype(dtype))


def pack_wb(w, b, dtype=jnp.bfloat16):
    """Pack one layer's weight [fin, fout] and bias [1, fout] into a (144, 128) slab."""
    slab = jnp.zeros((SLAB_ROWS, HID), dtype)
    slab = slab.at[: w.shape[0], : w.shape[1]].set(w.astype(dtype))
    slab = slab.at[W_ROWS, : b.shape[-1]].set(b.reshape(-1).astype(dtype))
    return slab


def _choose_block(n, block_rows):
    """Row/col block for the streamed path: multiple of 128, >=2 blocks if possible."""
    n128 = _round_up(n, 128)
    blk = max(128, (min(block_rows, n128) // 128) * 128)
    if n128 // blk < 2 and blk > 128:          # keep 2+ row blocks for v7x megacore
        blk = max(128, ((n128 // 2) // 128) * 128)
    n_pad = _round_up(n128, blk)
    return blk, n_pad


# ----------------------------- shared epilogue ------------------------------ #
def _head_epilogue(pooled_sum_f32, invc_f32, fc_ref, n_classes):
    """mean scaling + fc + masked log_softmax (all f32 except the bf16 MXU matmul)."""
    pooled = pooled_sum_f32 * invc_f32                       # per-graph mean (f32)
    w = fc_ref[0:W_ROWS, :]                                  # bf16 [128, 128]
    b = fc_ref[W_ROWS:W_ROWS + 1, :].astype(jnp.float32)     # f32  [1, 128]
    logits = jnp.dot(pooled.astype(jnp.bfloat16), w,
                     preferred_element_type=jnp.float32) + b
    col = jax.lax.broadcasted_iota(jnp.int32, logits.shape, 1)
    logits = jnp.where(col < n_classes, logits, -1e30)       # mask padded class lanes
    m = jnp.max(logits, axis=1, keepdims=True)
    s = logits - m
    lse = jnp.log(jnp.sum(jnp.exp(s), axis=1, keepdims=True))
    return s - lse


# ------------------------- fused (A_hat-resident) path ---------------------- #
def fused_gnn_kernel(a_ref, x_ref, p_ref, wb1_ref, wb2_ref, wb3_ref, fc_ref,
                     invc_ref, o_ref, *, n_classes):
    """Whole forward in one kernel; A_hat stays resident in VMEM across the 3 layers."""
    h = x_ref[...]                                           # bf16 (n_pad, 128)
    for wb_ref in (wb1_ref, wb2_ref, wb3_ref):
        w = wb_ref[0:W_ROWS, :]                              # bf16 (128, 128)
        b = wb_ref[W_ROWS:W_ROWS + 1, :].astype(jnp.float32)
        hw = jnp.dot(h, w, preferred_element_type=jnp.float32)        # H @ W (once)
        ah = jnp.dot(a_ref[...], hw.astype(jnp.bfloat16),
                     preferred_element_type=jnp.float32)              # A_hat @ (H W)
        h = jnp.maximum(ah + b, 0.0).astype(jnp.bfloat16)
    pooled = jnp.dot(p_ref[...], h, preferred_element_type=jnp.float32)  # graph sums
    o_ref[...] = _head_epilogue(pooled, invc_ref[...], fc_ref, n_classes)


def gnn_fused(a_pad, x_pad, pool01, wb1, wb2, wb3, fc, invc, n_classes):
    n_pad = a_pad.shape[0]
    g_pad = pool01.shape[0]
    full = lambda shape: pl.BlockSpec(shape, lambda i: (0, 0))
    kernel = functools.partial(fused_gnn_kernel, n_classes=n_classes)
    return pl.pallas_call(
        kernel,
        out_shape=jax.ShapeDtypeStruct((g_pad, HID), jnp.float32),
        grid=(1,),
        in_specs=[
            full((n_pad, n_pad)),        # A_hat (bf16, VMEM-resident)
            full((n_pad, HID)),          # X padded
            full((g_pad, n_pad)),        # 0/1 graph membership (bf16)
            full((SLAB_ROWS, HID)),      # layer-1 W+b slab
            full((SLAB_ROWS, HID)),      # layer-2 W+b slab
            full((SLAB_ROWS, HID)),      # layer-3 W+b slab
            full((SLAB_ROWS, HID)),      # fc W+b slab (bf16)
            full((g_pad, HID)),          # 1/count rows (f32)
        ],
        out_specs=full((g_pad, HID)),
        compiler_params=pltpu.CompilerParams(
            dimension_semantics=("arbitrary",),
            vmem_limit_bytes=VMEM_LIMIT_FUSED,
        ),
    )(a_pad, x_pad, pool01, wb1, wb2, wb3, fc, invc)


# ------------------------ streamed (tiled) fallback path --------------------- #
def xw_kernel(x_ref, wb_ref, o_ref):
    """Prologue: HW_1 = X @ W1 (bf16 MXU, f32 accumulate)."""
    w = wb_ref[0:W_ROWS, :]
    o_ref[...] = jnp.dot(x_ref[...], w,
                         preferred_element_type=jnp.float32).astype(o_ref.dtype)


def gcn_stream_kernel(a_ref, hw_ref, wb_ref, wnext_ref, o_ref, acc_ref, *, last):
    """Z = relu(A_hat @ HW + b); output is Z @ W_next (folded) or Z for the last layer.

    Grid = (row blocks [parallel], col blocks [arbitrary, reduction]).
    """
    k = pl.program_id(1)

    @pl.when(k == 0)
    def _():
        acc_ref[...] = jnp.zeros_like(acc_ref)

    acc_ref[...] += jnp.dot(a_ref[...], hw_ref[...],
                            preferred_element_type=jnp.float32)

    @pl.when(k == pl.num_programs(1) - 1)
    def _():
        b = wb_ref[W_ROWS:W_ROWS + 1, :].astype(jnp.float32)
        z = jnp.maximum(acc_ref[...] + b, 0.0)
        if last:
            o_ref[...] = z.astype(o_ref.dtype)
        else:
            wn = wnext_ref[0:W_ROWS, :]                       # fold next layer's W
            o_ref[...] = jnp.dot(z.astype(jnp.bfloat16), wn,
                                 preferred_element_type=jnp.float32).astype(o_ref.dtype)


def head_stream_kernel(p_ref, h_ref, fc_ref, invc_ref, o_ref, acc_ref, *, n_classes):
    """global_mean_pool (0/1 membership @ H) reduced over node blocks, then fc + log_softmax."""
    k = pl.program_id(0)

    @pl.when(k == 0)
    def _():
        acc_ref[...] = jnp.zeros_like(acc_ref)

    acc_ref[...] += jnp.dot(p_ref[...], h_ref[...],
                            preferred_element_type=jnp.float32)

    @pl.when(k == pl.num_programs(0) - 1)
    def _():
        o_ref[...] = _head_epilogue(acc_ref[...], invc_ref[...], fc_ref, n_classes)


def xw(x_pad, wb_slab, *, blk):
    n_pad = x_pad.shape[0]
    return pl.pallas_call(
        xw_kernel,
        out_shape=jax.ShapeDtypeStruct((n_pad, HID), jnp.bfloat16),
        grid=(n_pad // blk,),
        in_specs=[
            pl.BlockSpec((blk, HID), lambda i: (i, 0)),
            pl.BlockSpec((SLAB_ROWS, HID), lambda i: (0, 0)),
        ],
        out_specs=pl.BlockSpec((blk, HID), lambda i: (i, 0)),
        compiler_params=pltpu.CompilerParams(
            dimension_semantics=("parallel",),
            vmem_limit_bytes=VMEM_LIMIT_STREAM,
        ),
    )(x_pad, wb_slab)


def gcn_stream(a_pad, hw_pad, wb_slab, wnext_slab, *, blk, last):
    n_pad = a_pad.shape[0]
    kernel = functools.partial(gcn_stream_kernel, last=last)
    return pl.pallas_call(
        kernel,
        out_shape=jax.ShapeDtypeStruct((n_pad, HID), jnp.bfloat16),
        grid=(n_pad // blk, n_pad // blk),
        in_specs=[
            pl.BlockSpec((blk, blk), lambda i, k: (i, k)),        # A_hat tile
            pl.BlockSpec((blk, HID), lambda i, k: (k, 0)),        # HW col block
            pl.BlockSpec((SLAB_ROWS, HID), lambda i, k: (0, 0)),  # this layer's slab (bias)
            pl.BlockSpec((SLAB_ROWS, HID), lambda i, k: (0, 0)),  # next layer's slab (W)
        ],
        out_specs=pl.BlockSpec((blk, HID), lambda i, k: (i, 0)),
        scratch_shapes=[pltpu.VMEM((blk, HID), jnp.float32)],
        compiler_params=pltpu.CompilerParams(
            dimension_semantics=("parallel", "arbitrary"),
            vmem_limit_bytes=VMEM_LIMIT_STREAM,
        ),
    )(a_pad, hw_pad, wb_slab, wnext_slab)


def head_stream(pool01, h_pad, fc_slab, invc, n_classes, *, blk):
    g_pad, n_pad = pool01.shape
    kernel = functools.partial(head_stream_kernel, n_classes=n_classes)
    return pl.pallas_call(
        kernel,
        out_shape=jax.ShapeDtypeStruct((g_pad, HID), jnp.float32),
        grid=(n_pad // blk,),
        in_specs=[
            pl.BlockSpec((g_pad, blk), lambda k: (0, k)),         # membership cols (bf16)
            pl.BlockSpec((blk, HID), lambda k: (k, 0)),           # H3 col block (bf16)
            pl.BlockSpec((SLAB_ROWS, HID), lambda k: (0, 0)),     # fc slab (bf16)
            pl.BlockSpec((g_pad, HID), lambda k: (0, 0)),         # 1/count rows (f32)
        ],
        out_specs=pl.BlockSpec((g_pad, HID), lambda k: (0, 0)),
        scratch_shapes=[pltpu.VMEM((g_pad, HID), jnp.float32)],
        compiler_params=pltpu.CompilerParams(
            dimension_semantics=("arbitrary",),
            vmem_limit_bytes=VMEM_LIMIT_STREAM,
        ),
    )(pool01, h_pad, fc_slab, invc)


def gnn_streamed(a_pad, x_pad, pool01, invc, slabs, fc_slab, n_classes, *, blk):
    wb1, wb2, wb3 = slabs
    hw = xw(x_pad, wb1, blk=blk)                                       # X @ W1
    hw = gcn_stream(a_pad, hw, wb1, wb2, blk=blk, last=False)          # relu(A hw + b1) @ W2
    hw = gcn_stream(a_pad, hw, wb2, wb3, blk=blk, last=False)          # relu(A hw + b2) @ W3
    h3 = gcn_stream(a_pad, hw, wb3, wb3, blk=blk, last=True)           # relu(A hw + b3)
    return head_stream(pool01, h3, fc_slab, invc, n_classes, blk=blk)


# ------------------------------ forward wrapper ------------------------------ #
def build_pool01(batch, num_graphs, g_pad, n_pad):
    """Exact 0/1 membership matrix (bf16) + per-graph 1/count rows (f32)."""
    batch = jnp.asarray(batch)
    n = batch.shape[0]
    onehot = (batch[None, :] == jnp.arange(num_graphs)[:, None]).astype(jnp.float32)
    counts = jnp.sum(onehot, axis=1)
    p = jnp.zeros((g_pad, n_pad), jnp.bfloat16).at[:num_graphs, :n].set(
        onehot.astype(jnp.bfloat16))
    invc_rows = jnp.zeros((g_pad,), jnp.float32).at[:num_graphs].set(
        1.0 / jnp.maximum(counts, 1.0))
    invc = jnp.tile(invc_rows[:, None], (1, HID))
    return p, invc


def gnn_forward(a_hat, x, params, batch, *, num_graphs, block_rows=512,
                force_streamed=False):
    w1, b1, w2, b2, w3, b3, fcw, fcb = params
    N = a_hat.shape[0]
    n_classes = fcw.shape[1]
    g_pad = _round_up(num_graphs, 16)

    # Pack parameters into bf16 slabs (f32 accumulation happens in-kernel).
    wb1, wb2, wb3 = pack_wb(w1, b1), pack_wb(w2, b2), pack_wb(w3, b3)
    fc = pack_wb(fcw, fcb)

    use_fused = (not force_streamed) and (_round_up(N, 128) <= FUSED_MAX_NODES)
    if use_fused:
        n_pad = _round_up(N, 128)
    else:
        blk, n_pad = _choose_block(N, block_rows)

    a_p = _pad2(a_hat, n_pad, n_pad, jnp.bfloat16)
    x_p = _pad2(x, n_pad, HID, jnp.bfloat16)
    pool01, invc = build_pool01(batch, num_graphs, g_pad, n_pad)

    if use_fused:
        out = gnn_fused(a_p, x_p, pool01, wb1, wb2, wb3, fc, invc, n_classes)
    else:
        out = gnn_streamed(a_p, x_p, pool01, invc, (wb1, wb2, wb3), fc,
                           n_classes, blk=blk)
    return out[:num_graphs, :n_classes]


# ------------------------------ JAX glue ------------------------------------- #
def build_norm_adj(edge_index, num_nodes):
    """Dense GCN-normalized adjacency with self-loops: D^-1/2 (A+I) D^-1/2.
    Assumes the edge list is deduplicated (duplicates are counted multiply)."""
    src = jnp.asarray(edge_index[0])
    dst = jnp.asarray(edge_index[1])
    loop = jnp.arange(num_nodes)
    src = jnp.concatenate([src, loop])
    dst = jnp.concatenate([dst, loop])
    A = jnp.zeros((num_nodes, num_nodes), jnp.float32).at[dst, src].add(1.0)
    deg = jnp.sum(A, axis=1)
    dinv = jnp.where(deg > 0, 1.0 / jnp.sqrt(deg), 0.0)
    return dinv[:, None] * A * dinv[None, :]


def init_params(key):
    def glorot(k, fan_in, fan_out):
        lim = float(np.sqrt(6.0 / (fan_in + fan_out)))
        return jax.random.uniform(k, (fan_in, fan_out), jnp.float32, -lim, lim)

    keys = jax.random.split(key, 4)
    w1 = glorot(keys[0], 5, 16)
    b1 = jnp.zeros((1, 16), jnp.float32)
    w2 = glorot(keys[1], 16, 32)
    b2 = jnp.zeros((1, 32), jnp.float32)
    w3 = glorot(keys[2], 32, 64)
    b3 = jnp.zeros((1, 64), jnp.float32)
    fcw = glorot(keys[3], 64, 2)          # torch Linear weight (2, 64), transposed
    fcb = jnp.zeros((1, 2), jnp.float32)
    return (w1, b1, w2, b2, w3, b3, fcw, fcb)


def gnn_reference(a_hat, x, params, batch, num_graphs):
    """Pure-JAX f32 reference of the original torch forward."""
    w1, b1, w2, b2, w3, b3, fcw, fcb = params
    h = jnp.maximum(a_hat @ (x @ w1) + b1, 0.0)
    h = jnp.maximum(a_hat @ (h @ w2) + b2, 0.0)
    h = jnp.maximum(a_hat @ (h @ w3) + b3, 0.0)
    batch = jnp.asarray(batch)
    onehot = (batch[None, :] == jnp.arange(num_graphs)[:, None]).astype(jnp.float32)
    pool = onehot / jnp.maximum(jnp.sum(onehot, axis=1, keepdims=True), 1.0)
    logits = pool @ h @ fcw + fcb
    return jax.nn.log_softmax(logits, axis=1)


if __name__ == "__main__":
    key = jax.random.PRNGKey(0)
    k_x, k_p = jax.random.split(key)

    # 4 graphs of 72 nodes each (N = 288 -> padded to 384).
    G, NODES_PER_GRAPH, F_IN = 4, 72, 5
    N = G * NODES_PER_GRAPH
    x = jax.random.normal(k_x, (N, F_IN), jnp.float32)

    # Undirected ring within each graph (both directions per edge).
    src_list, dst_list = [], []
    for g in range(G):
        base = g * NODES_PER_GRAPH
        for i in range(NODES_PER_GRAPH):
            a, b = base + i, base + (i + 1) % NODES_PER_GRAPH
            src_list += [a, b]
            dst_list += [b, a]
    edge_index = np.array([src_list, dst_list], dtype=np.int32)   # [2, E]
    batch = np.repeat(np.arange(G, dtype=np.int32), NODES_PER_GRAPH)

    a_hat = build_norm_adj(edge_index, N)
    params = init_params(k_p)

    fwd = jax.jit(gnn_forward,
                  static_argnames=("num_graphs", "block_rows", "force_streamed"))

    # Primary (fused, A_hat-resident) path.
    out_fused = jax.block_until_ready(fwd(a_hat, x, params, batch, num_graphs=G))
    # Streamed/tiled fallback path (used for large graphs); validated here too.
    out_stream = jax.block_until_ready(
        fwd(a_hat, x, params, batch, num_graphs=G, force_streamed=True))

    ref = gnn_reference(a_hat, x, params, batch, G)

    for out in (out_fused, out_stream):
        assert out.shape == (G, 2)
        # log_softmax rows should exponentiate-sum to ~1
        assert np.allclose(np.exp(np.asarray(out)).sum(axis=1), 1.0, atol=1e-4)
        # matches f32 reference within bf16 matmul tolerance
        assert np.allclose(np.asarray(out), np.asarray(ref), atol=5e-2, rtol=5e-2)
    print("KERNEL_OK")
</pallas_src>

<mosaic_0001>
module attributes {stable_mosaic.version = 11 : i64} {
  func.func @fused_gnn_kernel(%arg0: i32, %arg1: memref<384x384xbf16, #tpu.memory_space<vmem>>, %arg2: memref<384x128xbf16, #tpu.memory_space<vmem>>, %arg3: memref<16x384xbf16, #tpu.memory_space<vmem>>, %arg4: memref<144x128xbf16, #tpu.memory_space<vmem>>, %arg5: memref<144x128xbf16, #tpu.memory_space<vmem>>, %arg6: memref<144x128xbf16, #tpu.memory_space<vmem>>, %arg7: memref<144x128xbf16, #tpu.memory_space<vmem>>, %arg8: memref<16x128xf32, #tpu.memory_space<vmem>>, %arg9: memref<16x128xf32, #tpu.memory_space<vmem>>) attributes {dimension_semantics = [#tpu.dimension_semantics<arbitrary>], iteration_bounds = array<i64: 1>, scalar_prefetch = 0 : i64, scratch_operands = 0 : i64, tpu.core_type = #tpu.core_type<tc>, window_params = [{pipeline_mode = #tpu.pipeline_mode<synchronous>, transform_indices = @transform_0, window_bounds = array<i64: 384, 384>}, {pipeline_mode = #tpu.pipeline_mode<synchronous>, transform_indices = @transform_1, window_bounds = array<i64: 384, 128>}, {pipeline_mode = #tpu.pipeline_mode<synchronous>, transform_indices = @transform_2, window_bounds = array<i64: 16, 384>}, {pipeline_mode = #tpu.pipeline_mode<synchronous>, transform_indices = @transform_3, window_bounds = array<i64: 144, 128>}, {pipeline_mode = #tpu.pipeline_mode<synchronous>, transform_indices = @transform_4, window_bounds = array<i64: 144, 128>}, {pipeline_mode = #tpu.pipeline_mode<synchronous>, transform_indices = @transform_5, window_bounds = array<i64: 144, 128>}, {pipeline_mode = #tpu.pipeline_mode<synchronous>, transform_indices = @transform_6, window_bounds = array<i64: 144, 128>}, {pipeline_mode = #tpu.pipeline_mode<synchronous>, transform_indices = @transform_7, window_bounds = array<i64: 16, 128>}, {pipeline_mode = #tpu.pipeline_mode<synchronous>, transform_indices = @transform_8, window_bounds = array<i64: 16, 128>}]} {
    %c0 = arith.constant 0 : index
    %c0_0 = arith.constant 0 : index
    %0 = vector.load %arg2[%c0, %c0_0] : memref<384x128xbf16, #tpu.memory_space<vmem>>, vector<384x128xbf16>
    %c0_1 = arith.constant 0 : index
    %c0_2 = arith.constant 0 : index
    %1 = vector.load %arg4[%c0_1, %c0_2] : memref<144x128xbf16, #tpu.memory_space<vmem>>, vector<128x128xbf16>
    %c128 = arith.constant 128 : index
    %c0_3 = arith.constant 0 : index
    %2 = vector.load %arg4[%c128, %c0_3] : memref<144x128xbf16, #tpu.memory_space<vmem>>, vector<1x128xbf16>
    %3 = arith.extf %2 : vector<1x128xbf16> to vector<1x128xf32>
    %cst = arith.constant dense<0.000000e+00> : vector<384x128xf32>
    %4 = tpu.matmul %0, %1, %cst {dimension_numbers = #tpu.dot_dimension_numbers<[1], [0], [0], [1], [0, 0, 1, 1], [], []>} : vector<384x128xbf16>, vector<128x128xbf16>, vector<384x128xf32> -> vector<384x128xf32>
    %c0_4 = arith.constant 0 : index
    %c0_5 = arith.constant 0 : index
    %5 = vector.load %arg1[%c0_4, %c0_5] : memref<384x384xbf16, #tpu.memory_space<vmem>>, vector<384x384xbf16>
    %6 = arith.truncf %4 : vector<384x128xf32> to vector<384x128xbf16>
    %cst_6 = arith.constant dense<0.000000e+00> : vector<384x128xf32>
    %7 = tpu.matmul %5, %6, %cst_6 {dimension_numbers = #tpu.dot_dimension_numbers<[1], [0], [0], [1], [0, 0, 1, 1], [], []>} : vector<384x384xbf16>, vector<384x128xbf16>, vector<384x128xf32> -> vector<384x128xf32>
    %8 = vector.broadcast %3 : vector<1x128xf32> to vector<384x128xf32>
    %9 = arith.addf %7, %8 : vector<384x128xf32>
    %cst_7 = arith.constant 0.000000e+00 : f32
    %10 = vector.broadcast %cst_7 : f32 to vector<384x128xf32>
    %11 = arith.maximumf %9, %10 : vector<384x128xf32>
    %12 = arith.truncf %11 : vector<384x128xf32> to vector<384x128xbf16>
    %c0_8 = arith.constant 0 : index
    %c0_9 = arith.constant 0 : index
    %13 = vector.load %arg5[%c0_8, %c0_9] : memref<144x128xbf16, #tpu.memory_space<vmem>>, vector<128x128xbf16>
    %c128_10 = arith.constant 128 : index
    %c0_11 = arith.constant 0 : index
    %14 = vector.load %arg5[%c128_10, %c0_11] : memref<144x128xbf16, #tpu.memory_space<vmem>>, vector<1x128xbf16>
    %15 = arith.extf %14 : vector<1x128xbf16> to vector<1x128xf32>
    %cst_12 = arith.constant dense<0.000000e+00> : vector<384x128xf32>
    %16 = tpu.matmul %12, %13, %cst_12 {dimension_numbers = #tpu.dot_dimension_numbers<[1], [0], [0], [1], [0, 0, 1, 1], [], []>} : vector<384x128xbf16>, vector<128x128xbf16>, vector<384x128xf32> -> vector<384x128xf32>
    %c0_13 = arith.constant 0 : index
    %c0_14 = arith.constant 0 : index
    %17 = vector.load %arg1[%c0_13, %c0_14] : memref<384x384xbf16, #tpu.memory_space<vmem>>, vector<384x384xbf16>
    %18 = arith.truncf %16 : vector<384x128xf32> to vector<384x128xbf16>
    %cst_15 = arith.constant dense<0.000000e+00> : vector<384x128xf32>
    %19 = tpu.matmul %17, %18, %cst_15 {dimension_numbers = #tpu.dot_dimension_numbers<[1], [0], [0], [1], [0, 0, 1, 1], [], []>} : vector<384x384xbf16>, vector<384x128xbf16>, vector<384x128xf32> -> vector<384x128xf32>
    %20 = vector.broadcast %15 : vector<1x128xf32> to vector<384x128xf32>
    %21 = arith.addf %19, %20 : vector<384x128xf32>
    %cst_16 = arith.constant 0.000000e+00 : f32
    %22 = vector.broadcast %cst_16 : f32 to vector<384x128xf32>
    %23 = arith.maximumf %21, %22 : vector<384x128xf32>
    %24 = arith.truncf %23 : vector<384x128xf32> to vector<384x128xbf16>
    %c0_17 = arith.constant 0 : index
    %c0_18 = arith.constant 0 : index
    %25 = vector.load %arg6[%c0_17, %c0_18] : memref<144x128xbf16, #tpu.memory_space<vmem>>, vector<128x128xbf16>
    %c128_19 = arith.constant 128 : index
    %c0_20 = arith.constant 0 : index
    %26 = vector.load %arg6[%c128_19, %c0_20] : memref<144x128xbf16, #tpu.memory_space<vmem>>, vector<1x128xbf16>
    %27 = arith.extf %26 : vector<1x128xbf16> to vector<1x128xf32>
    %cst_21 = arith.constant dense<0.000000e+00> : vector<384x128xf32>
    %28 = tpu.matmul %24, %25, %cst_21 {dimension_numbers = #tpu.dot_dimension_numbers<[1], [0], [0], [1], [0, 0, 1, 1], [], []>} : vector<384x128xbf16>, vector<128x128xbf16>, vector<384x128xf32> -> vector<384x128xf32>
    %c0_22 = arith.constant 0 : index
    %c0_23 = arith.constant 0 : index
    %29 = vector.load %arg1[%c0_22, %c0_23] : memref<384x384xbf16, #tpu.memory_space<vmem>>, vector<384x384xbf16>
    %30 = arith.truncf %28 : vector<384x128xf32> to vector<384x128xbf16>
    %cst_24 = arith.constant dense<0.000000e+00> : vector<384x128xf32>
    %31 = tpu.matmul %29, %30, %cst_24 {dimension_numbers = #tpu.dot_dimension_numbers<[1], [0], [0], [1], [0, 0, 1, 1], [], []>} : vector<384x384xbf16>, vector<384x128xbf16>, vector<384x128xf32> -> vector<384x128xf32>
    %32 = vector.broadcast %27 : vector<1x128xf32> to vector<384x128xf32>
    %33 = arith.addf %31, %32 : vector<384x128xf32>
    %cst_25 = arith.constant 0.000000e+00 : f32
    %34 = vector.broadcast %cst_25 : f32 to vector<384x128xf32>
    %35 = arith.maximumf %33, %34 : vector<384x128xf32>
    %36 = arith.truncf %35 : vector<384x128xf32> to vector<384x128xbf16>
    %c0_26 = arith.constant 0 : index
    %c0_27 = arith.constant 0 : index
    %37 = vector.load %arg3[%c0_26, %c0_27] : memref<16x384xbf16, #tpu.memory_space<vmem>>, vector<16x384xbf16>
    %cst_28 = arith.constant dense<0.000000e+00> : vector<16x128xf32>
    %38 = tpu.matmul %37, %36, %cst_28 {dimension_numbers = #tpu.dot_dimension_numbers<[1], [0], [0], [1], [0, 0, 1, 1], [], []>} : vector<16x384xbf16>, vector<384x128xbf16>, vector<16x128xf32> -> vector<16x128xf32>
    %c0_29 = arith.constant 0 : index
    %c0_30 = arith.constant 0 : index
    %39 = vector.load %arg8[%c0_29, %c0_30] : memref<16x128xf32, #tpu.memory_space<vmem>>, vector<16x128xf32>
    %40 = arith.mulf %38, %39 : vector<16x128xf32>
    %c0_31 = arith.constant 0 : index
    %c0_32 = arith.constant 0 : index
    %41 = vector.load %arg7[%c0_31, %c0_32] : memref<144x128xbf16, #tpu.memory_space<vmem>>, vector<128x128xbf16>
    %c128_33 = arith.constant 128 : index
    %c0_34 = arith.constant 0 : index
    %42 = vector.load %arg7[%c128_33, %c0_34] : memref<144x128xbf16, #tpu.memory_space<vmem>>, vector<1x128xbf16>
    %43 = arith.extf %42 : vector<1x128xbf16> to vector<1x128xf32>
    %44 = arith.truncf %40 : vector<16x128xf32> to vector<16x128xbf16>
    %cst_35 = arith.constant dense<0.000000e+00> : vector<16x128xf32>
    %45 = tpu.matmul %44, %41, %cst_35 {dimension_numbers = #tpu.dot_dimension_numbers<[1], [0], [0], [1], [0, 0, 1, 1], [], []>} : vector<16x128xbf16>, vector<128x128xbf16>, vector<16x128xf32> -> vector<16x128xf32>
    %46 = vector.broadcast %43 : vector<1x128xf32> to vector<16x128xf32>
    %47 = arith.addf %45, %46 : vector<16x128xf32>
    %48 = tpu.iota {dimensions = array<i32: 1>} : vector<16x128xi32>
    %c2_i32 = arith.constant 2 : i32
    %49 = vector.broadcast %c2_i32 : i32 to vector<16x128xi32>
    %50 = arith.cmpi slt, %48, %49 : vector<16x128xi32>
    %cst_36 = arith.constant -1.000000e+30 : f32
    %51 = vector.broadcast %cst_36 : f32 to vector<16x128xf32>
    %52 = arith.select %50, %47, %51 : vector<16x128xi1>, vector<16x128xf32>
    %cst_37 = arith.constant dense<0xFF800000> : vector<16xf32>
    %53 = vector.multi_reduction <maximumf>, %52, %cst_37 [1] : vector<16x128xf32> to vector<16xf32>
    %54 = vector.shape_cast %53 : vector<16xf32> to vector<16x1xf32>
    %55 = vector.broadcast %54 : vector<16x1xf32> to vector<16x128xf32>
    %56 = arith.subf %52, %55 : vector<16x128xf32>
    %57 = math.exp %56 : vector<16x128xf32>
    %cst_38 = arith.constant dense<0.000000e+00> : vector<16xf32>
    %58 = vector.multi_reduction <add>, %57, %cst_38 [1] : vector<16x128xf32> to vector<16xf32>
    %59 = vector.shape_cast %58 : vector<16xf32> to vector<16x1xf32>
    %60 = math.log %59 : vector<16x1xf32>
    %61 = vector.broadcast %60 : vector<16x1xf32> to vector<16x128xf32>
    %62 = arith.subf %56, %61 : vector<16x128xf32>
    %c0_39 = arith.constant 0 : index
    %c0_40 = arith.constant 0 : index
    %63 = vector.load %arg9[%c0_39, %c0_40] : memref<16x128xf32, #tpu.memory_space<vmem>>, vector<16x128xf32>
    tpu.vector_store %arg9[%c0_39, %c0_40], %62 {strides = array<i32>} : memref<16x128xf32, #tpu.memory_space<vmem>>, vector<16x128xf32>,
    return
  }
  func.func @transform_0(%arg0: i32) -> (i32, i32) {
    %c0_i32 = arith.constant 0 : i32
    %c0_i32_0 = arith.constant 0 : i32
    %c0_i32_1 = arith.constant 0 : i32
    return %c0_i32, %c0_i32_0 : i32, i32
  }
  func.func @transform_1(%arg0: i32) -> (i32, i32) {
    %c0_i32 = arith.constant 0 : i32
    %c0_i32_0 = arith.constant 0 : i32
    %c0_i32_1 = arith.constant 0 : i32
    return %c0_i32, %c0_i32_0 : i32, i32
  }
  func.func @transform_2(%arg0: i32) -> (i32, i32) {
    %c0_i32 = arith.constant 0 : i32
    %c0_i32_0 = arith.constant 0 : i32
    %c0_i32_1 = arith.constant 0 : i32
    return %c0_i32, %c0_i32_0 : i32, i32
  }
  func.func @transform_3(%arg0: i32) -> (i32, i32) {
    %c0_i32 = arith.constant 0 : i32
    %c0_i32_0 = arith.constant 0 : i32
    %c0_i32_1 = arith.constant 0 : i32
    return %c0_i32, %c0_i32_0 : i32, i32
  }
  func.func @transform_4(%arg0: i32) -> (i32, i32) {
    %c0_i32 = arith.constant 0 : i32
    %c0_i32_0 = arith.constant 0 : i32
    %c0_i32_1 = arith.constant 0 : i32
    return %c0_i32, %c0_i32_0 : i32, i32
  }
  func.func @transform_5(%arg0: i32) -> (i32, i32) {
    %c0_i32 = arith.constant 0 : i32
    %c0_i32_0 = arith.constant 0 : i32
    %c0_i32_1 = arith.constant 0 : i32
    return %c0_i32, %c0_i32_0 : i32, i32
  }
  func.func @transform_6(%arg0: i32) -> (i32, i32) {
    %c0_i32 = arith.constant 0 : i32
    %c0_i32_0 = arith.constant 0 : i32
    %c0_i32_1 = arith.constant 0 : i32
    return %c0_i32, %c0_i32_0 : i32, i32
  }
  func.func @transform_7(%arg0: i32) -> (i32, i32) {
    %c0_i32 = arith.constant 0 : i32
    %c0_i32_0 = arith.constant 0 : i32
    %c0_i32_1 = arith.constant 0 : i32
    return %c0_i32, %c0_i32_0 : i32, i32
  }
  func.func @transform_8(%arg0: i32) -> (i32, i32) {
    %c0_i32 = arith.constant 0 : i32
    %c0_i32_0 = arith.constant 0 : i32
    %c0_i32_1 = arith.constant 0 : i32
    return %c0_i32, %c0_i32_0 : i32, i32
  }
}

</mosaic_0001>

<bundles_post_ra>
// kernel: gnn_forward.1
= control target key start
LH: loop header
LB: loop body
LE: loop exit
PB: predicated region body
PF: predicated region fallthrough
CT: control target
= control target key end

     0   :  { %v4571_v32 = vmov 0   ;;  %vm4573_vm0 = vmmov 0   ;;  %s5899_s3 = inlined_call_operand.vmem [shape: bf16[144,128], index: 3, kind: input, shape index: {}]   ;;  %s5900_s1 = inlined_call_operand.vmem [shape: bf16[384,128], index: 1, kind: input, shape index: {}]   ;;  %s5901_s0 = inlined_call_operand.vmem [shape: bf16[384,384], index: 0, kind: input, shape index: {}]   ;;  %s5902_s4 = inlined_call_operand.vmem [shape: bf16[144,128], index: 4, kind: input, shape index: {}]   ;;  %s5903_s5 = inlined_call_operand.vmem [shape: bf16[144,128], index: 5, kind: input, shape index: {}]   ;;  %s5904_s2 = inlined_call_operand.vmem [shape: bf16[16,384], index: 2, kind: input, shape index: {}]   ;;  %s5905_s6 = inlined_call_operand.vmem [shape: bf16[144,128], index: 6, kind: input, shape index: {}]   ;;  %s5906_s7 = inlined_call_operand.vmem [shape: f32[16,128], index: 7, kind: input, shape index: {}]   ;;  %s5907_s8 = inlined_call_operand.vmem [shape: f32[16,128], index: 8, kind: output, shape index: {}]  }
   0x1   :  { %v4264_v0 = vld [vmem:[%s5899_s3 + $0x38] sm:$0xff]   ;;  %v4265_v1 = vld [vmem:[%s5899_s3 + $0x30] sm:$0xff]   ;;  %v4266_v2 = vld [vmem:[%s5899_s3 + $0x28] sm:$0xff]   ;;  %1021 = vmatprep.subr.bf16.mxu1 %v4571_v32 }
   0x2   :  { %3837 = vmatprep.subr.bf16.mxu0 %v4264_v0  ;;  %v4267_v3 = vld [vmem:[%s5899_s3 + $0x20] sm:$0xff]   ;;  %v4268_v5 = vld [vmem:[%s5899_s3 + $0x18] sm:$0xff]   ;;  %v4269_v6 = vld [vmem:[%s5899_s3 + $0x10] sm:$0xff]  }
   0x3   :  { %3838 = vmatpush3.bf16.msra.mxu0 %v4264_v0  ;;  %v4272_v4 = vld [vmem:[%s5900_s1] sm:$0xff]   ;;  %v4270_v7 = vld [vmem:[%s5899_s3 + $0x8] sm:$0xff]   ;;  %v4274_v10 = vld [vmem:[%s5900_s1 + $0x10] sm:$0xff]  }
   0x4   :  { %3839 = vmatprep.subr.bf16.mxu0 %v4265_v1  ;;  %3853 = vmatprep.mubr.bf16.mxu0 %v4272_v4  ;;  %v4271_v8 = vld [vmem:[%s5899_s3] sm:$0xff]   ;;  %v4273_v9 = vld [vmem:[%s5900_s1 + $0x8] sm:$0xff]   ;;  %v4275_v11 = vld [vmem:[%s5900_s1 + $0x18] sm:$0xff]  }
   0x5   :  { %v4276_v12 = vld [vmem:[%s5900_s1 + $0x20] sm:$0xff]   ;;  %v4277_v13 = vld [vmem:[%s5900_s1 + $0x28] sm:$0xff]   ;;  %v4278_v14 = vld [vmem:[%s5900_s1 + $0x30] sm:$0xff]  }
   0x6   :  { %v4279_v15 = vld [vmem:[%s5900_s1 + $0x38] sm:$0xff]   ;;  %v4280_v16 = vld [vmem:[%s5900_s1 + $0x40] sm:$0xff]   ;;  %v4281_v17 = vld [vmem:[%s5900_s1 + $0x48] sm:$0xff]  }
   0x7   :  { %3840 = vmatpush3.bf16.msra.mxu0 %v4265_v1  ;;  %v4282_v18 = vld [vmem:[%s5900_s1 + $0x50] sm:$0xff]   ;;  %v4283_v19 = vld [vmem:[%s5900_s1 + $0x58] sm:$0xff]   ;;  %v4284_v20 = vld [vmem:[%s5900_s1 + $0x60] sm:$0xff]  }
   0x8   :  { %3841 = vmatprep.subr.bf16.mxu0 %v4266_v2  ;;  %v4285_v21 = vld [vmem:[%s5900_s1 + $0x68] sm:$0xff]   ;;  %v4286_v22 = vld [vmem:[%s5900_s1 + $0x70] sm:$0xff]   ;;  %v4287_v23 = vld [vmem:[%s5900_s1 + $0x78] sm:$0xff]  }
   0x9   :  { %v4288_v24 = vld [vmem:[%s5900_s1 + $0x80] sm:$0xff]   ;;  %v4289_v25 = vld [vmem:[%s5900_s1 + $0x88] sm:$0xff]   ;;  %v4290_v26 = vld [vmem:[%s5900_s1 + $0x90] sm:$0xff]  }
   0xa   :  { %v4291_v27 = vld [vmem:[%s5900_s1 + $0x98] sm:$0xff]   ;;  %v4292_v28 = vld [vmem:[%s5900_s1 + $0xa0] sm:$0xff]   ;;  %v4293_v29 = vld [vmem:[%s5900_s1 + $0xa8] sm:$0xff]  }
   0xb   :  { %3842 = vmatpush3.bf16.msra.mxu0 %v4266_v2  ;;  %v4294_v30 = vld [vmem:[%s5900_s1 + $0xb0] sm:$0xff]   ;;  %v4295_v31 = vld [vmem:[%s5900_s1 + $0xb8] sm:$0xff]  }
   0xc   :  { %3843 = vmatprep.subr.bf16.mxu0 %v4267_v3  ;;  %v4719_v33 = vld [vmem:[%s5901_s0 + $0x4] ss:$12 sps:$4 sm:$0xff]   ;;  %v4311_v34 = vld [vmem:[%s5901_s0 + $0x8] ss:$12 sps:$4 sm:$0xff]  }
   0xd   :  { %1053 = vmatprep.mubr.bf16.mxu1 %v4719_v33 }
   0xf   :  { %3844 = vmatpush3.bf16.msra.mxu0 %v4267_v3 }
  0x10   :  { %3845 = vmatprep.subr.bf16.mxu0 %v4268_v5 }
  0x13   :  { %3846 = vmatpush3.bf16.msra.mxu0 %v4268_v5 }
  0x14   :  { %3847 = vmatprep.subr.bf16.mxu0 %v4269_v6 }
  0x17   :  { %3848 = vmatpush3.bf16.msra.mxu0 %v4269_v6 }
  0x18   :  { %3849 = vmatprep.subr.bf16.mxu0 %v4270_v7 }
  0x1b   :  { %3850 = vmatpush3.bf16.msra.mxu0 %v4270_v7 }
  0x1c   :  { %3851 = vmatprep.subr.bf16.mxu0 %v4271_v8 }
  0x1f   :  { %3852 = vmatpush3.bf16.msra.mxu0 %v4271_v8 }
  0x22   :  { %3854 = vmatmul.mubr.bf16.vlgmr.msra.gmra.mxu0 %v4273_v9 }
  0x23   :  { %3857 = vmatprep.mubr.bf16.mxu0 %v4274_v10 }
  0x2a   :  { %3858 = vmatmul.mubr.bf16.gmra.mxu0 %v4275_v11 }
  0x2b   :  { %3861 = vmatprep.mubr.bf16.mxu0 %v4276_v12 }
  0x32   :  { %3862 = vmatmul.mubr.bf16.gmra.mxu0 %v4277_v13 }
  0x33   :  { %3865 = vmatprep.mubr.bf16.mxu0 %v4278_v14 }
  0x3a   :  { %3866 = vmatmul.mubr.bf16.gmra.mxu0 %v4279_v15 }
  0x3b   :  { %3869 = vmatprep.mubr.bf16.mxu0 %v4280_v16 }
  0x42   :  { %3870 = vmatmul.mubr.bf16.gmra.mxu0 %v4281_v17 }
  0x43   :  { %3873 = vmatprep.mubr.bf16.mxu0 %v4282_v18 }
  0x4a   :  { %3874 = vmatmul.mubr.bf16.gmra.mxu0 %v4283_v19 }
  0x4b   :  { %3877 = vmatprep.mubr.bf16.mxu0 %v4284_v20 }
  0x52   :  { %3878 = vmatmul.mubr.bf16.gmra.mxu0 %v4285_v21 }
  0x53   :  { %3881 = vmatprep.mubr.bf16.mxu0 %v4286_v22 }
  0x5a   :  { %3882 = vmatmul.mubr.bf16.gmra.mxu0 %v4287_v23 }
  0x5b   :  { %3885 = vmatprep.mubr.bf16.mxu0 %v4288_v24 }
  0x62   :  { %3886 = vmatmul.mubr.bf16.gmra.mxu0 %v4289_v25 }
  0x63   :  { %3889 = vmatprep.mubr.bf16.mxu0 %v4290_v26 }
  0x6a   :  { %3890 = vmatmul.mubr.bf16.gmra.mxu0 %v4291_v27 }
  0x6b   :  { %3893 = vmatprep.mubr.bf16.mxu0 %v4292_v28 }
  0x72   :  { %3894 = vmatmul.mubr.bf16.gmra.mxu0 %v4293_v29 }
  0x73   :  { %3897 = vmatprep.mubr.bf16.mxu0 %v4294_v30 }
  0x7a   :  { %3898 = vmatmul.mubr.bf16.gmra.mxu0 %v4295_v31 }
  0x7b   :  { %3917 = vmatprep.mubr.bf16.mxu0 %v4311_v34 }
  0xe2   :  { %v3855_v35 = vpop.f32.mrf.mxu0 }
  0xe4   :  { %v322_v36 = vpop.f32.mrf.mxu0 }
  0xe6   :  { %v3856_v37 = vpop.f32.mrf.mxu0 }
  0xe7   :  { %v610_v4 = vpack.c.bf16 %v3856_v37, %v3855_v35  ;;  %v4298_v35 = vld [vmem:[%s5901_s0] ss:$12 sps:$4 sm:$0xff]  }
  0xe8   :  { %v325_v38 = vpop.f32.mrf.mxu0 }
  0xe9   :  { %v609_v7 = vpack.c.bf16 %v325_v38, %v322_v36  ;;  %v4299_v36 = vld [vmem:[%s5901_s0 + $0x1c] ss:$12 sps:$4 sm:$0xff]  }
  0xea   :  { %v3859_v39 = vpop.f32.mrf.mxu0 }
  0xec   :  { %v338_v40 = vpop.f32.mrf.mxu0 }
  0xee   :  { %v3860_v41 = vpop.f32.mrf.mxu0 }
  0xef   :  { %v612_v62 = vpack.c.bf16 %v3860_v41, %v3859_v39 }
  0xf0   :  { %v341_v42 = vpop.f32.mrf.mxu0 }
  0xf1   :  { %v611_v1 = vpack.c.bf16 %v341_v42, %v338_v40  ;;  %v4301_v42 = vld [vmem:[%s5901_s0 + $0x18] ss:$12 sps:$4 sm:$0xff]  }
  0xf2   :  { %v3863_v43 = vpop.f32.mrf.mxu0 }
  0xf4   :  { %v354_v44 = vpop.f32.mrf.mxu0 }
  0xf6   :  { %v3864_v45 = vpop.f32.mrf.mxu0 }
  0xf7   :  { %v614_v56 = vpack.c.bf16 %v3864_v45, %v3863_v43  ;;  %v4302_v43 = vld [vmem:[%s5901_s0 + $0x34] ss:$12 sps:$4 sm:$0xff]   ;;  %v4304_v45 = vld [vmem:[%s5901_s0 + $0x30] ss:$12 sps:$4 sm:$0xff]  }
  0xf8   :  { %v357_v46 = vpop.f32.mrf.mxu0 }
  0xf9   :  { %v613_v59 = vpack.c.bf16 %v357_v46, %v354_v44 }
  0xfa   :  { %v3867_v47 = vpop.f32.mrf.mxu0 }
  0xfc   :  { %v370_v48 = vpop.f32.mrf.mxu0 }
  0xfe   :  { %v3868_v49 = vpop.f32.mrf.mxu0 }
  0xff   :  { %v616_v50 = vpack.c.bf16 %v3868_v49, %v3867_v47  ;;  %v4305_v47 = vld [vmem:[%s5901_s0 + $0x4c] ss:$12 sps:$4 sm:$0xff]   ;;  %v4307_v49 = vld [vmem:[%s5901_s0 + $0x48] ss:$12 sps:$4 sm:$0xff]  }
 0x100   :  { %v373_v51 = vpop.f32.mrf.mxu0 }
 0x101   :  { %1022 = vmatpush1.bf16.msra.mxu1 %v616_v50  ;;  %v615_v53 = vpack.c.bf16 %v373_v51, %v370_v48  ;;  %v4308_v51 = vld [vmem:[%s5901_s0 + $0x64] ss:$12 sps:$4 sm:$0xff]  }
 0x102   :  { %v4725_v52 = vpop.f32.mrf.mxu0  ;;  %1023 = vmatprep.subr.bf16.mxu1 %v4571_v32 }
 0x104   :  { %v4728_v54 = vpop.f32.mrf.mxu0 }
 0x105   :  { %1024 = vmatpush1.bf16.msra.mxu1 %v615_v53  ;;  %v4310_v53 = vld [vmem:[%s5901_s0 + $0x60] ss:$12 sps:$4 sm:$0xff]  }
 0x106   :  { %v4730_v55 = vpop.f32.mrf.mxu0  ;;  %1025 = vmatprep.subr.bf16.mxu1 %v4571_v32 }
 0x107   :  { %v618_v28 = vpack.c.bf16 %v4730_v55, %v4725_v52  ;;  %v4313_v55 = vld [vmem:[%s5901_s0 + $0x7c] ss:$12 sps:$4 sm:$0xff]  }
 0x108   :  { %v4733_v57 = vpop.f32.mrf.mxu0 }
 0x109   :  { %1026 = vmatpush1.bf16.msra.mxu1 %v614_v56  ;;  %v617_v31 = vpack.c.bf16 %v4733_v57, %v4728_v54  ;;  %v4312_v54 = vld [vmem:[%s5901_s0 + $0x20] ss:$12 sps:$4 sm:$0xff]   ;;  %v4316_v56 = vld [vmem:[%s5901_s0 + $0x38] ss:$12 sps:$4 sm:$0xff]  }
 0x10a   :  { %v3875_v58 = vpop.f32.mrf.mxu0  ;;  %1027 = vmatprep.subr.bf16.mxu1 %v4571_v32  ;;  %v4315_v57 = vld [vmem:[%s5901_s0 + $0x78] ss:$12 sps:$4 sm:$0xff]  }
 0x10c   :  { %v402_v60 = vpop.f32.mrf.mxu0 }
 0x10d   :  { %1028 = vmatpush1.bf16.msra.mxu1 %v613_v59  ;;  %v4318_v59 = vld [vmem:[%s5901_s0 + $0x94] ss:$12 sps:$4 sm:$0xff]  }
 0x10e   :  { %v3876_v61 = vpop.f32.mrf.mxu0  ;;  %1029 = vmatprep.subr.bf16.mxu1 %v4571_v32 }
 0x10f   :  { %v620_v22 = vpack.c.bf16 %v3876_v61, %v3875_v58  ;;  %v4317_v58 = vld [vmem:[%s5901_s0 + $0x50] ss:$12 sps:$4 sm:$0xff]  }
 0x110   :  { %v405_v63 = vpop.f32.mrf.mxu0  ;;  %v4320_v61 = vld [vmem:[%s5901_s0 + $0x90] ss:$12 sps:$4 sm:$0xff]  }
 0x111   :  { %1030 = vmatpush1.bf16.msra.mxu1 %v612_v62  ;;  %v619_v25 = vpack.c.bf16 %v405_v63, %v402_v60  ;;  %v4321_v60 = vld [vmem:[%s5901_s0 + $0x68] ss:$12 sps:$4 sm:$0xff]   ;;  %v4322_v62 = vld [vmem:[%s5901_s0 + $0x80] ss:$12 sps:$4 sm:$0xff]  }
 0x112   :  { %v3879_v0 = vpop.f32.mrf.mxu0  ;;  %1031 = vmatprep.subr.bf16.mxu1 %v4571_v32  ;;  %v4323_v63 = vld [vmem:[%s5901_s0 + $0xac] ss:$12 sps:$4 sm:$0xff]  }
 0x114   :  { %v418_v2 = vpop.f32.mrf.mxu0 }
 0x115   :  { %1032 = vmatpush1.bf16.msra.mxu1 %v611_v1  ;;  %v4325_v1 = vld [vmem:[%s5901_s0 + $0xa8] ss:$12 sps:$4 sm:$0xff]  }
 0x116   :  { %v3880_v3 = vpop.f32.mrf.mxu0  ;;  %1033 = vmatprep.subr.bf16.mxu1 %v4571_v32 }
 0x117   :  { %v622_v16 = vpack.c.bf16 %v3880_v3, %v3879_v0  ;;  %v4326_v0 = vld [vmem:[%s5901_s0 + $0x98] ss:$12 sps:$4 sm:$0xff]  }
 0x118   :  { %v421_v5 = vpop.f32.mrf.mxu0  ;;  %v4328_v3 = vld [vmem:[%s5901_s0 + $0xc4] ss:$12 sps:$4 sm:$0xff]  }
 0x119   :  { %1034 = vmatpush1.bf16.msra.mxu1 %v610_v4  ;;  %v621_v19 = vpack.c.bf16 %v421_v5, %v418_v2  ;;  %v4327_v2 = vld [vmem:[%s5901_s0 + $0xb0] ss:$12 sps:$4 sm:$0xff]   ;;  %v4331_v4 = vld [vmem:[%s5901_s0 + $0xc8] ss:$12 sps:$4 sm:$0xff]   ;;  %v4330_v5 = vld [vmem:[%s5901_s0 + $0xc0] ss:$12 sps:$4 sm:$0xff]  }
 0x11a   :  { %v3883_v6 = vpop.f32.mrf.mxu0  ;;  %1035 = vmatprep.subr.bf16.mxu1 %v4571_v32 }
 0x11c   :  { %v434_v8 = vpop.f32.mrf.mxu0 }
 0x11d   :  { %1036 = vmatpush1.bf16.msra.mxu1 %v609_v7  ;;  %v4333_v7 = vld [vmem:[%s5901_s0 + $0xdc] ss:$12 sps:$4 sm:$0xff]  }
 0x11e   :  { %v3884_v9 = vpop.f32.mrf.mxu0  ;;  %1037 = vmatprep.subr.bf16.mxu1 %v4571_v32 }
 0x11f   :  { %v624_v10 = vpack.c.bf16 %v3884_v9, %v3883_v6  ;;  %v4332_v6 = vld [vmem:[%s5901_s0 + $0xe0] ss:$12 sps:$4 sm:$0xff]   ;;  %v4335_v9 = vld [vmem:[%s5901_s0 + $0xd8] ss:$12 sps:$4 sm:$0xff]  }
 0x120   :  { %v437_v11 = vpop.f32.mrf.mxu0 }
 0x121   :  { %1038 = vmatpush2.bf16.msra.mxu1 %v624_v10  ;;  %v623_v13 = vpack.c.bf16 %v437_v11, %v434_v8  ;;  %v4338_v8 = vld [vmem:[%s5901_s0 + $0xf8] ss:$12 sps:$4 sm:$0xff]   ;;  %v4336_v10 = vld [vmem:[%s5901_s0 + $0xf4] ss:$12 sps:$4 sm:$0xff]   ;;  %v4340_v11 = vld [vmem:[%s5901_s0 + $0x110] ss:$12 sps:$4 sm:$0xff]  }
 0x122   :  { %v4741_v12 = vpop.f32.mrf.mxu0  ;;  %1039 = vmatprep.subr.bf16.mxu1 %v4571_v32 }
 0x124   :  { %v4744_v14 = vpop.f32.mrf.mxu0 }
 0x125   :  { %1040 = vmatpush2.bf16.msra.mxu1 %v623_v13  ;;  %v4339_v13 = vld [vmem:[%s5901_s0 + $0xf0] ss:$12 sps:$4 sm:$0xff]  }
 0x126   :  { %v4746_v15 = vpop.f32.mrf.mxu0  ;;  %1041 = vmatprep.subr.bf16.mxu1 %v4571_v32 }
 0x127   :  { %v626_v50 = vpack.c.bf16 %v4746_v15, %v4741_v12  ;;  %v4346_v12 = vld [vmem:[%s5901_s0 + $0x128] ss:$12 sps:$4 sm:$0xff]   ;;  %v4348_v15 = vld [vmem:[%s5901_s0 + $0x140] ss:$12 sps:$4 sm:$0xff]  }
 0x128   :  { %v4749_v17 = vpop.f32.mrf.mxu0 }
 0x129   :  { %1042 = vmatpush2.bf16.msra.mxu1 %v622_v16  ;;  %v625_v52 = vpack.c.bf16 %v4749_v17, %v4744_v14  ;;  %v4341_v14 = vld [vmem:[%s5901_s0 + $0x10c] ss:$12 sps:$4 sm:$0xff]  }
 0x12a   :  { %v3891_v18 = vpop.f32.mrf.mxu0  ;;  %1043 = vmatprep.subr.bf16.mxu1 %v4571_v32  ;;  %v4392_v16 = vld [vmem:[%s5902_s4 + $0x38] sm:$0xff]  }
 0x12b   :  { %v4354_v17 = vld [vmem:[%s5901_s0 + $0x158] ss:$12 sps:$4 sm:$0xff]  }
 0x12c   :  { %v466_v20 = vpop.f32.mrf.mxu0 }
 0x12d   :  { %1044 = vmatpush2.bf16.msra.mxu1 %v621_v19  ;;  %v4343_v19 = vld [vmem:[%s5901_s0 + $0x108] ss:$12 sps:$4 sm:$0xff]  }
 0x12e   :  { %v3892_v21 = vpop.f32.mrf.mxu0  ;;  %1045 = vmatprep.subr.bf16.mxu1 %v4571_v32 }
 0x12f   :  { %v628_v46 = vpack.c.bf16 %v3892_v21, %v3891_v18  ;;  %v4393_v18 = vld [vmem:[%s5902_s4 + $0x30] sm:$0xff]  }
 0x130   :  { %v469_v23 = vpop.f32.mrf.mxu0  ;;  %v4356_v21 = vld [vmem:[%s5901_s0 + $0x170] ss:$12 sps:$4 sm:$0xff]  }
 0x131   :  { %1046 = vmatpush2.bf16.msra.mxu1 %v620_v22  ;;  %v627_v48 = vpack.c.bf16 %v469_v23, %v466_v20  ;;  %v4344_v20 = vld [vmem:[%s5901_s0 + $0x124] ss:$12 sps:$4 sm:$0xff]   ;;  %v4394_v22 = vld [vmem:[%s5902_s4 + $0x28] sm:$0xff]  }
 0x132   :  { %v3895_v24 = vpop.f32.mrf.mxu0  ;;  %1047 = vmatprep.subr.bf16.mxu1 %v4571_v32  ;;  %v4362_v23 = vld [vmem:[%s5901_s0 + $0x188] ss:$12 sps:$4 sm:$0xff]  }
 0x134   :  { %v482_v26 = vpop.f32.mrf.mxu0 }
 0x135   :  { %1048 = vmatpush2.bf16.msra.mxu1 %v619_v25  ;;  %v4347_v25 = vld [vmem:[%s5901_s0 + $0x120] ss:$12 sps:$4 sm:$0xff]  }
 0x136   :  { %v3896_v27 = vpop.f32.mrf.mxu0  ;;  %1049 = vmatprep.subr.bf16.mxu1 %v4571_v32 }
 0x137   :  { %v630_v41 = vpack.c.bf16 %v3896_v27, %v3895_v24  ;;  %v4395_v24 = vld [vmem:[%s5902_s4 + $0x20] sm:$0xff]  }
 0x138   :  { %v485_v29 = vpop.f32.mrf.mxu0  ;;  %v4364_v27 = vld [vmem:[%s5901_s0 + $0x1a0] ss:$12 sps:$4 sm:$0xff]  }
 0x139   :  { %1050 = vmatpush2.bf16.msra.mxu1 %v618_v28  ;;  %v629_v44 = vpack.c.bf16 %v485_v29, %v482_v26  ;;  %v4349_v26 = vld [vmem:[%s5901_s0 + $0x13c] ss:$12 sps:$4 sm:$0xff]   ;;  %v4370_v29 = vld [vmem:[%s5901_s0 + $0x1b8] ss:$12 sps:$4 sm:$0xff]  }
 0x13a   :  { %v3899_v30 = vpop.f32.mrf.mxu0  ;;  %1051 = vmatprep.subr.bf16.mxu1 %v4571_v32  ;;  %v4396_v28 = vld [vmem:[%s5902_s4 + $0x18] sm:$0xff]  }
 0x13c   :  { %v498_v34 = vpop.f32.mrf.mxu0 }
 0x13d   :  { %1052 = vmatpush2.bf16.msra.mxu1 %v617_v31  ;;  %v4351_v31 = vld [vmem:[%s5901_s0 + $0x138] ss:$12 sps:$4 sm:$0xff]  }
 0x13e   :  { %v3900_v37 = vpop.f32.mrf.mxu0  ;;  %1862 = vmatprep.subr.bf16.mxu1 %v4571_v32 }
 0x13f   :  { %v632_v38 = vpack.c.bf16 %v3900_v37, %v3899_v30  ;;  %v4397_v30 = vld [vmem:[%s5902_s4 + $0x10] sm:$0xff]  }
 0x140   :  { %1054 = vmatmul.mubr.bf16.vlgmr.msra.gmra.mxu1 %v4298_v35  ;;  %v501_v39 = vpop.f32.mrf.mxu0  ;;  %v4372_v35 = vld [vmem:[%s5901_s0 + $0x1d0] ss:$12 sps:$4 sm:$0xff]   ;;  %v4378_v37 = vld [vmem:[%s5901_s0 + $0x1e8] ss:$12 sps:$4 sm:$0xff]  }
 0x141   :  { %3901 = vmatprep.subr.bf16.mxu0 %v632_v38  ;;  %v631_v40 = vpack.c.bf16 %v501_v39, %v498_v34  ;;  %1061 = vmatprep.mubr.bf16.mxu1 %v4299_v36  ;;  %v4352_v34 = vld [vmem:[%s5901_s0 + $0x154] ss:$12 sps:$4 sm:$0xff]   ;;  %v4398_v36 = vld [vmem:[%s5902_s4 + $0x8] sm:$0xff]   ;;  %v4355_v39 = vld [vmem:[%s5901_s0 + $0x150] ss:$12 sps:$4 sm:$0xff]  }
 0x142   :  { %3902 = vmatpush3.bf16.msra.mxu0 %v632_v38  ;;  %v4399_v38 = vld [vmem:[%s5902_s4] sm:$0xff]  }
 0x143   :  { %3903 = vmatprep.subr.bf16.mxu0 %v631_v40 }
 0x146   :  { %3904 = vmatpush3.bf16.msra.mxu0 %v631_v40  ;;  %v4357_v40 = vld [vmem:[%s5901_s0 + $0x16c] ss:$12 sps:$4 sm:$0xff]  }
 0x147   :  { %3905 = vmatprep.subr.bf16.mxu0 %v630_v41 }
 0x148   :  { %1062 = vmatmul.mubr.bf16.gmra.mxu1 %v4301_v42  ;;  %v4386_v42 = vld [vmem:[%s5901_s0 + $0x218] ss:$12 sps:$4 sm:$0xff]  }
 0x149   :  { %1069 = vmatprep.mubr.bf16.mxu1 %v4302_v43  ;;  %v4359_v43 = vld [vmem:[%s5901_s0 + $0x168] ss:$12 sps:$4 sm:$0xff]  }
 0x14a   :  { %3906 = vmatpush3.bf16.msra.mxu0 %v630_v41  ;;  %v4380_v41 = vld [vmem:[%s5901_s0 + $0x200] ss:$12 sps:$4 sm:$0xff]  }
 0x14b   :  { %3907 = vmatprep.subr.bf16.mxu0 %v629_v44 }
 0x14e   :  { %3908 = vmatpush3.bf16.msra.mxu0 %v629_v44  ;;  %v4360_v44 = vld [vmem:[%s5901_s0 + $0x184] ss:$12 sps:$4 sm:$0xff]  }
 0x14f   :  { %3909 = vmatprep.subr.bf16.mxu0 %v628_v46 }
 0x150   :  { %1070 = vmatmul.mubr.bf16.gmra.mxu1 %v4304_v45  ;;  %v4388_v45 = vld [vmem:[%s5901_s0 + $0x230] ss:$12 sps:$4 sm:$0xff]  }
 0x151   :  { %1077 = vmatprep.mubr.bf16.mxu1 %v4305_v47  ;;  %v4365_v47 = vld [vmem:[%s5901_s0 + $0x19c] ss:$12 sps:$4 sm:$0xff]  }
 0x152   :  { %3910 = vmatpush3.bf16.msra.mxu0 %v628_v46  ;;  %v4363_v46 = vld [vmem:[%s5901_s0 + $0x180] ss:$12 sps:$4 sm:$0xff]  }
 0x153   :  { %3911 = vmatprep.subr.bf16.mxu0 %v627_v48 }
 0x156   :  { %3912 = vmatpush3.bf16.msra.mxu0 %v627_v48  ;;  %v4367_v48 = vld [vmem:[%s5901_s0 + $0x198] ss:$12 sps:$4 sm:$0xff]  }
 0x157   :  { %3913 = vmatprep.subr.bf16.mxu0 %v626_v50 }
 0x158   :  { %1078 = vmatmul.mubr.bf16.gmra.mxu1 %v4307_v49  ;;  %v4368_v49 = vld [vmem:[%s5901_s0 + $0x1b4] ss:$12 sps:$4 sm:$0xff]  }
 0x159   :  { %1085 = vmatprep.mubr.bf16.mxu1 %v4308_v51  ;;  %v4373_v51 = vld [vmem:[%s5901_s0 + $0x1cc] ss:$12 sps:$4 sm:$0xff]  }
 0x15a   :  { %3914 = vmatpush3.bf16.msra.mxu0 %v626_v50  ;;  %v4371_v50 = vld [vmem:[%s5901_s0 + $0x1b0] ss:$12 sps:$4 sm:$0xff]  }
 0x15b   :  { %3915 = vmatprep.subr.bf16.mxu0 %v625_v52 }
 0x15e   :  { %3916 = vmatpush3.bf16.msra.mxu0 %v625_v52  ;;  %v4375_v52 = vld [vmem:[%s5901_s0 + $0x1c8] ss:$12 sps:$4 sm:$0xff]  }
 0x15f   :  { %3965 = vmatprep.subr.bf16.mxu0 %v4392_v16 }
 0x160   :  { %1086 = vmatmul.mubr.bf16.gmra.mxu1 %v4310_v53  ;;  %v4376_v53 = vld [vmem:[%s5901_s0 + $0x1e4] ss:$12 sps:$4 sm:$0xff]  }
 0x161   :  { %3918 = vmatmul.mubr.bf16.vlgmr.msra.gmra.mxu0 %v4312_v54  ;;  %1093 = vmatprep.mubr.bf16.mxu1 %v4313_v55  ;;  %v4379_v54 = vld [vmem:[%s5901_s0 + $0x1e0] ss:$12 sps:$4 sm:$0xff]   ;;  %v4381_v55 = vld [vmem:[%s5901_s0 + $0x1fc] ss:$12 sps:$4 sm:$0xff]  }
 0x162   :  { %3921 = vmatprep.mubr.bf16.mxu0 %v4316_v56  ;;  %3966 = vmatpush3.bf16.msra.mxu0 %v4392_v16  ;;  %v4383_v56 = vld [vmem:[%s5901_s0 + $0x1f8] ss:$12 sps:$4 sm:$0xff]  }
 0x163   :  { %3967 = vmatprep.subr.bf16.mxu0 %v4393_v18 }
 0x166   :  { %3968 = vmatpush3.bf16.msra.mxu0 %v4393_v18 }
 0x167   :  { %3969 = vmatprep.subr.bf16.mxu0 %v4394_v22 }
 0x168   :  { %1094 = vmatmul.mubr.bf16.gmra.mxu1 %v4315_v57  ;;  %v4384_v57 = vld [vmem:[%s5901_s0 + $0x214] ss:$12 sps:$4 sm:$0xff]  }
 0x169   :  { %3922 = vmatmul.mubr.bf16.gmra.mxu0 %v4317_v58  ;;  %1101 = vmatprep.mubr.bf16.mxu1 %v4318_v59  ;;  %v4387_v58 = vld [vmem:[%s5901_s0 + $0x210] ss:$12 sps:$4 sm:$0xff]   ;;  %v4389_v59 = vld [vmem:[%s5901_s0 + $0x22c] ss:$12 sps:$4 sm:$0xff]  }
 0x16a   :  { %3925 = vmatprep.mubr.bf16.mxu0 %v4321_v60  ;;  %3970 = vmatpush3.bf16.msra.mxu0 %v4394_v22  ;;  %v4391_v60 = vld [vmem:[%s5901_s0 + $0x228] ss:$12 sps:$4 sm:$0xff]  }
 0x16b   :  { %3971 = vmatprep.subr.bf16.mxu0 %v4395_v24 }
 0x16e   :  { %3972 = vmatpush3.bf16.msra.mxu0 %v4395_v24 }
 0x16f   :  { %3973 = vmatprep.subr.bf16.mxu0 %v4396_v28 }
 0x170   :  { %1102 = vmatmul.mubr.bf16.gmra.mxu1 %v4320_v61 }
 0x171   :  { %3926 = vmatmul.mubr.bf16.gmra.mxu0 %v4322_v62  ;;  %1109 = vmatprep.mubr.bf16.mxu1 %v4323_v63 }
 0x172   :  { %3929 = vmatprep.mubr.bf16.mxu0 %v4326_v0  ;;  %3974 = vmatpush3.bf16.msra.mxu0 %v4396_v28 }
 0x173   :  { %3975 = vmatprep.subr.bf16.mxu0 %v4397_v30 }
 0x176   :  { %3976 = vmatpush3.bf16.msra.mxu0 %v4397_v30 }
 0x177   :  { %3977 = vmatprep.subr.bf16.mxu0 %v4398_v36 }
 0x178   :  { %1110 = vmatmul.mubr.bf16.gmra.mxu1 %v4325_v1 }
 0x179   :  { %3930 = vmatmul.mubr.bf16.gmra.mxu0 %v4327_v2  ;;  %1117 = vmatprep.mubr.bf16.mxu1 %v4328_v3 }
 0x17a   :  { %3933 = vmatprep.mubr.bf16.mxu0 %v4331_v4  ;;  %3978 = vmatpush3.bf16.msra.mxu0 %v4398_v36 }
 0x17b   :  { %3979 = vmatprep.subr.bf16.mxu0 %v4399_v38 }
 0x17e   :  { %3980 = vmatpush3.bf16.msra.mxu0 %v4399_v38 }
 0x180   :  { %1118 = vmatmul.mubr.bf16.gmra.mxu1 %v4330_v5 }
 0x181   :  { %3934 = vmatmul.mubr.bf16.gmra.mxu0 %v4332_v6  ;;  %1125 = vmatprep.mubr.bf16.mxu1 %v4333_v7  ;;  %v633_v7 = vlaneseq }
 0x182   :  { %3937 = vmatprep.mubr.bf16.mxu0 %v4338_v8 }
 0x188   :  { %1126 = vmatmul.mubr.bf16.gmra.mxu1 %v4335_v9 }
 0x189   :  { %1133 = vmatprep.mubr.bf16.mxu1 %v4336_v10  ;;  %3938 = vmatmul.mubr.bf16.gmra.mxu0 %v4340_v11  ;;  %v634_v10 = vshrl.u32 %v633_v7, 7 }
 0x18a   :  { %3941 = vmatprep.mubr.bf16.mxu0 %v4346_v12 }
 0x190   :  { %1134 = vmatmul.mubr.bf16.gmra.mxu1 %v4339_v13 }
 0x191   :  { %1141 = vmatprep.mubr.bf16.mxu1 %v4341_v14  ;;  %3942 = vmatmul.mubr.bf16.gmra.mxu0 %v4348_v15  ;;  %v5004_v14 = vsub.s32 0, %v634_v10 }
 0x192   :  { %3945 = vmatprep.mubr.bf16.mxu0 %v4354_v17 }
 0x198   :  { %1142 = vmatmul.mubr.bf16.gmra.mxu1 %v4343_v19 }
 0x199   :  { %1149 = vmatprep.mubr.bf16.mxu1 %v4344_v20  ;;  %3946 = vmatmul.mubr.bf16.gmra.mxu0 %v4356_v21 }
 0x19a   :  { %3949 = vmatprep.mubr.bf16.mxu0 %v4362_v23 }
 0x1a0   :  { %1150 = vmatmul.mubr.bf16.gmra.mxu1 %v4347_v25 }
 0x1a1   :  { %1157 = vmatprep.mubr.bf16.mxu1 %v4349_v26  ;;  %3950 = vmatmul.mubr.bf16.gmra.mxu0 %v4364_v27 }
 0x1a2   :  { %3953 = vmatprep.mubr.bf16.mxu0 %v4370_v29 }
 0x1a8   :  { %1158 = vmatmul.mubr.bf16.gmra.mxu1 %v4351_v31 }
 0x1a9   :  { %1165 = vmatprep.mubr.bf16.mxu1 %v4352_v34  ;;  %3954 = vmatmul.mubr.bf16.gmra.mxu0 %v4372_v35 }
 0x1aa   :  { %3957 = vmatprep.mubr.bf16.mxu0 %v4378_v37 }
 0x1b0   :  { %1166 = vmatmul.mubr.bf16.gmra.mxu1 %v4355_v39 }
 0x1b1   :  { %1173 = vmatprep.mubr.bf16.mxu1 %v4357_v40  ;;  %3958 = vmatmul.mubr.bf16.gmra.mxu0 %v4380_v41 }
 0x1b2   :  { %3961 = vmatprep.mubr.bf16.mxu0 %v4386_v42 }
 0x1b8   :  { %1174 = vmatmul.mubr.bf16.gmra.mxu1 %v4359_v43 }
 0x1b9   :  { %1181 = vmatprep.mubr.bf16.mxu1 %v4360_v44  ;;  %3962 = vmatmul.mubr.bf16.gmra.mxu0 %v4388_v45 }
 0x1c0   :  { %1182 = vmatmul.mubr.bf16.gmra.mxu1 %v4363_v46 }
 0x1c1   :  { %1189 = vmatprep.mubr.bf16.mxu1 %v4365_v47 }
 0x1c8   :  { %1190 = vmatmul.mubr.bf16.gmra.mxu1 %v4367_v48 }
 0x1c9   :  { %1197 = vmatprep.mubr.bf16.mxu1 %v4368_v49 }
 0x1d0   :  { %1198 = vmatmul.mubr.bf16.gmra.mxu1 %v4371_v50 }
 0x1d1   :  { %1205 = vmatprep.mubr.bf16.mxu1 %v4373_v51 }
 0x1d8   :  { %1206 = vmatmul.mubr.bf16.gmra.mxu1 %v4375_v52 }
 0x1d9   :  { %1213 = vmatprep.mubr.bf16.mxu1 %v4376_v53 }
 0x1e0   :  { %1214 = vmatmul.mubr.bf16.gmra.mxu1 %v4379_v54 }
 0x1e1   :  { %1221 = vmatprep.mubr.bf16.mxu1 %v4381_v55 }
 0x1e8   :  { %1222 = vmatmul.mubr.bf16.gmra.mxu1 %v4383_v56 }
 0x1e9   :  { %1229 = vmatprep.mubr.bf16.mxu1 %v4384_v57 }
 0x1f0   :  { %1230 = vmatmul.mubr.bf16.gmra.mxu1 %v4387_v58 }
 0x1f1   :  { %1237 = vmatprep.mubr.bf16.mxu1 %v4389_v59 }
 0x1f8   :  { %1238 = vmatmul.mubr.bf16.gmra.mxu1 %v4391_v60 }
 0x1f9   :  { %1894 = vmatprep.mubr.bf16.mxu1 %v4719_v33  ;;  %v94_v33 = vld [vmem:[%s5899_s3 + $0x40] sm:$0x1] }
 0x1fa   :  { %v95_v13 = vunpack.c.l.bf16 %v94_v33 }
 0x1fc   :  { %v5007_v17 = vrot.slane %v95_v13, %v5004_v14 }
 0x200   :  { %v1055_v61 = vpop.f32.mrf.mxu1 }
 0x201   :  { %v1056_v22 = vadd.f32 %v1055_v61, %v5007_v17 }
 0x202   :  { %v1057_v62 = vpop.f32.mrf.mxu1 }
 0x204   :  { %v1058_v63 = vpop.f32.mrf.mxu1 }
 0x205   :  { %v1059_v27 = vadd.f32 %v1058_v63, %v5007_v17 }
 0x206   :  { %v1060_v0 = vpop.f32.mrf.mxu1 }
 0x208   :  { %v1063_v1 = vpop.f32.mrf.mxu1 }
 0x209   :  { %v1064_v25 = vadd.f32 %v1063_v1, %v5007_v17 }
 0x20a   :  { %v1065_v2 = vpop.f32.mrf.mxu1 }
 0x20c   :  { %v1066_v3 = vpop.f32.mrf.mxu1 }
 0x20d   :  { %v1067_v23 = vadd.f32 %v1066_v3, %v5007_v17 }
 0x20e   :  { %v1068_v4 = vpop.f32.mrf.mxu1 }
 0x210   :  { %v1071_v5 = vpop.f32.mrf.mxu1 }
 0x211   :  { %v1072_v44 = vadd.f32 %v1071_v5, %v5007_v17 }
 0x212   :  { %v1073_v6 = vpop.f32.mrf.mxu1 }
 0x214   :  { %v1074_v8 = vpop.f32.mrf.mxu1 }
 0x215   :  { %v1075_v51 = vadd.f32 %v1074_v8, %v5007_v17 }
 0x216   :  { %v1076_v9 = vpop.f32.mrf.mxu1 }
 0x218   :  { %v1079_v11 = vpop.f32.mrf.mxu1 }
 0x219   :  { %v1080_v48 = vadd.f32 %v1079_v11, %v5007_v17 }
 0x21a   :  { %v1081_v12 = vpop.f32.mrf.mxu1 }
 0x21c   :  { %v1082_v15 = vpop.f32.mrf.mxu1 }
 0x21d   :  { %v1083_v45 = vadd.f32 %v1082_v15, %v5007_v17 }
 0x21e   :  { %v1084_v16 = vpop.f32.mrf.mxu1 }
 0x220   :  { %v1087_v18 = vpop.f32.mrf.mxu1 }
 0x221   :  { %v3919_v19 = vpop.f32.mrf.mxu0  ;;  %v1088_v2 = vadd.f32 %v1087_v18, %v5007_v17 }
 0x222   :  { %v1089_v20 = vpop.f32.mrf.mxu1  ;;  %v1289_v31 = vadd.f32 %v3919_v19, %v1064_v25 }
 0x223   :  { %v1280_v21 = vpop.f32.mrf.mxu0 }
 0x224   :  { %v1090_v24 = vpop.f32.mrf.mxu1  ;;  %v1281_v28 = vadd.f32 %v1280_v21, %v1056_v22  ;;  %v1473_v42 = vmax.f32 %v1289_v31, 0.0 }
 0x225   :  { %v3920_v26 = vpop.f32.mrf.mxu0  ;;  %v1091_v10 = vadd.f32 %v1090_v24, %v5007_v17 }
 0x226   :  { %v1292_v29 = vadd.f32 %v3920_v26, %v1067_v23  ;;  %v1092_v30 = vpop.f32.mrf.mxu1  ;;  %v1471_v39 = vmax.f32 %v1281_v28, 0.0 }
 0x227   :  { %v1283_v34 = vpop.f32.mrf.mxu0 }
 0x228   :  { %v1284_v35 = vadd.f32 %v1283_v34, %v1059_v27  ;;  %v1095_v36 = vpop.f32.mrf.mxu1  ;;  %v1474_v37 = vmax.f32 %v1292_v29, 0.0 }
 0x229   :  { %v3923_v38 = vpop.f32.mrf.mxu0  ;;  %v1096_v6 = vadd.f32 %v1095_v36, %v5007_v17 }
 0x22a   :  { %v1472_v40 = vmax.f32 %v1284_v35, 0.0  ;;  %v1097_v41 = vpop.f32.mrf.mxu1  ;;  %v1520_v49 = vpack.c.bf16 %v1474_v37, %v1473_v42  ;;  %v1305_v55 = vadd.f32 %v3923_v38, %v1080_v48 }
 0x22b   :  { %v1296_v43 = vpop.f32.mrf.mxu0 }
 0x22c   :  { %v1098_v46 = vpop.f32.mrf.mxu1  ;;  %v1519_v47 = vpack.c.bf16 %v1472_v40, %v1471_v39  ;;  %v1297_v52 = vadd.f32 %v1296_v43, %v1072_v44  ;;  %v1477_v0 = vmax.f32 %v1305_v55, 0.0 }
 0x22d   :  { %v3924_v50 = vpop.f32.mrf.mxu0  ;;  %v1099_v3 = vadd.f32 %v1098_v46, %v5007_v17 }
 0x22e   :  { %v1308_v53 = vadd.f32 %v3924_v50, %v1083_v45  ;;  %v1100_v54 = vpop.f32.mrf.mxu1  ;;  %3981 = vmatprep.mubr.bf16.mxu0 %v1519_v47  ;;  %v1475_v61 = vmax.f32 %v1297_v52, 0.0 }
 0x22f   :  { %v1299_v56 = vpop.f32.mrf.mxu0  ;;  %3982 = vmatmul.mubr.bf16.vlgmr.msra.gmra.mxu0 %v1520_v49 }
 0x230   :  { %v1300_v57 = vadd.f32 %v1299_v56, %v1075_v51  ;;  %v1103_v58 = vpop.f32.mrf.mxu1  ;;  %v1478_v59 = vmax.f32 %v1308_v53, 0.0 }
 0x231   :  { %v3927_v60 = vpop.f32.mrf.mxu0  ;;  %v1104_v24 = vadd.f32 %v1103_v58, %v5007_v17 }
 0x232   :  { %v1476_v62 = vmax.f32 %v1300_v57, 0.0  ;;  %v1105_v63 = vpop.f32.mrf.mxu1  ;;  %v1522_v8 = vpack.c.bf16 %v1478_v59, %v1477_v0  ;;  %v1321_v13 = vadd.f32 %v3927_v60, %v1096_v6 }
 0x233   :  { %v1312_v1 = vpop.f32.mrf.mxu0 }
 0x234   :  { %v1106_v4 = vpop.f32.mrf.mxu1  ;;  %v1521_v5 = vpack.c.bf16 %v1476_v62, %v1475_v61  ;;  %v1313_v11 = vadd.f32 %v1312_v1, %v1088_v2  ;;  %v1481_v25 = vmax.f32 %v1321_v13, 0.0 }
 0x235   :  { %v3928_v9 = vpop.f32.mrf.mxu0  ;;  %v1107_v35 = vadd.f32 %v1106_v4, %v5007_v17 }
 0x236   :  { %v1324_v33 = vadd.f32 %v3928_v9, %v1099_v3  ;;  %v1108_v12 = vpop.f32.mrf.mxu1  ;;  %3985 = vmatprep.mubr.bf16.mxu0 %v1521_v5  ;;  %v1479_v21 = vmax.f32 %v1313_v11, 0.0 }
 0x237   :  { %v1315_v15 = vpop.f32.mrf.mxu0  ;;  %3986 = vmatmul.mubr.bf16.gmra.mxu0 %v1522_v8 }
 0x238   :  { %v1316_v16 = vadd.f32 %v1315_v15, %v1091_v10  ;;  %v1111_v19 = vpop.f32.mrf.mxu1  ;;  %v1482_v18 = vmax.f32 %v1324_v33, 0.0 }
 0x239   :  { %v3931_v20 = vpop.f32.mrf.mxu0  ;;  %v1112_v26 = vadd.f32 %v1111_v19, %v5007_v17 }
 0x23a   :  { %v1480_v22 = vmax.f32 %v1316_v16, 0.0  ;;  %v1113_v23 = vpop.f32.mrf.mxu1  ;;  %v1524_v30 = vpack.c.bf16 %v1482_v18, %v1481_v25 }
 0x23b   :  { %v1328_v27 = vpop.f32.mrf.mxu0  ;;  %v1337_v38 = vadd.f32 %v3931_v20, %v1112_v26 }
 0x23c   :  { %v1114_v28 = vpop.f32.mrf.mxu1  ;;  %v1523_v29 = vpack.c.bf16 %v1480_v22, %v1479_v21  ;;  %v1329_v36 = vadd.f32 %v1328_v27, %v1104_v24 }
 0x23d   :  { %v1115_v31 = vadd.f32 %v1114_v28, %v5007_v17  ;;  %v3932_v34 = vpop.f32.mrf.mxu0  ;;  %v1485_v49 = vmax.f32 %v1337_v38, 0.0 }
 0x23e   :  { %v1116_v37 = vpop.f32.mrf.mxu1  ;;  %3989 = vmatprep.mubr.bf16.mxu0 %v1523_v29  ;;  %v1483_v45 = vmax.f32 %v1329_v36, 0.0 }
 0x23f   :  { %v1340_v39 = vadd.f32 %v3932_v34, %v1115_v31  ;;  %v1331_v40 = vpop.f32.mrf.mxu0  ;;  %3990 = vmatmul.mubr.bf16.gmra.mxu0 %v1524_v30 }
 0x240   :  { %v1332_v41 = vadd.f32 %v1331_v40, %v1107_v35  ;;  %v1119_v42 = vpop.f32.mrf.mxu1 }
 0x241   :  { %v1486_v43 = vmax.f32 %v1340_v39, 0.0  ;;  %v3935_v44 = vpop.f32.mrf.mxu0  ;;  %v1120_v47 = vadd.f32 %v1119_v42, %v5007_v17 }
 0x242   :  { %v1484_v46 = vmax.f32 %v1332_v41, 0.0  ;;  %v1121_v48 = vpop.f32.mrf.mxu1 }
 0x243   :  { %v1344_v50 = vpop.f32.mrf.mxu0  ;;  %v1526_v53 = vpack.c.bf16 %v1486_v43, %v1485_v49 }
 0x244   :  { %v1122_v51 = vpop.f32.mrf.mxu1  ;;  %v1525_v52 = vpack.c.bf16 %v1484_v46, %v1483_v45  ;;  %v1345_v56 = vadd.f32 %v1344_v50, %v1120_v47 }
 0x245   :  { %v1123_v54 = vadd.f32 %v1122_v51, %v5007_v17  ;;  %v3936_v55 = vpop.f32.mrf.mxu0 }
 0x246   :  { %v1124_v57 = vpop.f32.mrf.mxu1  ;;  %3993 = vmatprep.mubr.bf16.mxu0 %v1525_v52  ;;  %v1487_v63 = vmax.f32 %v1345_v56, 0.0 }
 0x247   :  { %v1347_v58 = vpop.f32.mrf.mxu0  ;;  %3994 = vmatmul.mubr.bf16.gmra.mxu0 %v1526_v53 }
 0x248   :  { %v1348_v59 = vadd.f32 %v1347_v58, %v1123_v54  ;;  %v1127_v60 = vpop.f32.mrf.mxu1 }
 0x249   :  { %v1128_v61 = vadd.f32 %v1127_v60, %v5007_v17  ;;  %v3939_v62 = vpop.f32.mrf.mxu0 }
 0x24a   :  { %v1488_v0 = vmax.f32 %v1348_v59, 0.0  ;;  %v1129_v1 = vpop.f32.mrf.mxu1 }
 0x24b   :  { %v1360_v4 = vpop.f32.mrf.mxu0  ;;  %v1353_v5 = vadd.f32 %v3935_v44, %v1128_v61 }
 0x24c   :  { %v1130_v2 = vpop.f32.mrf.mxu1  ;;  %v1527_v3 = vpack.c.bf16 %v1488_v0, %v1487_v63 }
 0x24d   :  { %v1131_v6 = vadd.f32 %v1130_v2, %v5007_v17  ;;  %v3940_v11 = vpop.f32.mrf.mxu0  ;;  %v1489_v33 = vmax.f32 %v1353_v5, 0.0 }
 0x24e   :  { %v1132_v8 = vpop.f32.mrf.mxu1  ;;  %3997 = vmatprep.mubr.bf16.mxu0 %v1527_v3 }
 0x24f   :  { %v1356_v9 = vadd.f32 %v3936_v55, %v1131_v6  ;;  %v1363_v18 = vpop.f32.mrf.mxu0 }
 0x250   :  { %v1135_v10 = vpop.f32.mrf.mxu1 }
 0x251   :  { %v1490_v12 = vmax.f32 %v1356_v9, 0.0  ;;  %v1136_v13 = vadd.f32 %v1135_v10, %v5007_v17  ;;  %v3943_v26 = vpop.f32.mrf.mxu0 }
 0x252   :  { %v1137_v15 = vpop.f32.mrf.mxu1 }
 0x253   :  { %v1528_v16 = vpack.c.bf16 %v1490_v12, %v1489_v33  ;;  %v1361_v20 = vadd.f32 %v1360_v4, %v1136_v13  ;;  %v1376_v34 = vpop.f32.mrf.mxu0 }
 0x254   :  { %v1138_v19 = vpop.f32.mrf.mxu1 }
 0x255   :  { %v1139_v21 = vadd.f32 %v1138_v19, %v5007_v17  ;;  %3998 = vmatmul.mubr.bf16.gmra.mxu0 %v1528_v16  ;;  %v1491_v27 = vmax.f32 %v1361_v20, 0.0  ;;  %v3944_v40 = vpop.f32.mrf.mxu0 }
 0x256   :  { %v1140_v22 = vpop.f32.mrf.mxu1 }
 0x257   :  { %v1364_v23 = vadd.f32 %v1363_v18, %v1139_v21  ;;  %v1379_v47 = vpop.f32.mrf.mxu0 }
 0x258   :  { %v1143_v25 = vpop.f32.mrf.mxu1 }
 0x259   :  { %v1492_v24 = vmax.f32 %v1364_v23, 0.0  ;;  %v1144_v28 = vadd.f32 %v1143_v25, %v5007_v17  ;;  %v3947_v53 = vpop.f32.mrf.mxu0 }
 0x25a   :  { %v1145_v29 = vpop.f32.mrf.mxu1 }
 0x25b   :  { %v1529_v30 = vpack.c.bf16 %v1492_v24, %v1491_v27  ;;  %v1369_v35 = vadd.f32 %v3939_v62, %v1144_v28  ;;  %v1392_v60 = vpop.f32.mrf.mxu0 }
 0x25c   :  { %v1146_v31 = vpop.f32.mrf.mxu1 }
 0x25d   :  { %v1147_v36 = vadd.f32 %v1146_v31, %v5007_v17  ;;  %4001 = vmatprep.mubr.bf16.mxu0 %v1529_v30  ;;  %v1493_v41 = vmax.f32 %v1369_v35, 0.0  ;;  %v3948_v2 = vpop.f32.mrf.mxu0 }
 0x25e   :  { %v1148_v37 = vpop.f32.mrf.mxu1 }
 0x25f   :  { %v1372_v38 = vadd.f32 %v3940_v11, %v1147_v36  ;;  %v1395_v10 = vpop.f32.mrf.mxu0 }
 0x260   :  { %v1151_v39 = vpop.f32.mrf.mxu1 }
 0x261   :  { %v1494_v42 = vmax.f32 %v1372_v38, 0.0  ;;  %v1152_v43 = vadd.f32 %v1151_v39, %v5007_v17  ;;  %v3951_v16 = vpop.f32.mrf.mxu0 }
 0x262   :  { %v1153_v44 = vpop.f32.mrf.mxu1 }
 0x263   :  { %v1530_v45 = vpack.c.bf16 %v1494_v42, %v1493_v41  ;;  %v1377_v48 = vadd.f32 %v1376_v34, %v1152_v43  ;;  %v1408_v25 = vpop.f32.mrf.mxu0 }
 0x264   :  { %v1154_v46 = vpop.f32.mrf.mxu1 }
 0x265   :  { %v1155_v49 = vadd.f32 %v1154_v46, %v5007_v17  ;;  %4002 = vmatmul.mubr.bf16.gmra.mxu0 %v1530_v45  ;;  %v1495_v54 = vmax.f32 %v1377_v48, 0.0  ;;  %v3952_v30 = vpop.f32.mrf.mxu0 }
 0x266   :  { %v1156_v50 = vpop.f32.mrf.mxu1 }
 0x267   :  { %v1380_v51 = vadd.f32 %v1379_v47, %v1155_v49  ;;  %v1411_v39 = vpop.f32.mrf.mxu0 }
 0x268   :  { %v1159_v52 = vpop.f32.mrf.mxu1 }
 0x269   :  { %v1496_v55 = vmax.f32 %v1380_v51, 0.0  ;;  %v1160_v56 = vadd.f32 %v1159_v52, %v5007_v17  ;;  %v3955_v45 = vpop.f32.mrf.mxu0 }
 0x26a   :  { %v1161_v57 = vpop.f32.mrf.mxu1 }
 0x26b   :  { %v1531_v58 = vpack.c.bf16 %v1496_v55, %v1495_v54  ;;  %v1385_v61 = vadd.f32 %v3943_v26, %v1160_v56  ;;  %v1424_v52 = vpop.f32.mrf.mxu0 }
 0x26c   :  { %v1162_v59 = vpop.f32.mrf.mxu1 }
 0x26d   :  { %v1163_v62 = vadd.f32 %v1162_v59, %v5007_v17  ;;  %4005 = vmatprep.mubr.bf16.mxu0 %v1531_v58  ;;  %v1497_v3 = vmax.f32 %v1385_v61, 0.0  ;;  %v3956_v58 = vpop.f32.mrf.mxu0 }
 0x26e   :  { %v1164_v63 = vpop.f32.mrf.mxu1 }
 0x26f   :  { %v1388_v0 = vadd.f32 %v3944_v40, %v1163_v62 }
 0x270   :  { %v1167_v1 = vpop.f32.mrf.mxu1 }
 0x271   :  { %v1498_v4 = vmax.f32 %v1388_v0, 0.0  ;;  %v1168_v5 = vadd.f32 %v1167_v1, %v5007_v17  ;;  %v1427_v1 = vpop.f32.mrf.mxu0 }
 0x272   :  { %v1169_v6 = vpop.f32.mrf.mxu1 }
 0x273   :  { %v1532_v8 = vpack.c.bf16 %v1498_v4, %v1497_v3  ;;  %v1393_v11 = vadd.f32 %v1392_v60, %v1168_v5 }
 0x274   :  { %v1170_v9 = vpop.f32.mrf.mxu1 }
 0x275   :  { %v1171_v33 = vadd.f32 %v1170_v9, %v5007_v17  ;;  %4006 = vmatmul.mubr.bf16.gmra.mxu0 %v1532_v8  ;;  %v1499_v19 = vmax.f32 %v1393_v11, 0.0  ;;  %v3959_v8 = vpop.f32.mrf.mxu0 }
 0x276   :  { %v1172_v12 = vpop.f32.mrf.mxu1 }
 0x277   :  { %v1396_v13 = vadd.f32 %v1395_v10, %v1171_v33 }
 0x278   :  { %v1175_v15 = vpop.f32.mrf.mxu1 }
 0x279   :  { %v1500_v18 = vmax.f32 %v1396_v13, 0.0  ;;  %v1176_v20 = vadd.f32 %v1175_v15, %v5007_v17  ;;  %v1440_v15 = vpop.f32.mrf.mxu0 }
 0x27a   :  { %v1177_v21 = vpop.f32.mrf.mxu1 }
 0x27b   :  { %v1533_v22 = vpack.c.bf16 %v1500_v18, %v1499_v19  ;;  %v1401_v26 = vadd.f32 %v3947_v53, %v1176_v20 }
 0x27c   :  { %v1178_v23 = vpop.f32.mrf.mxu1 }
 0x27d   :  { %v1179_v27 = vadd.f32 %v1178_v23, %v5007_v17  ;;  %4009 = vmatprep.mubr.bf16.mxu0 %v1533_v22  ;;  %v1501_v31 = vmax.f32 %v1401_v26, 0.0  ;;  %v3960_v22 = vpop.f32.mrf.mxu0 }
 0x27e   :  { %v1180_v24 = vpop.f32.mrf.mxu1 }
 0x27f   :  { %v1404_v28 = vadd.f32 %v3948_v2, %v1179_v27 }
 0x280   :  { %v1183_v29 = vpop.f32.mrf.mxu1 }
 0x281   :  { %v1502_v34 = vmax.f32 %v1404_v28, 0.0  ;;  %v1184_v35 = vadd.f32 %v1183_v29, %v5007_v17  ;;  %v1443_v29 = vpop.f32.mrf.mxu0 }
 0x282   :  { %v1185_v36 = vpop.f32.mrf.mxu1 }
 0x283   :  { %v1534_v37 = vpack.c.bf16 %v1502_v34, %v1501_v31  ;;  %v1409_v40 = vadd.f32 %v1408_v25, %v1184_v35 }
 0x284   :  { %v1186_v38 = vpop.f32.mrf.mxu1 }
 0x285   :  { %v1187_v41 = vadd.f32 %v1186_v38, %v5007_v17  ;;  %4010 = vmatmul.mubr.bf16.gmra.mxu0 %v1534_v37  ;;  %v1503_v46 = vmax.f32 %v1409_v40, 0.0  ;;  %v3963_v37 = vpop.f32.mrf.mxu0 }
 0x286   :  { %v1188_v42 = vpop.f32.mrf.mxu1 }
 0x287   :  { %v1412_v43 = vadd.f32 %v1411_v39, %v1187_v41 }
 0x288   :  { %v1191_v44 = vpop.f32.mrf.mxu1 }
 0x289   :  { %v1504_v47 = vmax.f32 %v1412_v43, 0.0  ;;  %v1192_v48 = vadd.f32 %v1191_v44, %v5007_v17  ;;  %v1456_v44 = vpop.f32.mrf.mxu0 }
 0x28a   :  { %v1193_v49 = vpop.f32.mrf.mxu1 }
 0x28b   :  { %v1535_v50 = vpack.c.bf16 %v1504_v47, %v1503_v46  ;;  %v1417_v53 = vadd.f32 %v3951_v16, %v1192_v48 }
 0x28c   :  { %v1194_v51 = vpop.f32.mrf.mxu1 }
 0x28d   :  { %v1195_v54 = vadd.f32 %v1194_v51, %v5007_v17  ;;  %4013 = vmatprep.mubr.bf16.mxu0 %v1535_v50  ;;  %v1505_v59 = vmax.f32 %v1417_v53, 0.0  ;;  %v3964_v50 = vpop.f32.mrf.mxu0 }
 0x28e   :  { %v1196_v55 = vpop.f32.mrf.mxu1 }
 0x28f   :  { %v1420_v56 = vadd.f32 %v3952_v30, %v1195_v54 }
 0x290   :  { %v1199_v57 = vpop.f32.mrf.mxu1 }
 0x291   :  { %v1506_v60 = vmax.f32 %v1420_v56, 0.0  ;;  %v1200_v61 = vadd.f32 %v1199_v57, %v5007_v17  ;;  %v1459_v57 = vpop.f32.mrf.mxu0 }
 0x292   :  { %v1201_v62 = vpop.f32.mrf.mxu1 }
 0x293   :  { %v1536_v63 = vpack.c.bf16 %v1506_v60, %v1505_v59  ;;  %v1425_v2 = vadd.f32 %v1424_v52, %v1200_v61 }
 0x294   :  { %v1202_v0 = vpop.f32.mrf.mxu1 }
 0x295   :  { %v1203_v3 = vadd.f32 %v1202_v0, %v5007_v17  ;;  %4014 = vmatmul.mubr.bf16.gmra.mxu0 %v1536_v63  ;;  %v1507_v9 = vmax.f32 %v1425_v2, 0.0 }
 0x296   :  { %v1204_v4 = vpop.f32.mrf.mxu1 }
 0x297   :  { %v1428_v5 = vadd.f32 %v1427_v1, %v1203_v3 }
 0x298   :  { %v1207_v6 = vpop.f32.mrf.mxu1 }
 0x299   :  { %v1508_v10 = vmax.f32 %v1428_v5, 0.0  ;;  %v1208_v11 = vadd.f32 %v1207_v6, %v5007_v17 }
 0x29a   :  { %v1209_v33 = vpop.f32.mrf.mxu1 }
 0x29b   :  { %v1537_v12 = vpack.c.bf16 %v1508_v10, %v1507_v9  ;;  %v1433_v16 = vadd.f32 %v3955_v45, %v1208_v11 }
 0x29c   :  { %v1210_v13 = vpop.f32.mrf.mxu1 }
 0x29d   :  { %v1211_v19 = vadd.f32 %v1210_v13, %v5007_v17  ;;  %4017 = vmatprep.mubr.bf16.mxu0 %v1537_v12  ;;  %v1509_v23 = vmax.f32 %v1433_v16, 0.0  ;;  %v4428_v12 = vld [vmem:[%s5901_s0 + $0x8] ss:$12 sps:$4 sm:$0xff]  }
 0x29e   :  { %v1212_v18 = vpop.f32.mrf.mxu1 }
 0x29f   :  { %v1436_v20 = vadd.f32 %v3956_v58, %v1211_v19 }
 0x2a0   :  { %v1215_v21 = vpop.f32.mrf.mxu1 }
 0x2a1   :  { %v1510_v25 = vmax.f32 %v1436_v20, 0.0  ;;  %v1216_v26 = vadd.f32 %v1215_v21, %v5007_v17 }
 0x2a2   :  { %v1217_v27 = vpop.f32.mrf.mxu1 }
 0x2a3   :  { %v1538_v24 = vpack.c.bf16 %v1510_v25, %v1509_v23  ;;  %v1441_v30 = vadd.f32 %v1440_v15, %v1216_v26 }
 0x2a4   :  { %v1218_v28 = vpop.f32.mrf.mxu1 }
 0x2a5   :  { %v1219_v31 = vadd.f32 %v1218_v28, %v5007_v17  ;;  %4018 = vmatmul.mubr.bf16.gmra.mxu0 %v1538_v24  ;;  %v1511_v38 = vmax.f32 %v1441_v30, 0.0 }
 0x2a6   :  { %v1220_v34 = vpop.f32.mrf.mxu1 }
 0x2a7   :  { %v1444_v35 = vadd.f32 %v1443_v29, %v1219_v31 }
 0x2a8   :  { %v1223_v36 = vpop.f32.mrf.mxu1 }
 0x2a9   :  { %v1512_v39 = vmax.f32 %v1444_v35, 0.0  ;;  %v1224_v40 = vadd.f32 %v1223_v36, %v5007_v17 }
 0x2aa   :  { %v1225_v41 = vpop.f32.mrf.mxu1 }
 0x2ab   :  { %v1539_v42 = vpack.c.bf16 %v1512_v39, %v1511_v38  ;;  %v1449_v45 = vadd.f32 %v3959_v8, %v1224_v40 }
 0x2ac   :  { %v1226_v43 = vpop.f32.mrf.mxu1 }
 0x2ad   :  { %v1227_v46 = vadd.f32 %v1226_v43, %v5007_v17  ;;  %4021 = vmatprep.mubr.bf16.mxu0 %v1539_v42  ;;  %v1513_v51 = vmax.f32 %v1449_v45, 0.0 }
 0x2ae   :  { %v1228_v47 = vpop.f32.mrf.mxu1 }
 0x2af   :  { %v1452_v48 = vadd.f32 %v3960_v22, %v1227_v46 }
 0x2b0   :  { %v1231_v49 = vpop.f32.mrf.mxu1 }
 0x2b1   :  { %v1514_v52 = vmax.f32 %v1452_v48, 0.0  ;;  %v1232_v53 = vadd.f32 %v1231_v49, %v5007_v17 }
 0x2b2   :  { %v1233_v54 = vpop.f32.mrf.mxu1 }
 0x2b3   :  { %v1540_v55 = vpack.c.bf16 %v1514_v52, %v1513_v51  ;;  %v1457_v58 = vadd.f32 %v1456_v44, %v1232_v53 }
 0x2b4   :  { %v1234_v56 = vpop.f32.mrf.mxu1 }
 0x2b5   :  { %v1235_v59 = vadd.f32 %v1234_v56, %v5007_v17  ;;  %4022 = vmatmul.mubr.bf16.gmra.mxu0 %v1540_v55  ;;  %v1515_v63 = vmax.f32 %v1457_v58, 0.0 }
 0x2b6   :  { %v1236_v60 = vpop.f32.mrf.mxu1 }
 0x2b7   :  { %v1460_v61 = vadd.f32 %v1459_v57, %v1235_v59 }
 0x2b8   :  { %v1239_v62 = vpop.f32.mrf.mxu1 }
 0x2b9   :  { %v1516_v0 = vmax.f32 %v1460_v61, 0.0  ;;  %v1240_v1 = vadd.f32 %v1239_v62, %v5007_v17 }
 0x2ba   :  { %v1241_v2 = vpop.f32.mrf.mxu1 }
 0x2bb   :  { %v1541_v3 = vpack.c.bf16 %v1516_v0, %v1515_v63  ;;  %v1465_v5 = vadd.f32 %v3963_v37, %v1240_v1 }
 0x2bc   :  { %v1242_v4 = vpop.f32.mrf.mxu1 }
 0x2bd   :  { %v1243_v6 = vadd.f32 %v1242_v4, %v5007_v17  ;;  %4025 = vmatprep.mubr.bf16.mxu0 %v1541_v3  ;;  %v1517_v10 = vmax.f32 %v1465_v5, 0.0  ;;  %v4429_v5 = vld [vmem:[%s5901_s0] ss:$12 sps:$4 sm:$0xff]  }
 0x2be   :  { %v1244_v8 = vpop.f32.mrf.mxu1 }
 0x2bf   :  { %v1468_v9 = vadd.f32 %v3964_v50, %v1243_v6  ;;  %v4430_v6 = vld [vmem:[%s5901_s0 + $0x1c] ss:$12 sps:$4 sm:$0xff]  }
 0x2c1   :  { %v1518_v11 = vmax.f32 %v1468_v9, 0.0 }
 0x2c3   :  { %v1542_v33 = vpack.c.bf16 %v1518_v11, %v1517_v10  ;;  %v4431_v10 = vld [vmem:[%s5901_s0 + $0x18] ss:$12 sps:$4 sm:$0xff]   ;;  %v4432_v11 = vld [vmem:[%s5901_s0 + $0x34] ss:$12 sps:$4 sm:$0xff]  }
 0x2c5   :  { %4026 = vmatmul.mubr.bf16.gmra.mxu0 %v1542_v33 }
 0x2c6   :  { %4045 = vmatprep.mubr.bf16.mxu0 %v4428_v12 }
 0x2ef   :  { %v3983_v13 = vpop.f32.mrf.mxu0 }
 0x2f1   :  { %v1643_v15 = vpop.f32.mrf.mxu0 }
 0x2f3   :  { %v3984_v16 = vpop.f32.mrf.mxu0 }
 0x2f4   :  { %v1835_v41 = vpack.c.bf16 %v3984_v16, %v3983_v13  ;;  %v4434_v16 = vld [vmem:[%s5901_s0 + $0x4c] ss:$12 sps:$4 sm:$0xff]  }
 0x2f5   :  { %v1646_v19 = vpop.f32.mrf.mxu0 }
 0x2f6   :  { %v1834_v43 = vpack.c.bf16 %v1646_v19, %v1643_v15  ;;  %v4433_v15 = vld [vmem:[%s5901_s0 + $0x30] ss:$12 sps:$4 sm:$0xff]  }
 0x2f7   :  { %v3987_v18 = vpop.f32.mrf.mxu0 }
 0x2f9   :  { %v1659_v20 = vpop.f32.mrf.mxu0 }
 0x2fb   :  { %v3988_v21 = vpop.f32.mrf.mxu0 }
 0x2fc   :  { %v1837_v37 = vpack.c.bf16 %v3988_v21, %v3987_v18  ;;  %v4436_v21 = vld [vmem:[%s5901_s0 + $0x64] ss:$12 sps:$4 sm:$0xff]  }
 0x2fd   :  { %v1662_v17 = vpop.f32.mrf.mxu0 }
 0x2fe   :  { %v1836_v39 = vpack.c.bf16 %v1662_v17, %v1659_v20  ;;  %v4435_v20 = vld [vmem:[%s5901_s0 + $0x48] ss:$12 sps:$4 sm:$0xff]  }
 0x2ff   :  { %v3991_v22 = vpop.f32.mrf.mxu0 }
 0x301   :  { %v1675_v23 = vpop.f32.mrf.mxu0 }
 0x303   :  { %v3992_v25 = vpop.f32.mrf.mxu0 }
 0x304   :  { %v1839_v34 = vpack.c.bf16 %v3992_v25, %v3991_v22 }
 0x305   :  { %v1678_v26 = vpop.f32.mrf.mxu0 }
 0x306   :  { %v1838_v35 = vpack.c.bf16 %v1678_v26, %v1675_v23 }
 0x307   :  { %v3995_v27 = vpop.f32.mrf.mxu0 }
 0x309   :  { %v1691_v24 = vpop.f32.mrf.mxu0 }
 0x30b   :  { %v3996_v28 = vpop.f32.mrf.mxu0 }
 0x30c   :  { %v1841_v29 = vpack.c.bf16 %v3996_v28, %v3995_v27  ;;  %v4437_v27 = vld [vmem:[%s5901_s0 + $0x60] ss:$12 sps:$4 sm:$0xff]   ;;  %v4438_v28 = vld [vmem:[%s5901_s0 + $0x7c] ss:$12 sps:$4 sm:$0xff]  }
 0x30d   :  { %v1694_v30 = vpop.f32.mrf.mxu0 }
 0x30e   :  { %1863 = vmatpush1.bf16.msra.mxu1 %v1841_v29  ;;  %v1840_v31 = vpack.c.bf16 %v1694_v30, %v1691_v24  ;;  %v4439_v30 = vld [vmem:[%s5901_s0 + $0x78] ss:$12 sps:$4 sm:$0xff]  }
 0x30f   :  { %1864 = vmatprep.subr.bf16.mxu1 %v4571_v32 }
 0x312   :  { %1865 = vmatpush1.bf16.msra.mxu1 %v1840_v31 }
 0x313   :  { %1866 = vmatprep.subr.bf16.mxu1 %v4571_v32 }
 0x315   :  { %v3999_v36 = vpop.f32.mrf.mxu0 }
 0x316   :  { %1867 = vmatpush1.bf16.msra.mxu1 %v1839_v34  ;;  %v4440_v34 = vld [vmem:[%s5901_s0 + $0x94] ss:$12 sps:$4 sm:$0xff]  }
 0x317   :  { %1868 = vmatprep.subr.bf16.mxu1 %v4571_v32  ;;  %v1707_v38 = vpop.f32.mrf.mxu0 }
 0x319   :  { %v4000_v40 = vpop.f32.mrf.mxu0 }
 0x31a   :  { %1869 = vmatpush1.bf16.msra.mxu1 %v1838_v35  ;;  %v1843_v0 = vpack.c.bf16 %v4000_v40, %v3999_v36  ;;  %v4441_v36 = vld [vmem:[%s5901_s0 + $0x90] ss:$12 sps:$4 sm:$0xff]   ;;  %v4443_v40 = vld [vmem:[%s5901_s0 + $0xa8] ss:$12 sps:$4 sm:$0xff]  }
 0x31b   :  { %1870 = vmatprep.subr.bf16.mxu1 %v4571_v32  ;;  %v1710_v42 = vpop.f32.mrf.mxu0 }
 0x31c   :  { %v1842_v2 = vpack.c.bf16 %v1710_v42, %v1707_v38  ;;  %v4442_v38 = vld [vmem:[%s5901_s0 + $0xac] ss:$12 sps:$4 sm:$0xff]   ;;  %v4444_v42 = vld [vmem:[%s5901_s0 + $0xc4] ss:$12 sps:$4 sm:$0xff]  }
 0x31e   :  { %1871 = vmatpush1.bf16.msra.mxu1 %v1837_v37 }
 0x31f   :  { %1872 = vmatprep.subr.bf16.mxu1 %v4571_v32 }
 0x322   :  { %1873 = vmatpush1.bf16.msra.mxu1 %v1836_v39 }
 0x323   :  { %1874 = vmatprep.subr.bf16.mxu1 %v4571_v32 }
 0x325   :  { %v4003_v44 = vpop.f32.mrf.mxu0 }
 0x326   :  { %1875 = vmatpush1.bf16.msra.mxu1 %v1835_v41 }
 0x327   :  { %1876 = vmatprep.subr.bf16.mxu1 %v4571_v32  ;;  %v1723_v45 = vpop.f32.mrf.mxu0 }
 0x329   :  { %v4004_v46 = vpop.f32.mrf.mxu0 }
 0x32a   :  { %1877 = vmatpush1.bf16.msra.mxu1 %v1834_v43  ;;  %v1845_v60 = vpack.c.bf16 %v4004_v46, %v4003_v44  ;;  %v4445_v43 = vld [vmem:[%s5901_s0 + $0xc0] ss:$12 sps:$4 sm:$0xff]   ;;  %v4448_v46 = vld [vmem:[%s5901_s0 + $0x38] ss:$12 sps:$4 sm:$0xff]  }
 0x32b   :  { %1878 = vmatprep.subr.bf16.mxu1 %v4571_v32  ;;  %v1726_v47 = vpop.f32.mrf.mxu0  ;;  %v4446_v44 = vld [vmem:[%s5901_s0 + $0x20] ss:$12 sps:$4 sm:$0xff]  }
 0x32c   :  { %v1844_v62 = vpack.c.bf16 %v1726_v47, %v1723_v45  ;;  %v4447_v45 = vld [vmem:[%s5901_s0 + $0xdc] ss:$12 sps:$4 sm:$0xff]   ;;  %v4449_v47 = vld [vmem:[%s5901_s0 + $0xd8] ss:$12 sps:$4 sm:$0xff]  }
 0x335   :  { %v4007_v48 = vpop.f32.mrf.mxu0 }
 0x337   :  { %v1739_v49 = vpop.f32.mrf.mxu0 }
 0x339   :  { %v4008_v50 = vpop.f32.mrf.mxu0 }
 0x33a   :  { %v1847_v58 = vpack.c.bf16 %v4008_v50, %v4007_v48  ;;  %v4450_v48 = vld [vmem:[%s5901_s0 + $0x50] ss:$12 sps:$4 sm:$0xff]   ;;  %v4452_v50 = vld [vmem:[%s5901_s0 + $0x68] ss:$12 sps:$4 sm:$0xff]  }
 0x33b   :  { %v1742_v51 = vpop.f32.mrf.mxu0 }
 0x33c   :  { %v1846_v59 = vpack.c.bf16 %v1742_v51, %v1739_v49  ;;  %v4451_v49 = vld [vmem:[%s5901_s0 + $0xf4] ss:$12 sps:$4 sm:$0xff]   ;;  %v4453_v51 = vld [vmem:[%s5901_s0 + $0xf0] ss:$12 sps:$4 sm:$0xff]  }
 0x345   :  { %v4011_v52 = vpop.f32.mrf.mxu0 }
 0x347   :  { %v1755_v53 = vpop.f32.mrf.mxu0 }
 0x349   :  { %v4012_v54 = vpop.f32.mrf.mxu0 }
 0x34a   :  { %v1849_v55 = vpack.c.bf16 %v4012_v54, %v4011_v52  ;;  %v4454_v52 = vld [vmem:[%s5901_s0 + $0x80] ss:$12 sps:$4 sm:$0xff]   ;;  %v4456_v54 = vld [vmem:[%s5901_s0 + $0x98] ss:$12 sps:$4 sm:$0xff]  }
 0x34b   :  { %v1758_v56 = vpop.f32.mrf.mxu0 }
 0x34c   :  { %1879 = vmatpush2.bf16.msra.mxu1 %v1849_v55  ;;  %v1848_v57 = vpack.c.bf16 %v1758_v56, %v1755_v53  ;;  %v4455_v53 = vld [vmem:[%s5901_s0 + $0x10c] ss:$12 sps:$4 sm:$0xff]   ;;  %v4457_v55 = vld [vmem:[%s5901_s0 + $0x108] ss:$12 sps:$4 sm:$0xff]   ;;  %v4458_v56 = vld [vmem:[%s5901_s0 + $0xb0] ss:$12 sps:$4 sm:$0xff]  }
 0x34d   :  { %1880 = vmatprep.subr.bf16.mxu1 %v4571_v32 }
 0x350   :  { %1881 = vmatpush2.bf16.msra.mxu1 %v1848_v57  ;;  %v4459_v57 = vld [vmem:[%s5901_s0 + $0x124] ss:$12 sps:$4 sm:$0xff]  }
 0x351   :  { %1882 = vmatprep.subr.bf16.mxu1 %v4571_v32 }
 0x354   :  { %1883 = vmatpush2.bf16.msra.mxu1 %v1847_v58  ;;  %v4460_v58 = vld [vmem:[%s5901_s0 + $0xc8] ss:$12 sps:$4 sm:$0xff]  }
 0x355   :  { %1884 = vmatprep.subr.bf16.mxu1 %v4571_v32  ;;  %v5072_v61 = vpop.f32.mrf.mxu0 }
 0x357   :  { %v5075_v63 = vpop.f32.mrf.mxu0 }
 0x358   :  { %1885 = vmatpush2.bf16.msra.mxu1 %v1846_v59  ;;  %v4461_v59 = vld [vmem:[%s5901_s0 + $0x120] ss:$12 sps:$4 sm:$0xff]  }
 0x359   :  { %1886 = vmatprep.subr.bf16.mxu1 %v4571_v32  ;;  %v5078_v1 = vpop.f32.mrf.mxu0 }
 0x35a   :  { %v1851_v39 = vpack.c.bf16 %v5078_v1, %v5072_v61  ;;  %v4463_v61 = vld [vmem:[%s5901_s0 + $0x13c] ss:$12 sps:$4 sm:$0xff]   ;;  %v4467_v1 = vld [vmem:[%s5901_s0 + $0x154] ss:$12 sps:$4 sm:$0xff]  }
 0x35b   :  { %v5081_v3 = vpop.f32.mrf.mxu0 }
 0x35c   :  { %1887 = vmatpush2.bf16.msra.mxu1 %v1845_v60  ;;  %v1850_v41 = vpack.c.bf16 %v5081_v3, %v5075_v63  ;;  %v4462_v60 = vld [vmem:[%s5901_s0 + $0xe0] ss:$12 sps:$4 sm:$0xff]   ;;  %v4465_v63 = vld [vmem:[%s5901_s0 + $0x138] ss:$12 sps:$4 sm:$0xff]  }
 0x35d   :  { %1888 = vmatprep.subr.bf16.mxu1 %v4571_v32  ;;  %v4400_v3 = vld [vmem:[%s5903_s5 + $0x38] sm:$0xff]  }
 0x360   :  { %1889 = vmatpush2.bf16.msra.mxu1 %v1844_v62  ;;  %v4464_v62 = vld [vmem:[%s5901_s0 + $0xf8] ss:$12 sps:$4 sm:$0xff]  }
 0x361   :  { %1890 = vmatprep.subr.bf16.mxu1 %v4571_v32 }
 0x364   :  { %1891 = vmatpush2.bf16.msra.mxu1 %v1843_v0  ;;  %v4466_v0 = vld [vmem:[%s5901_s0 + $0x110] ss:$12 sps:$4 sm:$0xff]  }
 0x365   :  { %1892 = vmatprep.subr.bf16.mxu1 %v4571_v32  ;;  %v4019_v4 = vpop.f32.mrf.mxu0 }
 0x367   :  { %v1787_v8 = vpop.f32.mrf.mxu0 }
 0x368   :  { %1893 = vmatpush2.bf16.msra.mxu1 %v1842_v2  ;;  %v4468_v2 = vld [vmem:[%s5901_s0 + $0x128] ss:$12 sps:$4 sm:$0xff]  }
 0x369   :  { %2703 = vmatprep.subr.bf16.mxu1 %v4571_v32  ;;  %v4020_v9 = vpop.f32.mrf.mxu0 }
 0x36a   :  { %v1853_v35 = vpack.c.bf16 %v4020_v9, %v4019_v4  ;;  %v4469_v4 = vld [vmem:[%s5901_s0 + $0x150] ss:$12 sps:$4 sm:$0xff]   ;;  %v4472_v9 = vld [vmem:[%s5901_s0 + $0x158] ss:$12 sps:$4 sm:$0xff]  }
 0x36b   :  { %1895 = vmatmul.mubr.bf16.vlgmr.msra.gmra.mxu1 %v4429_v5  ;;  %v1790_v33 = vpop.f32.mrf.mxu0  ;;  %v4470_v5 = vld [vmem:[%s5901_s0 + $0x140] ss:$12 sps:$4 sm:$0xff]  }
 0x36c   :  { %1902 = vmatprep.mubr.bf16.mxu1 %v4430_v6  ;;  %v1852_v37 = vpack.c.bf16 %v1790_v33, %v1787_v8  ;;  %v4471_v6 = vld [vmem:[%s5901_s0 + $0x16c] ss:$12 sps:$4 sm:$0xff]   ;;  %v4401_v8 = vld [vmem:[%s5903_s5 + $0x30] sm:$0xff]  }
 0x36d   :  { %v4474_v33 = vld [vmem:[%s5901_s0 + $0x170] ss:$12 sps:$4 sm:$0xff]  }
 0x373   :  { %1903 = vmatmul.mubr.bf16.gmra.mxu1 %v4431_v10  ;;  %v4402_v10 = vld [vmem:[%s5903_s5 + $0x28] sm:$0xff]  }
 0x374   :  { %1910 = vmatprep.mubr.bf16.mxu1 %v4432_v11  ;;  %v4473_v11 = vld [vmem:[%s5901_s0 + $0x168] ss:$12 sps:$4 sm:$0xff]  }
 0x375   :  { %v4023_v12 = vpop.f32.mrf.mxu0 }
 0x377   :  { %v1803_v13 = vpop.f32.mrf.mxu0 }
 0x379   :  { %v4024_v19 = vpop.f32.mrf.mxu0 }
 0x37a   :  { %v1855_v29 = vpack.c.bf16 %v4024_v19, %v4023_v12  ;;  %v4475_v12 = vld [vmem:[%s5901_s0 + $0x184] ss:$12 sps:$4 sm:$0xff]   ;;  %v4477_v19 = vld [vmem:[%s5901_s0 + $0x180] ss:$12 sps:$4 sm:$0xff]  }
 0x37b   :  { %1911 = vmatmul.mubr.bf16.gmra.mxu1 %v4433_v15  ;;  %v1806_v18 = vpop.f32.mrf.mxu0  ;;  %v4476_v15 = vld [vmem:[%s5901_s0 + $0x188] ss:$12 sps:$4 sm:$0xff]  }
 0x37c   :  { %1918 = vmatprep.mubr.bf16.mxu1 %v4434_v16  ;;  %v1854_v31 = vpack.c.bf16 %v1806_v18, %v1803_v13  ;;  %v4403_v13 = vld [vmem:[%s5903_s5 + $0x20] sm:$0xff]   ;;  %v4404_v16 = vld [vmem:[%s5903_s5 + $0x18] sm:$0xff]  }
 0x37d   :  { %v4478_v18 = vld [vmem:[%s5901_s0 + $0x19c] ss:$12 sps:$4 sm:$0xff]  }
 0x383   :  { %1919 = vmatmul.mubr.bf16.gmra.mxu1 %v4435_v20  ;;  %v4479_v20 = vld [vmem:[%s5901_s0 + $0x1a0] ss:$12 sps:$4 sm:$0xff]  }
 0x384   :  { %1926 = vmatprep.mubr.bf16.mxu1 %v4436_v21  ;;  %v4405_v21 = vld [vmem:[%s5903_s5 + $0x10] sm:$0xff]  }
 0x385   :  { %v4027_v17 = vpop.f32.mrf.mxu0 }
 0x387   :  { %v1819_v22 = vpop.f32.mrf.mxu0 }
 0x389   :  { %v4028_v23 = vpop.f32.mrf.mxu0 }
 0x38a   :  { %v1857_v25 = vpack.c.bf16 %v4028_v23, %v4027_v17  ;;  %v4480_v17 = vld [vmem:[%s5901_s0 + $0x1b8] ss:$12 sps:$4 sm:$0xff]  }
 0x38b   :  { %v1822_v26 = vpop.f32.mrf.mxu0  ;;  %1927 = vmatmul.mubr.bf16.gmra.mxu1 %v4437_v27  ;;  %v4481_v23 = vld [vmem:[%s5901_s0 + $0x198] ss:$12 sps:$4 sm:$0xff]  }
 0x38c   :  { %v1856_v24 = vpack.c.bf16 %v1822_v26, %v1819_v22  ;;  %4029 = vmatprep.subr.bf16.mxu0 %v1857_v25  ;;  %1934 = vmatprep.mubr.bf16.mxu1 %v4438_v28  ;;  %v4406_v22 = vld [vmem:[%s5903_s5 + $0x8] sm:$0xff]   ;;  %v4483_v26 = vld [vmem:[%s5901_s0 + $0x1d0] ss:$12 sps:$4 sm:$0xff]   ;;  %v4407_v27 = vld [vmem:[%s5903_s5] sm:$0xff]  }
 0x38d   :  { %4030 = vmatpush3.bf16.msra.mxu0 %v1857_v25  ;;  %v4482_v25 = vld [vmem:[%s5901_s0 + $0x1b4] ss:$12 sps:$4 sm:$0xff]   ;;  %v4485_v28 = vld [vmem:[%s5901_s0 + $0x1b0] ss:$12 sps:$4 sm:$0xff]  }
 0x38e   :  { %4031 = vmatprep.subr.bf16.mxu0 %v1856_v24 }
 0x391   :  { %4032 = vmatpush3.bf16.msra.mxu0 %v1856_v24  ;;  %v4484_v24 = vld [vmem:[%s5901_s0 + $0x1e8] ss:$12 sps:$4 sm:$0xff]  }
 0x392   :  { %4033 = vmatprep.subr.bf16.mxu0 %v1855_v29 }
 0x393   :  { %1935 = vmatmul.mubr.bf16.gmra.mxu1 %v4439_v30  ;;  %v4487_v30 = vld [vmem:[%s5901_s0 + $0x200] ss:$12 sps:$4 sm:$0xff]  }
 0x394   :  { %1942 = vmatprep.mubr.bf16.mxu1 %v4440_v34  ;;  %v4489_v34 = vld [vmem:[%s5901_s0 + $0x1c8] ss:$12 sps:$4 sm:$0xff]  }
 0x395   :  { %4034 = vmatpush3.bf16.msra.mxu0 %v1855_v29  ;;  %v4486_v29 = vld [vmem:[%s5901_s0 + $0x1cc] ss:$12 sps:$4 sm:$0xff]  }
 0x396   :  { %4035 = vmatprep.subr.bf16.mxu0 %v1854_v31 }
 0x399   :  { %4036 = vmatpush3.bf16.msra.mxu0 %v1854_v31  ;;  %v4488_v31 = vld [vmem:[%s5901_s0 + $0x218] ss:$12 sps:$4 sm:$0xff]  }
 0x39a   :  { %4037 = vmatprep.subr.bf16.mxu0 %v1853_v35 }
 0x39b   :  { %1943 = vmatmul.mubr.bf16.gmra.mxu1 %v4441_v36  ;;  %v4491_v36 = vld [vmem:[%s5901_s0 + $0x230] ss:$12 sps:$4 sm:$0xff]  }
 0x39c   :  { %1950 = vmatprep.mubr.bf16.mxu1 %v4442_v38  ;;  %v4493_v38 = vld [vmem:[%s5901_s0 + $0x1fc] ss:$12 sps:$4 sm:$0xff]  }
 0x39d   :  { %4038 = vmatpush3.bf16.msra.mxu0 %v1853_v35  ;;  %v4490_v35 = vld [vmem:[%s5901_s0 + $0x1e4] ss:$12 sps:$4 sm:$0xff]  }
 0x39e   :  { %4039 = vmatprep.subr.bf16.mxu0 %v1852_v37 }
 0x3a1   :  { %4040 = vmatpush3.bf16.msra.mxu0 %v1852_v37  ;;  %v4492_v37 = vld [vmem:[%s5901_s0 + $0x1e0] ss:$12 sps:$4 sm:$0xff]  }
 0x3a2   :  { %4041 = vmatprep.subr.bf16.mxu0 %v1851_v39 }
 0x3a3   :  { %1951 = vmatmul.mubr.bf16.gmra.mxu1 %v4443_v40  ;;  %v4495_v40 = vld [vmem:[%s5901_s0 + $0x214] ss:$12 sps:$4 sm:$0xff]  }
 0x3a4   :  { %1958 = vmatprep.mubr.bf16.mxu1 %v4444_v42  ;;  %v4497_v42 = vld [vmem:[%s5901_s0 + $0x22c] ss:$12 sps:$4 sm:$0xff]  }
 0x3a5   :  { %4042 = vmatpush3.bf16.msra.mxu0 %v1851_v39  ;;  %v4494_v39 = vld [vmem:[%s5901_s0 + $0x1f8] ss:$12 sps:$4 sm:$0xff]  }
 0x3a6   :  { %4043 = vmatprep.subr.bf16.mxu0 %v1850_v41 }
 0x3a9   :  { %4044 = vmatpush3.bf16.msra.mxu0 %v1850_v41  ;;  %v4496_v41 = vld [vmem:[%s5901_s0 + $0x210] ss:$12 sps:$4 sm:$0xff]  }
 0x3aa   :  { %4093 = vmatprep.subr.bf16.mxu0 %v4400_v3 }
 0x3ab   :  { %1959 = vmatmul.mubr.bf16.gmra.mxu1 %v4445_v43  ;;  %v4498_v43 = vld [vmem:[%s5901_s0 + $0x228] ss:$12 sps:$4 sm:$0xff]  }
 0x3ac   :  { %4046 = vmatmul.mubr.bf16.vlgmr.msra.gmra.mxu0 %v4446_v44  ;;  %1966 = vmatprep.mubr.bf16.mxu1 %v4447_v45  ;;  %v4499_v44 = vld [vmem:[%s5901_s0 + $0x4] ss:$12 sps:$4 sm:$0xff]  }
 0x3ad   :  { %4049 = vmatprep.mubr.bf16.mxu0 %v4448_v46  ;;  %4094 = vmatpush3.bf16.msra.mxu0 %v4400_v3 }
 0x3ae   :  { %4095 = vmatprep.subr.bf16.mxu0 %v4401_v8 }
 0x3b1   :  { %4096 = vmatpush3.bf16.msra.mxu0 %v4401_v8 }
 0x3b2   :  { %4097 = vmatprep.subr.bf16.mxu0 %v4402_v10 }
 0x3b3   :  { %1967 = vmatmul.mubr.bf16.gmra.mxu1 %v4449_v47 }
 0x3b4   :  { %4050 = vmatmul.mubr.bf16.gmra.mxu0 %v4450_v48  ;;  %1974 = vmatprep.mubr.bf16.mxu1 %v4451_v49 }
 0x3b5   :  { %4053 = vmatprep.mubr.bf16.mxu0 %v4452_v50  ;;  %4098 = vmatpush3.bf16.msra.mxu0 %v4402_v10 }
 0x3b6   :  { %4099 = vmatprep.subr.bf16.mxu0 %v4403_v13 }
 0x3b9   :  { %4100 = vmatpush3.bf16.msra.mxu0 %v4403_v13 }
 0x3ba   :  { %4101 = vmatprep.subr.bf16.mxu0 %v4404_v16 }
 0x3bb   :  { %1975 = vmatmul.mubr.bf16.gmra.mxu1 %v4453_v51 }
 0x3bc   :  { %4054 = vmatmul.mubr.bf16.gmra.mxu0 %v4454_v52  ;;  %1982 = vmatprep.mubr.bf16.mxu1 %v4455_v53 }
 0x3bd   :  { %4057 = vmatprep.mubr.bf16.mxu0 %v4456_v54  ;;  %4102 = vmatpush3.bf16.msra.mxu0 %v4404_v16 }
 0x3be   :  { %4103 = vmatprep.subr.bf16.mxu0 %v4405_v21 }
 0x3c1   :  { %4104 = vmatpush3.bf16.msra.mxu0 %v4405_v21 }
 0x3c2   :  { %4105 = vmatprep.subr.bf16.mxu0 %v4406_v22 }
 0x3c3   :  { %1983 = vmatmul.mubr.bf16.gmra.mxu1 %v4457_v55 }
 0x3c4   :  { %4058 = vmatmul.mubr.bf16.gmra.mxu0 %v4458_v56  ;;  %1990 = vmatprep.mubr.bf16.mxu1 %v4459_v57 }
 0x3c5   :  { %4061 = vmatprep.mubr.bf16.mxu0 %v4460_v58  ;;  %4106 = vmatpush3.bf16.msra.mxu0 %v4406_v22 }
 0x3c6   :  { %4107 = vmatprep.subr.bf16.mxu0 %v4407_v27 }
 0x3c9   :  { %4108 = vmatpush3.bf16.msra.mxu0 %v4407_v27 }
 0x3cb   :  { %1991 = vmatmul.mubr.bf16.gmra.mxu1 %v4461_v59 }
 0x3cc   :  { %4062 = vmatmul.mubr.bf16.gmra.mxu0 %v4462_v60  ;;  %1998 = vmatprep.mubr.bf16.mxu1 %v4463_v61 }
 0x3cd   :  { %4065 = vmatprep.mubr.bf16.mxu0 %v4464_v62 }
 0x3d3   :  { %1999 = vmatmul.mubr.bf16.gmra.mxu1 %v4465_v63 }
 0x3d4   :  { %4066 = vmatmul.mubr.bf16.gmra.mxu0 %v4466_v0  ;;  %2006 = vmatprep.mubr.bf16.mxu1 %v4467_v1 }
 0x3d5   :  { %4069 = vmatprep.mubr.bf16.mxu0 %v4468_v2 }
 0x3db   :  { %2007 = vmatmul.mubr.bf16.gmra.mxu1 %v4469_v4 }
 0x3dc   :  { %4070 = vmatmul.mubr.bf16.gmra.mxu0 %v4470_v5  ;;  %2014 = vmatprep.mubr.bf16.mxu1 %v4471_v6 }
 0x3dd   :  { %4073 = vmatprep.mubr.bf16.mxu0 %v4472_v9 }
 0x3e3   :  { %2015 = vmatmul.mubr.bf16.gmra.mxu1 %v4473_v11  ;;  %v1559_v11 = vld [vmem:[%s5902_s4 + $0x40] sm:$0x1] }
 0x3e4   :  { %4074 = vmatmul.mubr.bf16.gmra.mxu0 %v4474_v33  ;;  %2022 = vmatprep.mubr.bf16.mxu1 %v4475_v12  ;;  %v1560_v12 = vunpack.c.l.bf16 %v1559_v11 }
 0x3e5   :  { %4077 = vmatprep.mubr.bf16.mxu0 %v4476_v15 }
 0x3e6   :  { %v5343_v16 = vrot.slane %v1560_v12, %v5004_v14 }
 0x3eb   :  { %2023 = vmatmul.mubr.bf16.gmra.mxu1 %v4477_v19 }
 0x3ec   :  { %2030 = vmatprep.mubr.bf16.mxu1 %v4478_v18  ;;  %4078 = vmatmul.mubr.bf16.gmra.mxu0 %v4479_v20 }
 0x3ed   :  { %4081 = vmatprep.mubr.bf16.mxu0 %v4480_v17 }
 0x3f3   :  { %2031 = vmatmul.mubr.bf16.gmra.mxu1 %v4481_v23 }
 0x3f4   :  { %2038 = vmatprep.mubr.bf16.mxu1 %v4482_v25  ;;  %4082 = vmatmul.mubr.bf16.gmra.mxu0 %v4483_v26 }
 0x3f5   :  { %4085 = vmatprep.mubr.bf16.mxu0 %v4484_v24 }
 0x3fb   :  { %2039 = vmatmul.mubr.bf16.gmra.mxu1 %v4485_v28 }
 0x3fc   :  { %2046 = vmatprep.mubr.bf16.mxu1 %v4486_v29  ;;  %4086 = vmatmul.mubr.bf16.gmra.mxu0 %v4487_v30 }
 0x3fd   :  { %4089 = vmatprep.mubr.bf16.mxu0 %v4488_v31 }
 0x403   :  { %2047 = vmatmul.mubr.bf16.gmra.mxu1 %v4489_v34 }
 0x404   :  { %2054 = vmatprep.mubr.bf16.mxu1 %v4490_v35  ;;  %4090 = vmatmul.mubr.bf16.gmra.mxu0 %v4491_v36 }
 0x40b   :  { %2055 = vmatmul.mubr.bf16.gmra.mxu1 %v4492_v37 }
 0x40c   :  { %2062 = vmatprep.mubr.bf16.mxu1 %v4493_v38 }
 0x413   :  { %2063 = vmatmul.mubr.bf16.gmra.mxu1 %v4494_v39 }
 0x414   :  { %2070 = vmatprep.mubr.bf16.mxu1 %v4495_v40 }
 0x41b   :  { %2071 = vmatmul.mubr.bf16.gmra.mxu1 %v4496_v41 }
 0x41c   :  { %2078 = vmatprep.mubr.bf16.mxu1 %v4497_v42 }
 0x423   :  { %2079 = vmatmul.mubr.bf16.gmra.mxu1 %v4498_v43 }
 0x424   :  { %2735 = vmatprep.mubr.bf16.mxu1 %v4499_v44 }
 0x42b   :  { %v1896_v45 = vpop.f32.mrf.mxu1 }
 0x42c   :  { %v1897_v17 = vadd.f32 %v1896_v45, %v5343_v16 }
 0x42d   :  { %v1898_v46 = vpop.f32.mrf.mxu1 }
 0x42f   :  { %v1899_v47 = vpop.f32.mrf.mxu1 }
 0x430   :  { %v1900_v27 = vadd.f32 %v1899_v47, %v5343_v16 }
 0x431   :  { %v1901_v48 = vpop.f32.mrf.mxu1 }
 0x433   :  { %v1904_v49 = vpop.f32.mrf.mxu1 }
 0x434   :  { %v1905_v25 = vadd.f32 %v1904_v49, %v5343_v16 }
 0x435   :  { %v1906_v50 = vpop.f32.mrf.mxu1 }
 0x437   :  { %v1907_v51 = vpop.f32.mrf.mxu1 }
 0x438   :  { %v1908_v22 = vadd.f32 %v1907_v51, %v5343_v16 }
 0x439   :  { %v1909_v52 = vpop.f32.mrf.mxu1 }
 0x43b   :  { %v1912_v53 = vpop.f32.mrf.mxu1 }
 0x43c   :  { %v1913_v43 = vadd.f32 %v1912_v53, %v5343_v16 }
 0x43d   :  { %v1914_v54 = vpop.f32.mrf.mxu1 }
 0x43f   :  { %v1915_v55 = vpop.f32.mrf.mxu1 }
 0x440   :  { %v1916_v50 = vadd.f32 %v1915_v55, %v5343_v16 }
 0x441   :  { %v1917_v56 = vpop.f32.mrf.mxu1 }
 0x443   :  { %v1920_v57 = vpop.f32.mrf.mxu1 }
 0x444   :  { %v1921_v47 = vadd.f32 %v1920_v57, %v5343_v16 }
 0x445   :  { %v1922_v58 = vpop.f32.mrf.mxu1 }
 0x447   :  { %v1923_v59 = vpop.f32.mrf.mxu1 }
 0x448   :  { %v1924_v44 = vadd.f32 %v1923_v59, %v5343_v16 }
 0x449   :  { %v1925_v60 = vpop.f32.mrf.mxu1 }
 0x44b   :  { %v5325_v61 = vpop.f32.mrf.mxu1 }
 0x44c   :  { %v1929_v55 = vadd.f32 %v5325_v61, %v5343_v16 }
 0x44d   :  { %v1930_v62 = vpop.f32.mrf.mxu1 }
 0x44f   :  { %v5327_v63 = vpop.f32.mrf.mxu1 }
 0x451   :  { %v1933_v0 = vpop.f32.mrf.mxu1 }
 0x453   :  { %v5329_v1 = vpop.f32.mrf.mxu1 }
 0x454   :  { %v1937_v12 = vadd.f32 %v5329_v1, %v5343_v16 }
 0x455   :  { %v1938_v2 = vpop.f32.mrf.mxu1 }
 0x457   :  { %v1939_v3 = vpop.f32.mrf.mxu1 }
 0x459   :  { %v1941_v4 = vpop.f32.mrf.mxu1 }
 0x45b   :  { %v5331_v5 = vpop.f32.mrf.mxu1 }
 0x45d   :  { %v1946_v6 = vpop.f32.mrf.mxu1 }
 0x45f   :  { %v5333_v8 = vpop.f32.mrf.mxu1 }
 0x461   :  { %v1949_v9 = vpop.f32.mrf.mxu1 }
 0x462   :  { %v1940_v9 = vadd.f32 %v1939_v3, %v5343_v16 }
 0x463   :  { %v5335_v10 = vpop.f32.mrf.mxu1 }
 0x465   :  { %v1954_v33 = vpop.f32.mrf.mxu1 }
 0x467   :  { %v5340_v13 = vpop.f32.mrf.mxu1 }
 0x469   :  { %v1957_v15 = vpop.f32.mrf.mxu1 }
 0x46b   :  { %v5345_v19 = vpop.f32.mrf.mxu1 }
 0x46c   :  { %v4047_v18 = vpop.f32.mrf.mxu0 }
 0x46d   :  { %v1962_v20 = vpop.f32.mrf.mxu1  ;;  %v2130_v30 = vadd.f32 %v4047_v18, %v1905_v25 }
 0x46e   :  { %v2121_v21 = vpop.f32.mrf.mxu0  ;;  %v1932_v20 = vadd.f32 %v5327_v63, %v5343_v16  ;;  %v1956_v63 = vadd.f32 %v5340_v13, %v5343_v16 }
 0x46f   :  { %v5349_v23 = vpop.f32.mrf.mxu1  ;;  %v2122_v24 = vadd.f32 %v2121_v21, %v1897_v17  ;;  %v2314_v41 = vmax.f32 %v2130_v30, 0.0 }
 0x470   :  { %v4048_v26 = vpop.f32.mrf.mxu0 }
 0x471   :  { %v2133_v28 = vadd.f32 %v4048_v26, %v1908_v22  ;;  %v1965_v29 = vpop.f32.mrf.mxu1  ;;  %v2312_v38 = vmax.f32 %v2122_v24, 0.0 }
 0x472   :  { %v2124_v31 = vpop.f32.mrf.mxu0 }
 0x473   :  { %v2125_v34 = vadd.f32 %v2124_v31, %v1900_v27  ;;  %v5353_v35 = vpop.f32.mrf.mxu1  ;;  %v2315_v36 = vmax.f32 %v2133_v28, 0.0 }
 0x474   :  { %v4051_v37 = vpop.f32.mrf.mxu0 }
 0x475   :  { %v2313_v39 = vmax.f32 %v2125_v34, 0.0  ;;  %v1970_v40 = vpop.f32.mrf.mxu1  ;;  %v2361_v48 = vpack.c.bf16 %v2315_v36, %v2314_v41  ;;  %v2146_v56 = vadd.f32 %v4051_v37, %v1921_v47  ;;  %v1945_v34 = vadd.f32 %v5331_v5, %v5343_v16 }
 0x476   :  { %v2137_v42 = vpop.f32.mrf.mxu0  ;;  %v1948_v41 = vadd.f32 %v5333_v8, %v5343_v16 }
 0x477   :  { %v5357_v45 = vpop.f32.mrf.mxu1  ;;  %v2360_v46 = vpack.c.bf16 %v2313_v39, %v2312_v38  ;;  %v2138_v51 = vadd.f32 %v2137_v42, %v1913_v43  ;;  %v2318_v57 = vmax.f32 %v2146_v56, 0.0  ;;  %v1953_v38 = vadd.f32 %v5335_v10, %v5343_v16 }
 0x478   :  { %v4052_v49 = vpop.f32.mrf.mxu0  ;;  %v1961_v56 = vadd.f32 %v5345_v19, %v5343_v16  ;;  %v1972_v8 = vadd.f32 %v5357_v45, %v5343_v16 }
 0x479   :  { %v2149_v52 = vadd.f32 %v4052_v49, %v1924_v44  ;;  %4109 = vmatprep.mubr.bf16.mxu0 %v2360_v46  ;;  %v1973_v54 = vpop.f32.mrf.mxu1  ;;  %v2316_v0 = vmax.f32 %v2138_v51, 0.0 }
 0x47a   :  { %v2140_v58 = vpop.f32.mrf.mxu0  ;;  %4110 = vmatmul.mubr.bf16.vlgmr.msra.gmra.mxu0 %v2361_v48 }
 0x47b   :  { %v2141_v60 = vadd.f32 %v2140_v58, %v1916_v50  ;;  %v5361_v53 = vpop.f32.mrf.mxu1  ;;  %v2319_v59 = vmax.f32 %v2149_v52, 0.0 }
 0x47c   :  { %v4055_v62 = vpop.f32.mrf.mxu0 }
 0x47d   :  { %v2317_v2 = vmax.f32 %v2141_v60, 0.0  ;;  %v1978_v4 = vpop.f32.mrf.mxu1  ;;  %v2363_v15 = vpack.c.bf16 %v2319_v59, %v2318_v57  ;;  %v2162_v25 = vadd.f32 %v4055_v62, %v1937_v12  ;;  %v1969_v59 = vadd.f32 %v5353_v35, %v5343_v16 }
 0x47e   :  { %v2153_v6 = vpop.f32.mrf.mxu0 }
 0x47f   :  { %v5366_v11 = vpop.f32.mrf.mxu1  ;;  %v2362_v33 = vpack.c.bf16 %v2317_v2, %v2316_v0  ;;  %v2154_v21 = vadd.f32 %v2153_v6, %v1929_v55  ;;  %v2322_v1 = vmax.f32 %v2162_v25, 0.0  ;;  %v1964_v2 = vadd.f32 %v5349_v23, %v5343_v16 }
 0x480   :  { %v4056_v18 = vpop.f32.mrf.mxu0 }
 0x481   :  { %v2165_v17 = vadd.f32 %v4056_v18, %v1940_v9  ;;  %4113 = vmatprep.mubr.bf16.mxu0 %v2362_v33  ;;  %v1981_v22 = vpop.f32.mrf.mxu1  ;;  %v2320_v28 = vmax.f32 %v2154_v21, 0.0 }
 0x482   :  { %v2156_v26 = vpop.f32.mrf.mxu0  ;;  %4114 = vmatmul.mubr.bf16.gmra.mxu0 %v2363_v15 }
 0x483   :  { %v2157_v61 = vadd.f32 %v2156_v26, %v1932_v20  ;;  %v1984_v3 = vpop.f32.mrf.mxu1  ;;  %v2323_v27 = vmax.f32 %v2165_v17, 0.0  ;;  %v1977_v17 = vadd.f32 %v5361_v53, %v5343_v16 }
 0x484   :  { %v4059_v24 = vpop.f32.mrf.mxu0  ;;  %v1985_v26 = vadd.f32 %v1984_v3, %v5343_v16 }
 0x485   :  { %v2321_v29 = vmax.f32 %v2157_v61, 0.0  ;;  %v1986_v30 = vpop.f32.mrf.mxu1  ;;  %v2365_v39 = vpack.c.bf16 %v2323_v27, %v2322_v1  ;;  %v2178_v46 = vadd.f32 %v4059_v24, %v1953_v38  ;;  %v1980_v24 = vadd.f32 %v5366_v11, %v5343_v16 }
 0x486   :  { %v2169_v31 = vpop.f32.mrf.mxu0 }
 0x487   :  { %v1987_v36 = vpop.f32.mrf.mxu1  ;;  %v2364_v37 = vpack.c.bf16 %v2321_v29, %v2320_v28  ;;  %v2170_v42 = vadd.f32 %v2169_v31, %v1945_v34  ;;  %v2326_v10 = vmax.f32 %v2178_v46, 0.0 }
 0x488   :  { %v4060_v40 = vpop.f32.mrf.mxu0  ;;  %v1988_v23 = vadd.f32 %v1987_v36, %v5343_v16 }
 0x489   :  { %v2181_v43 = vadd.f32 %v4060_v40, %v1956_v63  ;;  %4117 = vmatprep.mubr.bf16.mxu0 %v2364_v37  ;;  %v1989_v44 = vpop.f32.mrf.mxu1  ;;  %v2324_v50 = vmax.f32 %v2170_v42, 0.0 }
 0x48a   :  { %v2172_v47 = vpop.f32.mrf.mxu0  ;;  %4118 = vmatmul.mubr.bf16.gmra.mxu0 %v2365_v39 }
 0x48b   :  { %v2173_v5 = vadd.f32 %v2172_v47, %v1948_v41  ;;  %v1992_v48 = vpop.f32.mrf.mxu1  ;;  %v2327_v13 = vmax.f32 %v2181_v43, 0.0 }
 0x48c   :  { %v4063_v49 = vpop.f32.mrf.mxu0  ;;  %v1993_v41 = vadd.f32 %v1992_v48, %v5343_v16 }
 0x48d   :  { %v2325_v51 = vmax.f32 %v2173_v5, 0.0  ;;  %v1994_v52 = vpop.f32.mrf.mxu1  ;;  %v2367_v62 = vpack.c.bf16 %v2327_v13, %v2326_v10  ;;  %v2194_v55 = vadd.f32 %v4063_v49, %v1969_v59 }
 0x48e   :  { %v2185_v54 = vpop.f32.mrf.mxu0 }
 0x48f   :  { %v1995_v58 = vpop.f32.mrf.mxu1  ;;  %v2366_v60 = vpack.c.bf16 %v2325_v51, %v2324_v50  ;;  %v2186_v4 = vadd.f32 %v2185_v54, %v1961_v56  ;;  %v2330_v35 = vmax.f32 %v2194_v55, 0.0 }
 0x490   :  { %v4064_v0 = vpop.f32.mrf.mxu0  ;;  %v1996_v5 = vadd.f32 %v1995_v58, %v5343_v16 }
 0x491   :  { %v2197_v57 = vadd.f32 %v4064_v0, %v1972_v8  ;;  %4121 = vmatprep.mubr.bf16.mxu0 %v2366_v60  ;;  %v1997_v6 = vpop.f32.mrf.mxu1  ;;  %v2328_v15 = vmax.f32 %v2186_v4, 0.0 }
 0x492   :  { %v2188_v9 = vpop.f32.mrf.mxu0  ;;  %4122 = vmatmul.mubr.bf16.gmra.mxu0 %v2367_v62 }
 0x493   :  { %v2189_v19 = vadd.f32 %v2188_v9, %v1964_v2  ;;  %v2000_v33 = vpop.f32.mrf.mxu1  ;;  %v2331_v45 = vmax.f32 %v2197_v57, 0.0 }
 0x494   :  { %v4067_v12 = vpop.f32.mrf.mxu0  ;;  %v2001_v44 = vadd.f32 %v2000_v33, %v5343_v16 }
 0x495   :  { %v2329_v18 = vmax.f32 %v2189_v19, 0.0  ;;  %v2002_v20 = vpop.f32.mrf.mxu1  ;;  %v2369_v61 = vpack.c.bf16 %v2331_v45, %v2330_v35  ;;  %v2210_v1 = vadd.f32 %v4067_v12, %v1985_v26 }
 0x496   :  { %v2201_v21 = vpop.f32.mrf.mxu0 }
 0x497   :  { %v2003_v22 = vpop.f32.mrf.mxu1  ;;  %v2368_v25 = vpack.c.bf16 %v2329_v18, %v2328_v15  ;;  %v2202_v28 = vadd.f32 %v2201_v21, %v1977_v17  ;;  %v2334_v3 = vmax.f32 %v2210_v1, 0.0 }
 0x498   :  { %v4068_v27 = vpop.f32.mrf.mxu0  ;;  %v2004_v11 = vadd.f32 %v2003_v22, %v5343_v16 }
 0x499   :  { %v2213_v29 = vadd.f32 %v4068_v27, %v1988_v23  ;;  %4125 = vmatprep.mubr.bf16.mxu0 %v2368_v25  ;;  %v2005_v30 = vpop.f32.mrf.mxu1  ;;  %v2332_v37 = vmax.f32 %v2202_v28, 0.0 }
 0x49a   :  { %v2204_v31 = vpop.f32.mrf.mxu0  ;;  %4126 = vmatmul.mubr.bf16.gmra.mxu0 %v2369_v61 }
 0x49b   :  { %v2205_v34 = vadd.f32 %v2204_v31, %v1980_v24  ;;  %v2008_v53 = vpop.f32.mrf.mxu1  ;;  %v2335_v63 = vmax.f32 %v2213_v29, 0.0 }
 0x49c   :  { %v4071_v36 = vpop.f32.mrf.mxu0  ;;  %v2009_v58 = vadd.f32 %v2008_v53, %v5343_v16 }
 0x49d   :  { %v2333_v38 = vmax.f32 %v2205_v34, 0.0  ;;  %v2010_v39 = vpop.f32.mrf.mxu1  ;;  %v2371_v46 = vpack.c.bf16 %v2335_v63, %v2334_v3  ;;  %v2226_v51 = vadd.f32 %v4071_v36, %v2001_v44 }
 0x49e   :  { %v2217_v40 = vpop.f32.mrf.mxu0 }
 0x49f   :  { %v2011_v42 = vpop.f32.mrf.mxu1  ;;  %v2370_v43 = vpack.c.bf16 %v2333_v38, %v2332_v37  ;;  %v2218_v13 = vadd.f32 %v2217_v40, %v1993_v41  ;;  %v2338_v62 = vmax.f32 %v2226_v51, 0.0 }
 0x4a0   :  { %v4072_v47 = vpop.f32.mrf.mxu0  ;;  %v2012_v19 = vadd.f32 %v2011_v42, %v5343_v16 }
 0x4a1   :  { %v2229_v49 = vadd.f32 %v4072_v47, %v2004_v11  ;;  %4129 = vmatprep.mubr.bf16.mxu0 %v2370_v43  ;;  %v2013_v50 = vpop.f32.mrf.mxu1  ;;  %v2336_v8 = vmax.f32 %v2218_v13, 0.0 }
 0x4a2   :  { %v2220_v52 = vpop.f32.mrf.mxu0  ;;  %4130 = vmatmul.mubr.bf16.gmra.mxu0 %v2371_v46 }
 0x4a3   :  { %v2221_v10 = vadd.f32 %v2220_v52, %v1996_v5  ;;  %v2016_v54 = vpop.f32.mrf.mxu1  ;;  %v2339_v48 = vmax.f32 %v2229_v49, 0.0 }
 0x4a4   :  { %v4075_v56 = vpop.f32.mrf.mxu0  ;;  %v2017_v0 = vadd.f32 %v2016_v54, %v5343_v16 }
 0x4a5   :  { %v2337_v60 = vmax.f32 %v2221_v10, 0.0  ;;  %v2018_v59 = vpop.f32.mrf.mxu1  ;;  %v2373_v6 = vpack.c.bf16 %v2339_v48, %v2338_v62 }
 0x4a6   :  { %v2233_v2 = vpop.f32.mrf.mxu0  ;;  %v2242_v12 = vadd.f32 %v4075_v56, %v2017_v0 }
 0x4a7   :  { %v2019_v4 = vpop.f32.mrf.mxu1  ;;  %v2372_v57 = vpack.c.bf16 %v2337_v60, %v2336_v8  ;;  %v2234_v33 = vadd.f32 %v2233_v2, %v2009_v58 }
 0x4a8   :  { %v4076_v55 = vpop.f32.mrf.mxu0  ;;  %v2020_v9 = vadd.f32 %v2019_v4, %v5343_v16  ;;  %v2342_v61 = vmax.f32 %v2242_v12, 0.0 }
 0x4a9   :  { %4133 = vmatprep.mubr.bf16.mxu0 %v2372_v57  ;;  %v2021_v45 = vpop.f32.mrf.mxu1  ;;  %v2340_v22 = vmax.f32 %v2234_v33, 0.0 }
 0x4aa   :  { %v2245_v15 = vadd.f32 %v4076_v55, %v2020_v9  ;;  %v2236_v18 = vpop.f32.mrf.mxu0  ;;  %4134 = vmatmul.mubr.bf16.gmra.mxu0 %v2373_v6 }
 0x4ab   :  { %v2237_v20 = vadd.f32 %v2236_v18, %v2012_v19  ;;  %v2024_v35 = vpop.f32.mrf.mxu1 }
 0x4ac   :  { %v2343_v21 = vmax.f32 %v2245_v15, 0.0  ;;  %v2025_v17 = vadd.f32 %v2024_v35, %v5343_v16  ;;  %v4079_v23 = vpop.f32.mrf.mxu0 }
 0x4ad   :  { %v2341_v25 = vmax.f32 %v2237_v20, 0.0  ;;  %v2026_v26 = vpop.f32.mrf.mxu1 }
 0x4ae   :  { %v2249_v27 = vpop.f32.mrf.mxu0  ;;  %v2375_v30 = vpack.c.bf16 %v2343_v21, %v2342_v61 }
 0x4af   :  { %v2374_v24 = vpack.c.bf16 %v2341_v25, %v2340_v22  ;;  %v2027_v28 = vpop.f32.mrf.mxu1  ;;  %v2250_v29 = vadd.f32 %v2249_v27, %v2025_v17 }
 0x4b0   :  { %v2028_v1 = vadd.f32 %v2027_v28, %v5343_v16  ;;  %v4080_v31 = vpop.f32.mrf.mxu0 }
 0x4b1   :  { %4137 = vmatprep.mubr.bf16.mxu0 %v2374_v24  ;;  %v2029_v34 = vpop.f32.mrf.mxu1  ;;  %v2344_v36 = vmax.f32 %v2250_v29, 0.0 }
 0x4b2   :  { %4138 = vmatmul.mubr.bf16.gmra.mxu0 %v2375_v30  ;;  %v2252_v53 = vpop.f32.mrf.mxu0 }
 0x4b3   :  { %v2032_v63 = vpop.f32.mrf.mxu1  ;;  %v2253_v37 = vadd.f32 %v2252_v53, %v2028_v1 }
 0x4b4   :  { %v2033_v38 = vadd.f32 %v2032_v63, %v5343_v16  ;;  %v4083_v39 = vpop.f32.mrf.mxu0 }
 0x4b5   :  { %v2034_v3 = vpop.f32.mrf.mxu1  ;;  %v2345_v40 = vmax.f32 %v2253_v37, 0.0 }
 0x4b6   :  { %v2258_v41 = vadd.f32 %v4079_v23, %v2033_v38  ;;  %v2265_v42 = vpop.f32.mrf.mxu0 }
 0x4b7   :  { %v2035_v11 = vpop.f32.mrf.mxu1  ;;  %v2376_v43 = vpack.c.bf16 %v2345_v40, %v2344_v36 }
 0x4b8   :  { %v2036_v44 = vadd.f32 %v2035_v11, %v5343_v16  ;;  %v2346_v47 = vmax.f32 %v2258_v41, 0.0  ;;  %v4084_v49 = vpop.f32.mrf.mxu0 }
 0x4b9   :  { %v2037_v46 = vpop.f32.mrf.mxu1  ;;  %4141 = vmatprep.mubr.bf16.mxu0 %v2376_v43 }
 0x4ba   :  { %v2261_v5 = vadd.f32 %v4080_v31, %v2036_v44  ;;  %v2268_v56 = vpop.f32.mrf.mxu0 }
 0x4bb   :  { %v2040_v13 = vpop.f32.mrf.mxu1 }
 0x4bc   :  { %v2041_v50 = vadd.f32 %v2040_v13, %v5343_v16  ;;  %v2347_v51 = vmax.f32 %v2261_v5, 0.0  ;;  %v4087_v2 = vpop.f32.mrf.mxu0 }
 0x4bd   :  { %v2042_v52 = vpop.f32.mrf.mxu1 }
 0x4be   :  { %v2377_v10 = vpack.c.bf16 %v2347_v51, %v2346_v47  ;;  %v2266_v54 = vadd.f32 %v2265_v42, %v2041_v50  ;;  %v2281_v19 = vpop.f32.mrf.mxu0 }
 0x4bf   :  { %v2043_v48 = vpop.f32.mrf.mxu1 }
 0x4c0   :  { %v2044_v8 = vadd.f32 %v2043_v48, %v5343_v16  ;;  %4142 = vmatmul.mubr.bf16.gmra.mxu0 %v2377_v10  ;;  %v2348_v59 = vmax.f32 %v2266_v54, 0.0  ;;  %v4088_v20 = vpop.f32.mrf.mxu0 }
 0x4c1   :  { %v2045_v60 = vpop.f32.mrf.mxu1 }
 0x4c2   :  { %v2269_v62 = vadd.f32 %v2268_v56, %v2044_v8  ;;  %v2284_v26 = vpop.f32.mrf.mxu0 }
 0x4c3   :  { %v2048_v0 = vpop.f32.mrf.mxu1 }
 0x4c4   :  { %v2049_v58 = vadd.f32 %v2048_v0, %v5343_v16  ;;  %v2349_v4 = vmax.f32 %v2269_v62, 0.0  ;;  %v4091_v30 = vpop.f32.mrf.mxu0 }
 0x4c5   :  { %v2050_v57 = vpop.f32.mrf.mxu1 }
 0x4c6   :  { %v2274_v6 = vadd.f32 %v4083_v39, %v2049_v58  ;;  %v2378_v55 = vpack.c.bf16 %v2349_v4, %v2348_v59  ;;  %v2297_v37 = vpop.f32.mrf.mxu0 }
 0x4c7   :  { %v2051_v9 = vpop.f32.mrf.mxu1 }
 0x4c8   :  { %v2052_v33 = vadd.f32 %v2051_v9, %v5343_v16  ;;  %4145 = vmatprep.mubr.bf16.mxu0 %v2378_v55  ;;  %v2350_v12 = vmax.f32 %v2274_v6, 0.0  ;;  %v4092_v11 = vpop.f32.mrf.mxu0  ;;  %v4500_v6 = vld [vmem:[%s5901_s0 + $0x8] ss:$12 sps:$4 sm:$0xff]  }
 0x4c9   :  { %v2053_v45 = vpop.f32.mrf.mxu1 }
 0x4ca   :  { %v2277_v15 = vadd.f32 %v4084_v49, %v2052_v33  ;;  %v2300_v13 = vpop.f32.mrf.mxu0 }
 0x4cb   :  { %v2056_v18 = vpop.f32.mrf.mxu1 }
 0x4cc   :  { %v2057_v35 = vadd.f32 %v2056_v18, %v5343_v16  ;;  %v2351_v21 = vmax.f32 %v2277_v15, 0.0 }
 0x4cd   :  { %v2058_v17 = vpop.f32.mrf.mxu1 }
 0x4ce   :  { %v2379_v23 = vpack.c.bf16 %v2351_v21, %v2350_v12  ;;  %v2282_v22 = vadd.f32 %v2281_v19, %v2057_v35 }
 0x4cf   :  { %v2059_v25 = vpop.f32.mrf.mxu1 }
 0x4d0   :  { %v2060_v61 = vadd.f32 %v2059_v25, %v5343_v16  ;;  %4146 = vmatmul.mubr.bf16.gmra.mxu0 %v2379_v23  ;;  %v2352_v24 = vmax.f32 %v2282_v22, 0.0 }
 0x4d1   :  { %v2061_v27 = vpop.f32.mrf.mxu1 }
 0x4d2   :  { %v2285_v28 = vadd.f32 %v2284_v26, %v2060_v61 }
 0x4d3   :  { %v2064_v29 = vpop.f32.mrf.mxu1 }
 0x4d4   :  { %v2065_v1 = vadd.f32 %v2064_v29, %v5343_v16  ;;  %v2353_v31 = vmax.f32 %v2285_v28, 0.0 }
 0x4d5   :  { %v2066_v34 = vpop.f32.mrf.mxu1 }
 0x4d6   :  { %v2290_v53 = vadd.f32 %v4087_v2, %v2065_v1  ;;  %v2380_v63 = vpack.c.bf16 %v2353_v31, %v2352_v24 }
 0x4d7   :  { %v2067_v36 = vpop.f32.mrf.mxu1 }
 0x4d8   :  { %v2068_v38 = vadd.f32 %v2067_v36, %v5343_v16  ;;  %4149 = vmatprep.mubr.bf16.mxu0 %v2380_v63  ;;  %v2354_v3 = vmax.f32 %v2290_v53, 0.0 }
 0x4d9   :  { %v2069_v39 = vpop.f32.mrf.mxu1 }
 0x4da   :  { %v2293_v40 = vadd.f32 %v4088_v20, %v2068_v38 }
 0x4db   :  { %v2072_v41 = vpop.f32.mrf.mxu1 }
 0x4dc   :  { %v2073_v42 = vadd.f32 %v2072_v41, %v5343_v16  ;;  %v2355_v43 = vmax.f32 %v2293_v40, 0.0 }
 0x4dd   :  { %v2074_v44 = vpop.f32.mrf.mxu1 }
 0x4de   :  { %v2381_v46 = vpack.c.bf16 %v2355_v43, %v2354_v3  ;;  %v2298_v47 = vadd.f32 %v2297_v37, %v2073_v42 }
 0x4df   :  { %v2075_v5 = vpop.f32.mrf.mxu1 }
 0x4e0   :  { %v2076_v49 = vadd.f32 %v2075_v5, %v5343_v16  ;;  %4150 = vmatmul.mubr.bf16.gmra.mxu0 %v2381_v46  ;;  %v2356_v51 = vmax.f32 %v2298_v47, 0.0 }
 0x4e1   :  { %v2077_v50 = vpop.f32.mrf.mxu1 }
 0x4e2   :  { %v2301_v52 = vadd.f32 %v2300_v13, %v2076_v49 }
 0x4e3   :  { %v2080_v10 = vpop.f32.mrf.mxu1 }
 0x4e4   :  { %v2081_v54 = vadd.f32 %v2080_v10, %v5343_v16  ;;  %v2357_v48 = vmax.f32 %v2301_v52, 0.0 }
 0x4e5   :  { %v2082_v56 = vpop.f32.mrf.mxu1 }
 0x4e6   :  { %v2306_v8 = vadd.f32 %v4091_v30, %v2081_v54  ;;  %v2382_v60 = vpack.c.bf16 %v2357_v48, %v2356_v51 }
 0x4e7   :  { %v2083_v59 = vpop.f32.mrf.mxu1 }
 0x4e8   :  { %v2084_v62 = vadd.f32 %v2083_v59, %v5343_v16  ;;  %4153 = vmatprep.mubr.bf16.mxu0 %v2382_v60  ;;  %v2358_v2 = vmax.f32 %v2306_v8, 0.0 }
 0x4e9   :  { %v2085_v0 = vpop.f32.mrf.mxu1 }
 0x4ea   :  { %v2309_v58 = vadd.f32 %v4092_v11, %v2084_v62  ;;  %v4501_v62 = vld [vmem:[%s5901_s0] ss:$12 sps:$4 sm:$0xff]  }
 0x4ec   :  { %v2359_v4 = vmax.f32 %v2309_v58, 0.0 }
 0x4ee   :  { %v2383_v57 = vpack.c.bf16 %v2359_v4, %v2358_v2  ;;  %v4502_v2 = vld [vmem:[%s5901_s0 + $0x1c] ss:$12 sps:$4 sm:$0xff]  }
 0x4f0   :  { %4154 = vmatmul.mubr.bf16.gmra.mxu0 %v2383_v57  ;;  %v4504_v57 = vld [vmem:[%s5901_s0 + $0x34] ss:$12 sps:$4 sm:$0xff]  }
 0x4f1   :  { %4173 = vmatprep.mubr.bf16.mxu0 %v4500_v6 }
 0x53a   :  { %v4111_v55 = vpop.f32.mrf.mxu0 }
 0x53c   :  { %v2484_v9 = vpop.f32.mrf.mxu0 }
 0x53e   :  { %v4112_v19 = vpop.f32.mrf.mxu0 }
 0x53f   :  { %v2676_v40 = vpack.c.bf16 %v4112_v19, %v4111_v55  ;;  %v4505_v55 = vld [vmem:[%s5901_s0 + $0x30] ss:$12 sps:$4 sm:$0xff]   ;;  %v4506_v19 = vld [vmem:[%s5901_s0 + $0x4c] ss:$12 sps:$4 sm:$0xff]  }
 0x540   :  { %v2487_v33 = vpop.f32.mrf.mxu0 }
 0x541   :  { %v2675_v42 = vpack.c.bf16 %v2487_v33, %v2484_v9 }
 0x542   :  { %v4115_v45 = vpop.f32.mrf.mxu0 }
 0x544   :  { %v2500_v12 = vpop.f32.mrf.mxu0 }
 0x546   :  { %v4116_v15 = vpop.f32.mrf.mxu0 }
 0x547   :  { %v2678_v63 = vpack.c.bf16 %v4116_v15, %v4115_v45  ;;  %v4507_v45 = vld [vmem:[%s5901_s0 + $0x48] ss:$12 sps:$4 sm:$0xff]   ;;  %v4508_v15 = vld [vmem:[%s5901_s0 + $0x64] ss:$12 sps:$4 sm:$0xff]  }
 0x548   :  { %v2503_v16 = vpop.f32.mrf.mxu0 }
 0x549   :  { %v2677_v38 = vpack.c.bf16 %v2503_v16, %v2500_v12 }
 0x54a   :  { %v4119_v18 = vpop.f32.mrf.mxu0 }
 0x54c   :  { %v2516_v20 = vpop.f32.mrf.mxu0 }
 0x54e   :  { %v4120_v35 = vpop.f32.mrf.mxu0 }
 0x54f   :  { %v2680_v29 = vpack.c.bf16 %v4120_v35, %v4119_v18 }
 0x550   :  { %v2519_v21 = vpop.f32.mrf.mxu0 }
 0x551   :  { %v2679_v31 = vpack.c.bf16 %v2519_v21, %v2516_v20 }
 0x552   :  { %v4123_v17 = vpop.f32.mrf.mxu0 }
 0x554   :  { %v2532_v23 = vpop.f32.mrf.mxu0 }
 0x556   :  { %v4124_v22 = vpop.f32.mrf.mxu0 }
 0x557   :  { %v2682_v25 = vpack.c.bf16 %v4124_v22, %v4123_v17  ;;  %v4509_v17 = vld [vmem:[%s5901_s0 + $0x60] ss:$12 sps:$4 sm:$0xff]   ;;  %v4510_v22 = vld [vmem:[%s5901_s0 + $0x7c] ss:$12 sps:$4 sm:$0xff]  }
 0x558   :  { %v2535_v26 = vpop.f32.mrf.mxu0 }
 0x559   :  { %2704 = vmatpush1.bf16.msra.mxu1 %v2682_v25  ;;  %v2681_v27 = vpack.c.bf16 %v2535_v26, %v2532_v23  ;;  %v4511_v26 = vld [vmem:[%s5901_s0 + $0x78] ss:$12 sps:$4 sm:$0xff]  }
 0x55a   :  { %v4127_v61 = vpop.f32.mrf.mxu0  ;;  %2705 = vmatprep.subr.bf16.mxu1 %v4571_v32 }
 0x55c   :  { %v5422_v24 = vpop.f32.mrf.mxu0 }
 0x55d   :  { %2706 = vmatpush1.bf16.msra.mxu1 %v2681_v27 }
 0x55e   :  { %v4128_v28 = vpop.f32.mrf.mxu0  ;;  %2707 = vmatprep.subr.bf16.mxu1 %v4571_v32 }
 0x55f   :  { %v2684_v56 = vpack.c.bf16 %v4128_v28, %v4127_v61  ;;  %v4512_v61 = vld [vmem:[%s5901_s0 + $0x94] ss:$12 sps:$4 sm:$0xff]   ;;  %v4513_v28 = vld [vmem:[%s5901_s0 + $0x90] ss:$12 sps:$4 sm:$0xff]  }
 0x560   :  { %v2551_v30 = vpop.f32.mrf.mxu0 }
 0x561   :  { %2708 = vmatpush1.bf16.msra.mxu1 %v2680_v29  ;;  %v2683_v60 = vpack.c.bf16 %v2551_v30, %v5422_v24  ;;  %v4514_v29 = vld [vmem:[%s5901_s0 + $0xac] ss:$12 sps:$4 sm:$0xff]  }
 0x562   :  { %v4131_v1 = vpop.f32.mrf.mxu0  ;;  %2709 = vmatprep.subr.bf16.mxu1 %v4571_v32 }
 0x564   :  { %v2564_v34 = vpop.f32.mrf.mxu0 }
 0x565   :  { %2710 = vmatpush1.bf16.msra.mxu1 %v2679_v31  ;;  %v4515_v31 = vld [vmem:[%s5901_s0 + $0xa8] ss:$12 sps:$4 sm:$0xff]  }
 0x566   :  { %v4132_v53 = vpop.f32.mrf.mxu0  ;;  %2711 = vmatprep.subr.bf16.mxu1 %v4571_v32 }
 0x567   :  { %v2686_v52 = vpack.c.bf16 %v4132_v53, %v4131_v1  ;;  %v4517_v53 = vld [vmem:[%s5901_s0 + $0x20] ss:$12 sps:$4 sm:$0xff]  }
 0x568   :  { %v2567_v36 = vpop.f32.mrf.mxu0 }
 0x569   :  { %2712 = vmatpush1.bf16.msra.mxu1 %v2678_v63  ;;  %v2685_v54 = vpack.c.bf16 %v2567_v36, %v2564_v34  ;;  %v4516_v34 = vld [vmem:[%s5901_s0 + $0xc4] ss:$12 sps:$4 sm:$0xff]   ;;  %v4518_v63 = vld [vmem:[%s5901_s0 + $0xc0] ss:$12 sps:$4 sm:$0xff]  }
 0x56a   :  { %v4135_v37 = vpop.f32.mrf.mxu0  ;;  %2713 = vmatprep.subr.bf16.mxu1 %v4571_v32  ;;  %v4519_v36 = vld [vmem:[%s5901_s0 + $0x38] ss:$12 sps:$4 sm:$0xff]  }
 0x56c   :  { %v2580_v39 = vpop.f32.mrf.mxu0 }
 0x56d   :  { %2714 = vmatpush1.bf16.msra.mxu1 %v2677_v38  ;;  %v4521_v38 = vld [vmem:[%s5901_s0 + $0x50] ss:$12 sps:$4 sm:$0xff]  }
 0x56e   :  { %v4136_v3 = vpop.f32.mrf.mxu0  ;;  %2715 = vmatprep.subr.bf16.mxu1 %v4571_v32 }
 0x56f   :  { %v2688_v13 = vpack.c.bf16 %v4136_v3, %v4135_v37  ;;  %v4520_v37 = vld [vmem:[%s5901_s0 + $0xdc] ss:$12 sps:$4 sm:$0xff]  }
 0x570   :  { %v2583_v41 = vpop.f32.mrf.mxu0  ;;  %v4523_v3 = vld [vmem:[%s5901_s0 + $0x68] ss:$12 sps:$4 sm:$0xff]  }
 0x571   :  { %2716 = vmatpush1.bf16.msra.mxu1 %v2676_v40  ;;  %v2687_v50 = vpack.c.bf16 %v2583_v41, %v2580_v39  ;;  %v4522_v39 = vld [vmem:[%s5901_s0 + $0xd8] ss:$12 sps:$4 sm:$0xff]   ;;  %v4524_v40 = vld [vmem:[%s5901_s0 + $0xf4] ss:$12 sps:$4 sm:$0xff]  }
 0x572   :  { %v4139_v11 = vpop.f32.mrf.mxu0  ;;  %2717 = vmatprep.subr.bf16.mxu1 %v4571_v32  ;;  %v4525_v41 = vld [vmem:[%s5901_s0 + $0x80] ss:$12 sps:$4 sm:$0xff]  }
 0x574   :  { %v2596_v43 = vpop.f32.mrf.mxu0 }
 0x575   :  { %2718 = vmatpush1.bf16.msra.mxu1 %v2675_v42  ;;  %v4527_v42 = vld [vmem:[%s5901_s0 + $0x98] ss:$12 sps:$4 sm:$0xff]  }
 0x576   :  { %v4140_v44 = vpop.f32.mrf.mxu0  ;;  %2719 = vmatprep.subr.bf16.mxu1 %v4571_v32 }
 0x577   :  { %v2690_v46 = vpack.c.bf16 %v4140_v44, %v4139_v11  ;;  %v4526_v11 = vld [vmem:[%s5901_s0 + $0xf0] ss:$12 sps:$4 sm:$0xff]  }
 0x578   :  { %v2599_v47 = vpop.f32.mrf.mxu0  ;;  %v4529_v44 = vld [vmem:[%s5901_s0 + $0xb0] ss:$12 sps:$4 sm:$0xff]  }
 0x579   :  { %2720 = vmatpush2.bf16.msra.mxu1 %v2690_v46  ;;  %v2689_v5 = vpack.c.bf16 %v2599_v47, %v2596_v43  ;;  %v4528_v43 = vld [vmem:[%s5901_s0 + $0x10c] ss:$12 sps:$4 sm:$0xff]   ;;  %v4530_v46 = vld [vmem:[%s5901_s0 + $0x108] ss:$12 sps:$4 sm:$0xff]  }
 0x57a   :  { %2721 = vmatprep.subr.bf16.mxu1 %v4571_v32  ;;  %v4531_v47 = vld [vmem:[%s5901_s0 + $0xc8] ss:$12 sps:$4 sm:$0xff]  }
 0x57d   :  { %2722 = vmatpush2.bf16.msra.mxu1 %v2689_v5  ;;  %v4532_v5 = vld [vmem:[%s5901_s0 + $0x124] ss:$12 sps:$4 sm:$0xff]  }
 0x57e   :  { %2723 = vmatprep.subr.bf16.mxu1 %v4571_v32 }
 0x580   :  { %v5433_v49 = vpop.f32.mrf.mxu0 }
 0x581   :  { %2724 = vmatpush2.bf16.msra.mxu1 %v2688_v13  ;;  %v4533_v13 = vld [vmem:[%s5901_s0 + $0xe0] ss:$12 sps:$4 sm:$0xff]  }
 0x582   :  { %2725 = vmatprep.subr.bf16.mxu1 %v4571_v32  ;;  %v5436_v51 = vpop.f32.mrf.mxu0 }
 0x584   :  { %v5439_v10 = vpop.f32.mrf.mxu0 }
 0x585   :  { %2726 = vmatpush2.bf16.msra.mxu1 %v2687_v50  ;;  %v2692_v30 = vpack.c.bf16 %v5439_v10, %v5433_v49  ;;  %v4534_v49 = vld [vmem:[%s5901_s0 + $0x120] ss:$12 sps:$4 sm:$0xff]   ;;  %v4535_v50 = vld [vmem:[%s5901_s0 + $0xf8] ss:$12 sps:$4 sm:$0xff]  }
 0x586   :  { %2727 = vmatprep.subr.bf16.mxu1 %v4571_v32  ;;  %v5442_v48 = vpop.f32.mrf.mxu0  ;;  %v4538_v10 = vld [vmem:[%s5901_s0 + $0x138] ss:$12 sps:$4 sm:$0xff]  }
 0x587   :  { %v2691_v1 = vpack.c.bf16 %v5442_v48, %v5436_v51  ;;  %v4536_v51 = vld [vmem:[%s5901_s0 + $0x13c] ss:$12 sps:$4 sm:$0xff]   ;;  %v4540_v48 = vld [vmem:[%s5901_s0 + $0x154] ss:$12 sps:$4 sm:$0xff]  }
 0x589   :  { %2728 = vmatpush2.bf16.msra.mxu1 %v2686_v52  ;;  %v4537_v52 = vld [vmem:[%s5901_s0 + $0x110] ss:$12 sps:$4 sm:$0xff]  }
 0x58a   :  { %2729 = vmatprep.subr.bf16.mxu1 %v4571_v32 }
 0x58d   :  { %2730 = vmatpush2.bf16.msra.mxu1 %v2685_v54  ;;  %v4539_v54 = vld [vmem:[%s5901_s0 + $0x128] ss:$12 sps:$4 sm:$0xff]  }
 0x58e   :  { %2731 = vmatprep.subr.bf16.mxu1 %v4571_v32 }
 0x590   :  { %v4147_v8 = vpop.f32.mrf.mxu0 }
 0x591   :  { %2732 = vmatpush2.bf16.msra.mxu1 %v2684_v56  ;;  %v4541_v56 = vld [vmem:[%s5901_s0 + $0x140] ss:$12 sps:$4 sm:$0xff]  }
 0x592   :  { %2733 = vmatprep.subr.bf16.mxu1 %v4571_v32  ;;  %v2628_v59 = vpop.f32.mrf.mxu0  ;;  %v4503_v32 = vld [vmem:[%s5901_s0 + $0x18] ss:$12 sps:$4 sm:$0xff]  }
 0x594   :  { %v4148_v0 = vpop.f32.mrf.mxu0 }
 0x595   :  { %2734 = vmatpush2.bf16.msra.mxu1 %v2683_v60  ;;  %v2694_v27 = vpack.c.bf16 %v4148_v0, %v4147_v8  ;;  %v4542_v8 = vld [vmem:[%s5901_s0 + $0x150] ss:$12 sps:$4 sm:$0xff]   ;;  %v4543_v60 = vld [vmem:[%s5901_s0 + $0x158] ss:$12 sps:$4 sm:$0xff]   ;;  %v4546_v0 = vld [vmem:[%s5901_s0 + $0x168] ss:$12 sps:$4 sm:$0xff]  }
 0x596   :  { %v2631_v58 = vpop.f32.mrf.mxu0 }
 0x597   :  { %v2693_v24 = vpack.c.bf16 %v2631_v58, %v2628_v59  ;;  %v4544_v59 = vld [vmem:[%s5901_s0 + $0x16c] ss:$12 sps:$4 sm:$0xff]   ;;  %v4548_v58 = vld [vmem:[%s5901_s0 + $0x184] ss:$12 sps:$4 sm:$0xff]  }
 0x598   :  { %2736 = vmatmul.mubr.bf16.vlgmr.msra.gmra.mxu1 %v4501_v62  ;;  %v4545_v62 = vld [vmem:[%s5901_s0 + $0x170] ss:$12 sps:$4 sm:$0xff]  }
 0x599   :  { %2743 = vmatprep.mubr.bf16.mxu1 %v4502_v2  ;;  %v4547_v2 = vld [vmem:[%s5901_s0 + $0x188] ss:$12 sps:$4 sm:$0xff]  }
 0x5a0   :  { %2744 = vmatmul.mubr.bf16.gmra.mxu1 %v4503_v32  ;;  %v4151_v4 = vpop.f32.mrf.mxu0  ;;  %v4549_v32 = vld [vmem:[%s5901_s0 + $0x1a0] ss:$12 sps:$4 sm:$0xff]  }
 0x5a1   :  { %2751 = vmatprep.mubr.bf16.mxu1 %v4504_v57  ;;  %v4551_v57 = vld [vmem:[%s5901_s0 + $0x1b8] ss:$12 sps:$4 sm:$0xff]  }
 0x5a2   :  { %v2644_v6 = vpop.f32.mrf.mxu0 }
 0x5a4   :  { %v4152_v9 = vpop.f32.mrf.mxu0 }
 0x5a5   :  { %v2696_v23 = vpack.c.bf16 %v4152_v9, %v4151_v4  ;;  %v4550_v4 = vld [vmem:[%s5901_s0 + $0x180] ss:$12 sps:$4 sm:$0xff]   ;;  %v4554_v9 = vld [vmem:[%s5901_s0 + $0x198] ss:$12 sps:$4 sm:$0xff]  }
 0x5a6   :  { %v2647_v33 = vpop.f32.mrf.mxu0 }
 0x5a7   :  { %v2695_v25 = vpack.c.bf16 %v2647_v33, %v2644_v6  ;;  %v4552_v6 = vld [vmem:[%s5901_s0 + $0x19c] ss:$12 sps:$4 sm:$0xff]   ;;  %v4556_v33 = vld [vmem:[%s5901_s0 + $0x1b4] ss:$12 sps:$4 sm:$0xff]  }
 0x5a8   :  { %2752 = vmatmul.mubr.bf16.gmra.mxu1 %v4505_v55  ;;  %v4553_v55 = vld [vmem:[%s5901_s0 + $0x1d0] ss:$12 sps:$4 sm:$0xff]  }
 0x5a9   :  { %2759 = vmatprep.mubr.bf16.mxu1 %v4506_v19  ;;  %v4555_v19 = vld [vmem:[%s5901_s0 + $0x1e8] ss:$12 sps:$4 sm:$0xff]  }
 0x5b0   :  { %2760 = vmatmul.mubr.bf16.gmra.mxu1 %v4507_v45  ;;  %v4155_v12 = vpop.f32.mrf.mxu0  ;;  %v4557_v45 = vld [vmem:[%s5901_s0 + $0x200] ss:$12 sps:$4 sm:$0xff]  }
 0x5b1   :  { %2767 = vmatprep.mubr.bf16.mxu1 %v4508_v15  ;;  %v4559_v15 = vld [vmem:[%s5901_s0 + $0x218] ss:$12 sps:$4 sm:$0xff]  }
 0x5b2   :  { %v2660_v16 = vpop.f32.mrf.mxu0 }
 0x5b4   :  { %v4156_v18 = vpop.f32.mrf.mxu0 }
 0x5b5   :  { %v2698_v20 = vpack.c.bf16 %v4156_v18, %v4155_v12  ;;  %v4558_v12 = vld [vmem:[%s5901_s0 + $0x1b0] ss:$12 sps:$4 sm:$0xff]  }
 0x5b6   :  { %v2663_v35 = vpop.f32.mrf.mxu0  ;;  %v4561_v18 = vld [vmem:[%s5901_s0 + $0x230] ss:$12 sps:$4 sm:$0xff]  }
 0x5b7   :  { %4157 = vmatprep.subr.bf16.mxu0 %v2698_v20  ;;  %v2697_v21 = vpack.c.bf16 %v2663_v35, %v2660_v16  ;;  %v4560_v16 = vld [vmem:[%s5901_s0 + $0x1cc] ss:$12 sps:$4 sm:$0xff]   ;;  %v4563_v35 = vld [vmem:[%s5901_s0 + $0x1e4] ss:$12 sps:$4 sm:$0xff]  }
 0x5b8   :  { %2768 = vmatmul.mubr.bf16.gmra.mxu1 %v4509_v17  ;;  %4158 = vmatpush3.bf16.msra.mxu0 %v2698_v20  ;;  %v4562_v20 = vld [vmem:[%s5901_s0 + $0x1c8] ss:$12 sps:$4 sm:$0xff]  }
 0x5b9   :  { %4159 = vmatprep.subr.bf16.mxu0 %v2697_v21  ;;  %2775 = vmatprep.mubr.bf16.mxu1 %v4510_v22  ;;  %v4565_v17 = vld [vmem:[%s5901_s0 + $0x1fc] ss:$12 sps:$4 sm:$0xff]   ;;  %v4567_v22 = vld [vmem:[%s5901_s0 + $0x214] ss:$12 sps:$4 sm:$0xff]  }
 0x5bc   :  { %4160 = vmatpush3.bf16.msra.mxu0 %v2697_v21  ;;  %v4564_v21 = vld [vmem:[%s5901_s0 + $0x1e0] ss:$12 sps:$4 sm:$0xff]  }
 0x5bd   :  { %4161 = vmatprep.subr.bf16.mxu0 %v2696_v23 }
 0x5c0   :  { %2776 = vmatmul.mubr.bf16.gmra.mxu1 %v4511_v26  ;;  %4162 = vmatpush3.bf16.msra.mxu0 %v2696_v23  ;;  %v4566_v23 = vld [vmem:[%s5901_s0 + $0x1f8] ss:$12 sps:$4 sm:$0xff]  }
 0x5c1   :  { %4163 = vmatprep.subr.bf16.mxu0 %v2695_v25  ;;  %2783 = vmatprep.mubr.bf16.mxu1 %v4512_v61  ;;  %v4569_v26 = vld [vmem:[%s5901_s0 + $0x22c] ss:$12 sps:$4 sm:$0xff]   ;;  %v4570_v61 = vld [vmem:[%s5901_s0 + $0x228] ss:$12 sps:$4 sm:$0xff]  }
 0x5c4   :  { %4164 = vmatpush3.bf16.msra.mxu0 %v2695_v25  ;;  %v4568_v25 = vld [vmem:[%s5901_s0 + $0x210] ss:$12 sps:$4 sm:$0xff]  }
 0x5c5   :  { %4165 = vmatprep.subr.bf16.mxu0 %v2694_v27 }
 0x5c8   :  { %2784 = vmatmul.mubr.bf16.gmra.mxu1 %v4513_v28  ;;  %4166 = vmatpush3.bf16.msra.mxu0 %v2694_v27 }
 0x5c9   :  { %4167 = vmatprep.subr.bf16.mxu0 %v2693_v24  ;;  %2791 = vmatprep.mubr.bf16.mxu1 %v4514_v29 }
 0x5cc   :  { %4168 = vmatpush3.bf16.msra.mxu0 %v2693_v24 }
 0x5cd   :  { %4169 = vmatprep.subr.bf16.mxu0 %v2692_v30 }
 0x5d0   :  { %2792 = vmatmul.mubr.bf16.gmra.mxu1 %v4515_v31  ;;  %4170 = vmatpush3.bf16.msra.mxu0 %v2692_v30 }
 0x5d1   :  { %4171 = vmatprep.subr.bf16.mxu0 %v2691_v1  ;;  %2799 = vmatprep.mubr.bf16.mxu1 %v4516_v34 }
 0x5d4   :  { %4172 = vmatpush3.bf16.msra.mxu0 %v2691_v1 }
 0x5d7   :  { %4174 = vmatmul.mubr.bf16.vlgmr.msra.gmra.mxu0 %v4517_v53 }
 0x5d8   :  { %2800 = vmatmul.mubr.bf16.gmra.mxu1 %v4518_v63  ;;  %4177 = vmatprep.mubr.bf16.mxu0 %v4519_v36 }
 0x5d9   :  { %2807 = vmatprep.mubr.bf16.mxu1 %v4520_v37 }
 0x5df   :  { %4178 = vmatmul.mubr.bf16.gmra.mxu0 %v4521_v38 }
 0x5e0   :  { %2808 = vmatmul.mubr.bf16.gmra.mxu1 %v4522_v39  ;;  %4181 = vmatprep.mubr.bf16.mxu0 %v4523_v3 }
 0x5e1   :  { %2815 = vmatprep.mubr.bf16.mxu1 %v4524_v40 }
 0x5e7   :  { %4182 = vmatmul.mubr.bf16.gmra.mxu0 %v4525_v41 }
 0x5e8   :  { %2816 = vmatmul.mubr.bf16.gmra.mxu1 %v4526_v11  ;;  %4185 = vmatprep.mubr.bf16.mxu0 %v4527_v42 }
 0x5e9   :  { %2823 = vmatprep.mubr.bf16.mxu1 %v4528_v43 }
 0x5ef   :  { %4186 = vmatmul.mubr.bf16.gmra.mxu0 %v4529_v44 }
 0x5f0   :  { %2824 = vmatmul.mubr.bf16.gmra.mxu1 %v4530_v46  ;;  %4189 = vmatprep.mubr.bf16.mxu0 %v4531_v47 }
 0x5f1   :  { %2831 = vmatprep.mubr.bf16.mxu1 %v4532_v5 }
 0x5f7   :  { %4190 = vmatmul.mubr.bf16.gmra.mxu0 %v4533_v13 }
 0x5f8   :  { %2832 = vmatmul.mubr.bf16.gmra.mxu1 %v4534_v49  ;;  %4193 = vmatprep.mubr.bf16.mxu0 %v4535_v50 }
 0x5f9   :  { %2839 = vmatprep.mubr.bf16.mxu1 %v4536_v51  ;;  %v2400_v51 = vld [vmem:[%s5903_s5 + $0x40] sm:$0x1] }
 0x5ff   :  { %4194 = vmatmul.mubr.bf16.gmra.mxu0 %v4537_v52 }
 0x600   :  { %2840 = vmatmul.mubr.bf16.gmra.mxu1 %v4538_v10  ;;  %4197 = vmatprep.mubr.bf16.mxu0 %v4539_v54  ;;  %v2401_v10 = vunpack.c.l.bf16 %v2400_v51 }
 0x601   :  { %2847 = vmatprep.mubr.bf16.mxu1 %v4540_v48 }
 0x607   :  { %4198 = vmatmul.mubr.bf16.gmra.mxu0 %v4541_v56  ;;  %v5677_v56 = vrot.slane %v2401_v10, %v5004_v14 }
 0x608   :  { %2848 = vmatmul.mubr.bf16.gmra.mxu1 %v4542_v8  ;;  %4201 = vmatprep.mubr.bf16.mxu0 %v4543_v60  ;;  %v4410_v60 = vld [vmem:[%s5904_s2 + $0x4] ss:$12 sps:$4 sm:$0xff]  }
 0x609   :  { %2855 = vmatprep.mubr.bf16.mxu1 %v4544_v59 }
 0x60f   :  { %4202 = vmatmul.mubr.bf16.gmra.mxu0 %v4545_v62 }
 0x610   :  { %2856 = vmatmul.mubr.bf16.gmra.mxu1 %v4546_v0  ;;  %4205 = vmatprep.mubr.bf16.mxu0 %v4547_v2 }
 0x611   :  { %2863 = vmatprep.mubr.bf16.mxu1 %v4548_v58 }
 0x617   :  { %4206 = vmatmul.mubr.bf16.gmra.mxu0 %v4549_v32 }
 0x618   :  { %2864 = vmatmul.mubr.bf16.gmra.mxu1 %v4550_v4  ;;  %4209 = vmatprep.mubr.bf16.mxu0 %v4551_v57 }
 0x619   :  { %2871 = vmatprep.mubr.bf16.mxu1 %v4552_v6 }
 0x61f   :  { %4210 = vmatmul.mubr.bf16.gmra.mxu0 %v4553_v55 }
 0x620   :  { %2872 = vmatmul.mubr.bf16.gmra.mxu1 %v4554_v9  ;;  %4213 = vmatprep.mubr.bf16.mxu0 %v4555_v19 }
 0x621   :  { %2879 = vmatprep.mubr.bf16.mxu1 %v4556_v33 }
 0x627   :  { %4214 = vmatmul.mubr.bf16.gmra.mxu0 %v4557_v45 }
 0x628   :  { %2880 = vmatmul.mubr.bf16.gmra.mxu1 %v4558_v12  ;;  %4217 = vmatprep.mubr.bf16.mxu0 %v4559_v15  ;;  %v4572_v12 = vmov 0.0  }
 0x629   :  { %2887 = vmatprep.mubr.bf16.mxu1 %v4560_v16  ;;  %4241 = vmatprep.subr.bf16.mxu1 %v4572_v12 }
 0x62f   :  { %4218 = vmatmul.mubr.bf16.gmra.mxu0 %v4561_v18 }
 0x630   :  { %2888 = vmatmul.mubr.bf16.gmra.mxu1 %v4562_v20  ;;  %3277 = vmatprep.mubr.bf16.mxu0 %v4410_v60 }
 0x631   :  { %2895 = vmatprep.mubr.bf16.mxu1 %v4563_v35 }
 0x638   :  { %2896 = vmatmul.mubr.bf16.gmra.mxu1 %v4564_v21 }
 0x639   :  { %2903 = vmatprep.mubr.bf16.mxu1 %v4565_v17 }
 0x640   :  { %2904 = vmatmul.mubr.bf16.gmra.mxu1 %v4566_v23 }
 0x641   :  { %2911 = vmatprep.mubr.bf16.mxu1 %v4567_v22 }
 0x648   :  { %2912 = vmatmul.mubr.bf16.gmra.mxu1 %v4568_v25 }
 0x649   :  { %2919 = vmatprep.mubr.bf16.mxu1 %v4569_v26 }
 0x650   :  { %2920 = vmatmul.mubr.bf16.gmra.mxu1 %v4570_v61 }
 0x651   :  { %4257 = vmatprep.mubr.msk.bf16.mxu1 %vm4573_vm0, %v4572_v12 }
 0x658   :  { %v2737_v27 = vpop.f32.mrf.mxu1 }
 0x659   :  { %v2738_v2 = vadd.f32 %v2737_v27, %v5677_v56 }
 0x65a   :  { %v2739_v24 = vpop.f32.mrf.mxu1 }
 0x65c   :  { %v2740_v28 = vpop.f32.mrf.mxu1 }
 0x65d   :  { %v2741_v19 = vadd.f32 %v2740_v28, %v5677_v56 }
 0x65e   :  { %v2742_v29 = vpop.f32.mrf.mxu1 }
 0x660   :  { %v2745_v30 = vpop.f32.mrf.mxu1 }
 0x661   :  { %v2746_v59 = vadd.f32 %v2745_v30, %v5677_v56 }
 0x662   :  { %v2747_v1 = vpop.f32.mrf.mxu1 }
 0x664   :  { %v2748_v31 = vpop.f32.mrf.mxu1 }
 0x665   :  { %v2749_v57 = vadd.f32 %v2748_v31, %v5677_v56 }
 0x666   :  { %v2750_v34 = vpop.f32.mrf.mxu1 }
 0x668   :  { %v2753_v53 = vpop.f32.mrf.mxu1 }
 0x669   :  { %v2754_v17 = vadd.f32 %v2753_v53, %v5677_v56 }
 0x66a   :  { %v2755_v63 = vpop.f32.mrf.mxu1 }
 0x66c   :  { %v2756_v36 = vpop.f32.mrf.mxu1 }
 0x66d   :  { %v2757_v34 = vadd.f32 %v2756_v36, %v5677_v56 }
 0x66e   :  { %v2758_v37 = vpop.f32.mrf.mxu1 }
 0x670   :  { %v2761_v38 = vpop.f32.mrf.mxu1 }
 0x671   :  { %v2762_v16 = vadd.f32 %v2761_v38, %v5677_v56 }
 0x672   :  { %v2763_v39 = vpop.f32.mrf.mxu1 }
 0x674   :  { %v2764_v3 = vpop.f32.mrf.mxu1 }
 0x675   :  { %v2765_v28 = vadd.f32 %v2764_v3, %v5677_v56 }
 0x676   :  { %v2766_v40 = vpop.f32.mrf.mxu1 }
 0x678   :  { %v5661_v41 = vpop.f32.mrf.mxu1 }
 0x679   :  { %v2770_v36 = vadd.f32 %v5661_v41, %v5677_v56 }
 0x67a   :  { %v2771_v11 = vpop.f32.mrf.mxu1 }
 0x67c   :  { %v5663_v42 = vpop.f32.mrf.mxu1 }
 0x67e   :  { %v2774_v43 = vpop.f32.mrf.mxu1 }
 0x680   :  { %v2777_v44 = vpop.f32.mrf.mxu1 }
 0x682   :  { %v2779_v46 = vpop.f32.mrf.mxu1 }
 0x683   :  { %v2778_v46 = vadd.f32 %v2777_v44, %v5677_v56  ;;  %v2773_v44 = vadd.f32 %v5663_v42, %v5677_v56 }
 0x684   :  { %v5665_v47 = vpop.f32.mrf.mxu1 }
 0x685   :  { %v2781_v10 = vadd.f32 %v5665_v47, %v5677_v56 }
 0x686   :  { %v2782_v5 = vpop.f32.mrf.mxu1 }
 0x688   :  { %v5667_v13 = vpop.f32.mrf.mxu1 }
 0x68a   :  { %v2787_v49 = vpop.f32.mrf.mxu1 }
 0x68c   :  { %v5669_v50 = vpop.f32.mrf.mxu1 }
 0x68e   :  { %v2790_v52 = vpop.f32.mrf.mxu1 }
 0x690   :  { %v5674_v54 = vpop.f32.mrf.mxu1 }
 0x691   :  { %v2794_v47 = vadd.f32 %v5674_v54, %v5677_v56  ;;  %v2789_v54 = vadd.f32 %v5669_v50, %v5677_v56 }
 0x692   :  { %v2795_v48 = vpop.f32.mrf.mxu1 }
 0x694   :  { %v5679_v8 = vpop.f32.mrf.mxu1 }
 0x696   :  { %v2798_v62 = vpop.f32.mrf.mxu1 }
 0x697   :  { %v4175_v0 = vpop.f32.mrf.mxu0 }
 0x698   :  { %v5686_v58 = vpop.f32.mrf.mxu1  ;;  %v2971_v32 = vadd.f32 %v4175_v0, %v2746_v59 }
 0x699   :  { %v2962_v4 = vpop.f32.mrf.mxu0  ;;  %v2802_v50 = vadd.f32 %v5686_v58, %v5677_v56  ;;  %v4412_v58 = vld [vmem:[%s5905_s6 + $0x38] sm:$0xff]  }
 0x69a   :  { %v2803_v6 = vpop.f32.mrf.mxu1  ;;  %v2963_v55 = vadd.f32 %v2962_v4, %v2738_v2  ;;  %v3155_v18 = vmax.f32 %v2971_v32, 0.0  ;;  %4242 = vmatpush3.bf16.msra.mxu1 %v4412_v58 }
 0x69b   :  { %v4176_v9 = vpop.f32.mrf.mxu0  ;;  %4243 = vmatprep.subr.bf16.mxu1 %v4572_v12 }
 0x69c   :  { %v5690_v33 = vpop.f32.mrf.mxu1  ;;  %v2974_v45 = vadd.f32 %v4176_v9, %v2749_v57  ;;  %v3153_v22 = vmax.f32 %v2963_v55, 0.0 }
 0x69d   :  { %v2965_v15 = vpop.f32.mrf.mxu0 }
 0x69e   :  { %v2806_v20 = vpop.f32.mrf.mxu1  ;;  %v3156_v35 = vmax.f32 %v2974_v45, 0.0  ;;  %v2966_v21 = vadd.f32 %v2965_v15, %v2741_v19 }
 0x69f   :  { %v4179_v23 = vpop.f32.mrf.mxu0  ;;  %v2797_v20 = vadd.f32 %v5679_v8, %v5677_v56 }
 0x6a0   :  { %v5695_v25 = vpack.c.bf16 %v3156_v35, %v3155_v18  ;;  %v2809_v26 = vpop.f32.mrf.mxu1  ;;  %v3154_v61 = vmax.f32 %v2966_v21, 0.0  ;;  %v2987_v27 = vadd.f32 %v4179_v23, %v2762_v16  ;;  %v2786_v18 = vadd.f32 %v5667_v13, %v5677_v56 }
 0x6a1   :  { %v2978_v24 = vpop.f32.mrf.mxu0  ;;  %v2810_v8 = vadd.f32 %v2809_v26, %v5677_v56 }
 0x6a2   :  { %v5698_v29 = vpack.c.bf16 %v3154_v61, %v3153_v22  ;;  %v2811_v30 = vpop.f32.mrf.mxu1  ;;  %v2979_v1 = vadd.f32 %v2978_v24, %v2754_v17  ;;  %v3159_v38 = vmax.f32 %v2987_v27, 0.0 }
 0x6a3   :  { %v4180_v31 = vpop.f32.mrf.mxu0 }
 0x6a4   :  { %v2812_v63 = vpop.f32.mrf.mxu1  ;;  %v2990_v37 = vadd.f32 %v4180_v31, %v2765_v28  ;;  %v3157_v5 = vmax.f32 %v2979_v1, 0.0 }
 0x6a5   :  { %v2981_v53 = vpop.f32.mrf.mxu0 }
 0x6a6   :  { %v2814_v39 = vpop.f32.mrf.mxu1  ;;  %v3160_v40 = vmax.f32 %v2990_v37, 0.0  ;;  %v2982_v11 = vadd.f32 %v2981_v53, %v2757_v34 }
 0x6a7   :  { %v4183_v43 = vpop.f32.mrf.mxu0 }
 0x6a8   :  { %v5702_v49 = vpack.c.bf16 %v3160_v40, %v3159_v38  ;;  %v5704_v3 = vpop.f32.mrf.mxu1  ;;  %v3158_v51 = vmax.f32 %v2982_v11, 0.0  ;;  %v3003_v59 = vadd.f32 %v4183_v43, %v2778_v46  ;;  %v2813_v40 = vadd.f32 %v2812_v63, %v5677_v56 }
 0x6a9   :  { %v2994_v52 = vpop.f32.mrf.mxu0 }
 0x6aa   :  { %v5710_v48 = vpack.c.bf16 %v3158_v51, %v3157_v5  ;;  %v2819_v60 = vpop.f32.mrf.mxu1  ;;  %v2995_v2 = vadd.f32 %v2994_v52, %v2770_v36  ;;  %v3163_v57 = vmax.f32 %v3003_v59, 0.0  ;;  %v2805_v5 = vadd.f32 %v5690_v33, %v5677_v56  ;;  %v4413_v33 = vld [vmem:[%s5905_s6 + $0x30] sm:$0xff]  }
 0x6ab   :  { %v4184_v62 = vpop.f32.mrf.mxu0  ;;  %4244 = vmatpush3.bf16.msra.mxu1 %v4413_v33 }
 0x6ac   :  { %v5714_v0 = vpop.f32.mrf.mxu1  ;;  %v3006_v32 = vadd.f32 %v4184_v62, %v2781_v10  ;;  %v3161_v19 = vmax.f32 %v2995_v2, 0.0  ;;  %4245 = vmatprep.subr.bf16.mxu1 %v4572_v12 }
 0x6ad   :  { %v2997_v4 = vpop.f32.mrf.mxu0 }
 0x6ae   :  { %v2822_v6 = vpop.f32.mrf.mxu1  ;;  %v3164_v55 = vmax.f32 %v3006_v32, 0.0  ;;  %v2998_v41 = vadd.f32 %v2997_v4, %v2773_v44 }
 0x6af   :  { %v4187_v9 = vpop.f32.mrf.mxu0 }
 0x6b0   :  { %v5718_v45 = vpack.c.bf16 %v3164_v55, %v3163_v57  ;;  %v5720_v15 = vpop.f32.mrf.mxu1  ;;  %v3162_v16 = vmax.f32 %v2998_v41, 0.0  ;;  %v3019_v17 = vadd.f32 %v4187_v9, %v2794_v47  ;;  %v4414_v9 = vld [vmem:[%s5905_s6 + $0x28] sm:$0xff]  }
 0x6b1   :  { %v3010_v42 = vpop.f32.mrf.mxu0  ;;  %4246 = vmatpush3.bf16.msra.mxu1 %v4414_v9 }
 0x6b2   :  { %v5726_v35 = vpack.c.bf16 %v3162_v16, %v3161_v19  ;;  %v2827_v21 = vpop.f32.mrf.mxu1  ;;  %v3011_v61 = vadd.f32 %v3010_v42, %v2786_v18  ;;  %v3167_v28 = vmax.f32 %v3019_v17, 0.0  ;;  %4247 = vmatprep.subr.bf16.mxu1 %v4572_v12 }
 0x6b3   :  { %v4188_v23 = vpop.f32.mrf.mxu0 }
 0x6b4   :  { %v5730_v22 = vpop.f32.mrf.mxu1  ;;  %v3022_v27 = vadd.f32 %v4188_v23, %v2797_v20  ;;  %v3165_v34 = vmax.f32 %v3011_v61, 0.0 }
 0x6b5   :  { %v3013_v24 = vpop.f32.mrf.mxu0 }
 0x6b6   :  { %v2830_v30 = vpop.f32.mrf.mxu1  ;;  %v3168_v1 = vmax.f32 %v3022_v27, 0.0  ;;  %v3014_v13 = vadd.f32 %v3013_v24, %v2789_v54 }
 0x6b7   :  { %v4191_v31 = vpop.f32.mrf.mxu0 }
 0x6b8   :  { %v5733_v37 = vpack.c.bf16 %v3168_v1, %v3167_v28  ;;  %v5735_v53 = vpop.f32.mrf.mxu1  ;;  %v3166_v38 = vmax.f32 %v3014_v13, 0.0  ;;  %v3035_v46 = vadd.f32 %v4191_v31, %v2810_v8 }
 0x6b9   :  { %v3026_v39 = vpop.f32.mrf.mxu0 }
 0x6ba   :  { %v5740_v11 = vpack.c.bf16 %v3166_v38, %v3165_v34  ;;  %v2835_v43 = vpop.f32.mrf.mxu1  ;;  %v3027_v52 = vadd.f32 %v3026_v39, %v2802_v50  ;;  %v3171_v63 = vmax.f32 %v3035_v46, 0.0 }
 0x6bb   :  { %v4192_v26 = vpop.f32.mrf.mxu0 }
 0x6bc   :  { %v5746_v51 = vpop.f32.mrf.mxu1  ;;  %v3038_v36 = vadd.f32 %v4192_v26, %v2813_v40  ;;  %v3169_v2 = vmax.f32 %v3027_v52, 0.0 }
 0x6bd   :  { %v3029_v10 = vpop.f32.mrf.mxu0  ;;  %v2837_v9 = vadd.f32 %v5746_v51, %v5677_v56 }
 0x6be   :  { %v2838_v60 = vpop.f32.mrf.mxu1  ;;  %v3172_v59 = vmax.f32 %v3038_v36, 0.0  ;;  %v3030_v62 = vadd.f32 %v3029_v10, %v2805_v5 }
 0x6bf   :  { %v5751_v44 = vpop.f32.mrf.mxu0 }
 0x6c0   :  { %v5756_v32 = vpack.c.bf16 %v3172_v59, %v3171_v63  ;;  %v2841_v4 = vpop.f32.mrf.mxu1  ;;  %v3170_v57 = vmax.f32 %v3030_v62, 0.0 }
 0x6c1   :  { %v5759_v6 = vpop.f32.mrf.mxu0  ;;  %v2842_v10 = vadd.f32 %v2841_v4, %v5677_v56 }
 0x6c2   :  { %v5761_v55 = vpack.c.bf16 %v3170_v57, %v3169_v2  ;;  %v2843_v41 = vpop.f32.mrf.mxu1 }
 0x6c3   :  { %v5766_v47 = vpop.f32.mrf.mxu0 }
 0x6c4   :  { %v2844_v19 = vpop.f32.mrf.mxu1 }
 0x6c5   :  { %v5769_v16 = vpop.f32.mrf.mxu0  ;;  %v2845_v43 = vadd.f32 %v2844_v19, %v5677_v56 }
 0x6c6   :  { %v2846_v42 = vpop.f32.mrf.mxu1 }
 0x6c7   :  { %v4199_v18 = vpop.f32.mrf.mxu0 }
 0x6c8   :  { %v2849_v20 = vpop.f32.mrf.mxu1  ;;  %v3067_v57 = vadd.f32 %v4199_v18, %v2842_v10  ;;  %v2829_v18 = vadd.f32 %v5730_v22, %v5677_v56 }
 0x6c9   :  { %v3058_v21 = vpop.f32.mrf.mxu0  ;;  %v2850_v38 = vadd.f32 %v2849_v20, %v5677_v56 }
 0x6ca   :  { %v2851_v17 = vpop.f32.mrf.mxu1 }
 0x6cb   :  { %v4200_v23 = vpop.f32.mrf.mxu0  ;;  %v2834_v17 = vadd.f32 %v5735_v53, %v5677_v56  ;;  %v2826_v53 = vadd.f32 %v5720_v15, %v5677_v56 }
 0x6cc   :  { %v2852_v54 = vpop.f32.mrf.mxu1  ;;  %v3070_v58 = vadd.f32 %v4200_v23, %v2845_v43 }
 0x6cd   :  { %v3061_v61 = vpop.f32.mrf.mxu0  ;;  %v2853_v8 = vadd.f32 %v2852_v54, %v5677_v56 }
 0x6ce   :  { %v2854_v27 = vpop.f32.mrf.mxu1  ;;  %v3180_v4 = vmax.f32 %v3070_v58, 0.0  ;;  %v3062_v54 = vadd.f32 %v3061_v61, %v2837_v9  ;;  %v3054_v61 = vadd.f32 %v5766_v47, %v2829_v18  ;;  %v2818_v47 = vadd.f32 %v5704_v3, %v5677_v56 }
 0x6cf   :  { %v4203_v24 = vpop.f32.mrf.mxu0 }
 0x6d0   :  { %v2857_v28 = vpop.f32.mrf.mxu1 }
 0x6d1   :  { %v2858_v30 = vadd.f32 %v2857_v28, %v5677_v56  ;;  %v3074_v1 = vpop.f32.mrf.mxu0 }
 0x6d2   :  { %v2859_v13 = vpop.f32.mrf.mxu1  ;;  %v3075_v5 = vadd.f32 %v3074_v1, %v2850_v38  ;;  %v3179_v1 = vmax.f32 %v3067_v57, 0.0  ;;  %v3178_v38 = vmax.f32 %v3062_v54, 0.0 }
 0x6d3   :  { %v4204_v31 = vpop.f32.mrf.mxu0  ;;  %v3083_v39 = vadd.f32 %v4203_v24, %v2858_v30  ;;  %v3059_v13 = vadd.f32 %v3058_v21, %v2834_v17  ;;  %v3051_v21 = vadd.f32 %v5751_v44, %v2826_v53  ;;  %v3043_v44 = vadd.f32 %v5759_v6, %v2818_v47 }
 0x6d4   :  { %v2860_v34 = vpop.f32.mrf.mxu1  ;;  %v3181_v19 = vmax.f32 %v3075_v5, 0.0 }
 0x6d5   :  { %v2861_v50 = vadd.f32 %v2860_v34, %v5677_v56  ;;  %v3077_v40 = vpop.f32.mrf.mxu0  ;;  %v3183_v60 = vmax.f32 %v3083_v39, 0.0  ;;  %v3177_v43 = vmax.f32 %v3059_v13, 0.0 }
 0x6d6   :  { %v2862_v46 = vpop.f32.mrf.mxu1  ;;  %v3078_v26 = vadd.f32 %v3077_v40, %v2853_v8  ;;  %v3214_v8 = vpack.c.bf16 %v3180_v4, %v3179_v1 }
 0x6d7   :  { %v3086_v52 = vadd.f32 %v4204_v31, %v2861_v50  ;;  %v4207_v36 = vpop.f32.mrf.mxu0  ;;  %v3176_v46 = vmax.f32 %v3054_v61, 0.0 }
 0x6d8   :  { %v2865_v63 = vpop.f32.mrf.mxu1  ;;  %v3182_v33 = vmax.f32 %v3078_v26, 0.0 }
 0x6d9   :  { %v3184_v59 = vmax.f32 %v3086_v52, 0.0  ;;  %v2866_v62 = vadd.f32 %v2865_v63, %v5677_v56  ;;  %v3090_v2 = vpop.f32.mrf.mxu0  ;;  %v3213_v52 = vpack.c.bf16 %v3178_v38, %v3177_v43 }
 0x6da   :  { %v2867_v41 = vpop.f32.mrf.mxu1  ;;  %v3215_v27 = vpack.c.bf16 %v3182_v33, %v3181_v19 }
 0x6db   :  { %v3216_v42 = vpack.c.bf16 %v3184_v59, %v3183_v60  ;;  %v4208_v20 = vpop.f32.mrf.mxu0  ;;  %v3091_v28 = vadd.f32 %v3090_v2, %v2866_v62 }
 0x6dc   :  { %v2868_v23 = vpop.f32.mrf.mxu1 }
 0x6dd   :  { %v2869_v24 = vadd.f32 %v2868_v23, %v5677_v56  ;;  %3797 = vmatprep.subr.bf16.mxu0 %v3216_v42  ;;  %v3093_v30 = vpop.f32.mrf.mxu0  ;;  %v3185_v50 = vmax.f32 %v3091_v28, 0.0  ;;  %v4408_v23 = vld [vmem:[%s5904_s2] ss:$12 sps:$4 sm:$0xff]  }
 0x6de   :  { %v2870_v51 = vpop.f32.mrf.mxu1  ;;  %3798 = vmatpush3.bf16.msra.mxu0 %v5733_v37  ;;  %v2821_v37 = vadd.f32 %v5714_v0, %v5677_v56  ;;  %v3175_v0 = vmax.f32 %v3051_v21, 0.0 }
 0x6df   :  { %3799 = vmatprep.subr.bf16.mxu0 %v3215_v27  ;;  %v3094_v31 = vadd.f32 %v3093_v30, %v2869_v24 }
 0x6e0   :  { %v2873_v34 = vpop.f32.mrf.mxu1  ;;  %v3046_v5 = vadd.f32 %v5769_v16, %v2821_v37  ;;  %v3212_v59 = vpack.c.bf16 %v3176_v46, %v3175_v0  ;;  %v3173_v16 = vmax.f32 %v3043_v44, 0.0 }
 0x6e1   :  { %v2874_v39 = vadd.f32 %v2873_v34, %v5677_v56  ;;  %v3186_v40 = vmax.f32 %v3094_v31, 0.0 }
 0x6e2   :  { %v2875_v22 = vpop.f32.mrf.mxu1  ;;  %3800 = vmatpush3.bf16.msra.mxu0 %v5740_v11  ;;  %v3174_v3 = vmax.f32 %v3046_v5, 0.0 }
 0x6e3   :  { %3801 = vmatprep.subr.bf16.mxu0 %v3214_v8  ;;  %v5795_v15 = vpack.c.bf16 %v3186_v40, %v3185_v50  ;;  %v3099_v11 = vadd.f32 %v4207_v36, %v2874_v39 }
 0x6e4   :  { %v2876_v26 = vpop.f32.mrf.mxu1  ;;  %v3211_v6 = vpack.c.bf16 %v3174_v3, %v3173_v16 }
 0x6e5   :  { %v2877_v10 = vadd.f32 %v2876_v26, %v5677_v56  ;;  %v3187_v62 = vmax.f32 %v3099_v11, 0.0 }
 0x6e6   :  { %v2878_v58 = vpop.f32.mrf.mxu1  ;;  %3802 = vmatpush3.bf16.msra.mxu0 %v5718_v45  ;;  %v5810_v45 = vpop.f32.mrf.mxu0 }
 0x6e7   :  { %3803 = vmatprep.subr.bf16.mxu0 %v3213_v52  ;;  %v3102_v63 = vadd.f32 %v4208_v20, %v2877_v10 }
 0x6e8   :  { %v5803_v60 = vpop.f32.mrf.mxu1  ;;  %v5815_v19 = vpop.f32.mrf.mxu0 }
 0x6e9   :  { %v3188_v33 = vmax.f32 %v3102_v63, 0.0 }
 0x6ea   :  { %v2883_v2 = vpop.f32.mrf.mxu1  ;;  %3804 = vmatpush3.bf16.msra.mxu0 %v5726_v35  ;;  %v5819_v20 = vpop.f32.mrf.mxu0 }
 0x6eb   :  { %3805 = vmatprep.subr.bf16.mxu0 %v3212_v59  ;;  %v5806_v36 = vpack.c.bf16 %v3188_v33, %v3187_v62 }
 0x6ec   :  { %v5808_v57 = vpop.f32.mrf.mxu1 }
 0x6ee   :  { %v2886_v41 = vpop.f32.mrf.mxu1  ;;  %3806 = vmatpush3.bf16.msra.mxu0 %v5702_v49  ;;  %v5823_v49 = vpop.f32.mrf.mxu0 }
 0x6ef   :  { %3807 = vmatprep.subr.bf16.mxu0 %v3211_v6 }
 0x6f0   :  { %v5813_v9 = vpop.f32.mrf.mxu1 }
 0x6f2   :  { %v2891_v42 = vpop.f32.mrf.mxu1  ;;  %3808 = vmatpush3.bf16.msra.mxu0 %v5710_v48  ;;  %v4215_v48 = vpop.f32.mrf.mxu0 }
 0x6f3   :  { %3809 = vmatprep.subr.bf16.mxu0 %v5756_v32  ;;  %v2890_v42 = vadd.f32 %v5813_v9, %v5677_v56 }
 0x6f4   :  { %v2892_v35 = vpop.f32.mrf.mxu1  ;;  %v3122_v24 = vpop.f32.mrf.mxu0 }
 0x6f5   :  { %v2893_v2 = vadd.f32 %v2892_v35, %v5677_v56  ;;  %v2882_v35 = vadd.f32 %v5803_v60, %v5677_v56  ;;  %v4411_v60 = vld [vmem:[%s5904_s2 + $0x8] ss:$12 sps:$4 sm:$0xff]  }
 0x6f6   :  { %v2894_v17 = vpop.f32.mrf.mxu1  ;;  %3810 = vmatpush3.bf16.msra.mxu0 %v5695_v25  ;;  %v4216_v28 = vpop.f32.mrf.mxu0 }
 0x6f7   :  { %3811 = vmatprep.subr.bf16.mxu0 %v5761_v55 }
 0x6f8   :  { %v2897_v4 = vpop.f32.mrf.mxu1  ;;  %v3125_v1 = vpop.f32.mrf.mxu0 }
 0x6f9   :  { %v2898_v3 = vadd.f32 %v2897_v4, %v5677_v56  ;;  %v2885_v4 = vadd.f32 %v5808_v57, %v5677_v56  ;;  %v3107_v57 = vadd.f32 %v5815_v19, %v2882_v35  ;;  %v4417_v19 = vld [vmem:[%s5905_s6 + $0x10] sm:$0xff]  }
 0x6fa   :  { %v2899_v54 = vpop.f32.mrf.mxu1  ;;  %3812 = vmatpush3.bf16.msra.mxu0 %v5698_v29  ;;  %v4219_v13 = vpop.f32.mrf.mxu0 }
 0x6fb   :  { %4221 = vmatprep.subr.bf16.mxu0 %v4572_v12  ;;  %v3118_v54 = vadd.f32 %v5819_v20, %v2893_v2 }
 0x6fc   :  { %v2900_v32 = vpop.f32.mrf.mxu1  ;;  %v3138_v53 = vpop.f32.mrf.mxu0 }
 0x6fd   :  { %3278 = vmatmul.mubr.bf16.vlgmr.msra.gmra.mxu0 %v4408_v23  ;;  %v2901_v0 = vadd.f32 %v2900_v32, %v5677_v56  ;;  %v3123_v23 = vadd.f32 %v3122_v24, %v2898_v3  ;;  %v3192_v9 = vmax.f32 %v3118_v54, 0.0  ;;  %v3110_v24 = vadd.f32 %v5823_v49, %v2885_v4  ;;  %v4419_v49 = vld [vmem:[%s5905_s6] sm:$0xff]  }
 0x6fe   :  { %v2902_v27 = vpop.f32.mrf.mxu1  ;;  %4237 = vmatprep.mubr.msk.bf16.mxu0 %vm4573_vm0, %v4572_v12  ;;  %v4220_v34 = vpop.f32.mrf.mxu0 }
 0x6ff   :  { %v3126_v6 = vadd.f32 %v3125_v1, %v2901_v0  ;;  %v3115_v27 = vadd.f32 %v5810_v45, %v2890_v42  ;;  %v4415_v45 = vld [vmem:[%s5905_s6 + $0x20] sm:$0xff]  }
 0x700   :  { %v2905_v25 = vpop.f32.mrf.mxu1  ;;  %v3141_v22 = vpop.f32.mrf.mxu0  ;;  %4248 = vmatpush3.bf16.msra.mxu1 %v4415_v45 }
 0x701   :  { %v2906_v52 = vadd.f32 %v2905_v25, %v5677_v56  ;;  %v3194_v32 = vmax.f32 %v3126_v6, 0.0  ;;  %v3193_v25 = vmax.f32 %v3123_v23, 0.0  ;;  %4249 = vmatprep.subr.bf16.mxu1 %v4572_v12 }
 0x702   :  { %v2907_v55 = vpop.f32.mrf.mxu1 }
 0x703   :  { %v3131_v62 = vadd.f32 %v4215_v48, %v2906_v52  ;;  %v3221_v55 = vpack.c.bf16 %v3194_v32, %v3193_v25 }
 0x704   :  { %v2908_v30 = vpop.f32.mrf.mxu1 }
 0x705   :  { %v2909_v46 = vadd.f32 %v2908_v30, %v5677_v56  ;;  %v3195_v17 = vmax.f32 %v3131_v62, 0.0  ;;  %v3190_v30 = vmax.f32 %v3110_v24, 0.0 }
 0x706   :  { %v2910_v18 = vpop.f32.mrf.mxu1 }
 0x707   :  { %v3134_v44 = vadd.f32 %v4216_v28, %v2909_v46  ;;  %v3191_v28 = vmax.f32 %v3115_v27, 0.0  ;;  %v3189_v18 = vmax.f32 %v3107_v57, 0.0  ;;  %v3444_v46 = vand.u32 127, %v633_v7 }
 0x708   :  { %v2913_v51 = vpop.f32.mrf.mxu1 }
 0x709   :  { %v2914_v37 = vadd.f32 %v2913_v51, %v5677_v56  ;;  %v3196_v16 = vmax.f32 %v3134_v44, 0.0  ;;  %v3220_v20 = vpack.c.bf16 %v3192_v9, %v3191_v28  ;;  %vm3445_vm1 = vcmp.lt.s32.totalorder %v3444_v46, 2 }
 0x70a   :  { %v2915_v31 = vpop.f32.mrf.mxu1 }
 0x70b   :  { %v3139_v11 = vadd.f32 %v3138_v53, %v2914_v37  ;;  %v3222_v48 = vpack.c.bf16 %v3196_v16, %v3195_v17 }
 0x70c   :  { %v2916_v29 = vpop.f32.mrf.mxu1 }
 0x70d   :  { %v2917_v50 = vadd.f32 %v2916_v29, %v5677_v56  ;;  %v3197_v33 = vmax.f32 %v3139_v11, 0.0 }
 0x70e   :  { %v2918_v61 = vpop.f32.mrf.mxu1 }
 0x70f   :  { %v3142_v5 = vadd.f32 %v3141_v22, %v2917_v50 }
 0x710   :  { %v2921_v8 = vpop.f32.mrf.mxu1 }
 0x711   :  { %v2922_v38 = vadd.f32 %v2921_v8, %v5677_v56  ;;  %v3198_v59 = vmax.f32 %v3142_v5, 0.0 }
 0x712   :  { %v2923_v39 = vpop.f32.mrf.mxu1 }
 0x713   :  { %v3147_v21 = vadd.f32 %v4219_v13, %v2922_v38  ;;  %v3223_v41 = vpack.c.bf16 %v3198_v59, %v3197_v33  ;;  %v3327_v38 = vld [vmem:[%s5906_s7] sm:$0xff] }
 0x714   :  { %v2924_v40 = vpop.f32.mrf.mxu1 }
 0x715   :  { %v2925_v43 = vadd.f32 %v2924_v40, %v5677_v56  ;;  %v3199_v10 = vmax.f32 %v3147_v21, 0.0  ;;  %v3219_v56 = vpack.c.bf16 %v3190_v30, %v3189_v18 }
 0x716   :  { %v2926_v47 = vpop.f32.mrf.mxu1 }
 0x717   :  { %v3150_v26 = vadd.f32 %v4220_v34, %v2925_v43  ;;  %v3347_v43 = vld [vmem:[%s5905_s6 + $0x40] sm:$0x1] }
 0x718   :  { %v3348_v47 = vunpack.c.l.bf16 %v3347_v43 }
 0x719   :  { %v3200_v58 = vmax.f32 %v3150_v26, 0.0 }
 0x71a   :  { %v3353_v26 = vrot.slane %v3348_v47, %v5004_v14 }
 0x71b   :  { %v3224_v63 = vpack.c.bf16 %v3200_v58, %v3199_v10 }
 0x71d   :  { %4222 = vmatpush3.bf16.msra.mxu0 %v3224_v63 }
 0x71e   :  { %4223 = vmatprep.subr.bf16.mxu0 %v4572_v12 }
 0x721   :  { %4224 = vmatpush3.bf16.msra.mxu0 %v3223_v41 }
 0x722   :  { %4225 = vmatprep.subr.bf16.mxu0 %v4572_v12 }
 0x725   :  { %4226 = vmatpush3.bf16.msra.mxu0 %v3222_v48 }
 0x726   :  { %4227 = vmatprep.subr.bf16.mxu0 %v4572_v12 }
 0x729   :  { %4228 = vmatpush3.bf16.msra.mxu0 %v3221_v55 }
 0x72a   :  { %4229 = vmatprep.subr.bf16.mxu0 %v4572_v12 }
 0x72d   :  { %4230 = vmatpush3.bf16.msra.mxu0 %v3220_v20 }
 0x72e   :  { %4231 = vmatprep.subr.bf16.mxu0 %v4572_v12 }
 0x731   :  { %4232 = vmatpush3.bf16.msra.mxu0 %v3219_v56 }
 0x732   :  { %4233 = vmatprep.subr.bf16.mxu0 %v4572_v12 }
 0x735   :  { %4234 = vmatpush3.bf16.msra.mxu0 %v5806_v36  ;;  %v4416_v36 = vld [vmem:[%s5905_s6 + $0x18] sm:$0xff]  }
 0x736   :  { %4235 = vmatprep.subr.bf16.mxu0 %v4572_v12  ;;  %4250 = vmatpush3.bf16.msra.mxu1 %v4416_v36 }
 0x737   :  { %4251 = vmatprep.subr.bf16.mxu1 %v4572_v12 }
 0x739   :  { %4236 = vmatpush3.bf16.msra.mxu0 %v5795_v15  ;;  %v4418_v15 = vld [vmem:[%s5905_s6 + $0x8] sm:$0xff]  }
 0x73a   :  { %4252 = vmatpush3.bf16.msra.mxu1 %v4417_v19 }
 0x73b   :  { %4253 = vmatprep.subr.bf16.mxu1 %v4572_v12 }
 0x73c   :  { %4238 = vmatmul.mubr.bf16.vlgmr.msra.gmra.mxu0 %v4411_v60 }
 0x73e   :  { %4254 = vmatpush3.bf16.msra.mxu1 %v4418_v15 }
 0x73f   :  { %4255 = vmatprep.subr.bf16.mxu1 %v4572_v12  ;;  %v3328_v12 = vld [vmem:[%s5906_s7 + $0x8] sm:$0xff] }
 0x742   :  { %4256 = vmatpush3.bf16.msra.mxu1 %v4419_v49 }
 0x7bd   :  { %v3813_v1 = vpop.f32.mrf.mxu0 }
 0x7bf   :  { %v3814_v51 = vpop.f32.mrf.mxu0 }
 0x7c0   :  { %v3815_v53 = vadd.f32 %v3814_v51, %v3813_v1 }
 0x7c1   :  { %v3816_v13 = vpop.f32.mrf.mxu0 }
 0x7c3   :  { %v3817_v31 = vpop.f32.mrf.mxu0 }
 0x7c4   :  { %v3818_v8 = vadd.f32 %v3817_v31, %v3816_v13 }
 0x7fc   :  { %v3320_v29 = vpop.f32.mrf.mxu0 }
 0x7fd   :  { %v3321_v34 = vadd.f32 %v3815_v53, %v3320_v29 }
 0x7fe   :  { %v4239_v61 = vpop.f32.mrf.mxu0 }
 0x7ff   :  { %v3329_v22 = vmul.f32 %v3327_v38, %v3321_v34 }
 0x800   :  { %v3323_v39 = vpop.f32.mrf.mxu0 }
 0x801   :  { %v3324_v50 = vadd.f32 %v3818_v8, %v3323_v39 }
 0x802   :  { %v4240_v40 = vpop.f32.mrf.mxu0 }
 0x803   :  { %v3330_v37 = vmul.f32 %v3328_v12, %v3324_v50 }
 0x805   :  { %v3349_v21 = vpack.c.bf16 %v3330_v37, %v3329_v22 }
 0x807   :  { %4258 = vmatmul.mubr.bf16.vlgmr.msra.gmra.mxu1 %v3349_v21 }
 0x8c7   :  { %v3436_v5 = vpop.f32.mrf.mxu1 }
 0x8c8   :  { %v3437_v52 = vadd.f32 %v3436_v5, %v3353_v26 }
 0x8c9   :  { %v4259_v10 = vpop.f32.mrf.mxu1 }
 0x8ca   :  { %v3446_v11 = vsel %vm3445_vm1, %v3437_v52, -1e+30 }
 0x8cb   :  { %3448 = vmax.xlane.f32.xlu0 %v3446_v11  ;;  %v3439_v58 = vpop.f32.mrf.mxu1 }
 0x8cc   :  { %v3440_v0 = vadd.f32 %v3439_v58, %v3353_v26 }
 0x8cd   :  { %v4260_v44 = vpop.f32.mrf.mxu1 }
 0x8ce   :  { %v3447_v63 = vsel %vm3445_vm1, %v3440_v0, -1e+30 }
 0x8cf   :  { %3450 = vmax.xlane.f32.xlu0 %v3447_v63 }
 0x954   :  { %v3449_v59 = vpop.xlane.xlu0 %3448 }
 0x955   :  { %v3452_v3 = vsub.f32 %v3446_v11, %v3449_v59 }
 0x957   :  { %v3454_v62 = vmul.f32 1.442695, %v3452_v3 }
 0x958   :  { %v3451_v33 = vpop.xlane.xlu0 %3450 }
 0x959   :  { %v3453_v2 = vsub.f32 %v3447_v63, %v3451_v33  ;;  %4420 = vpow2.f32 %v3454_v62 }
 0x95b   :  { %v3456_v7 = vmul.f32 1.442695, %v3453_v2 }
 0x95d   :  { %4422 = vpow2.f32 %v3456_v7 }
 0x966   :  { %v4421_v14 = vpop.eup %4420 }
 0x967   :  { %3458 = vadd.xlane.f32.xlu1 %v4421_v14 }
 0x96a   :  { %v4423_v16 = vpop.eup %4422 }
 0x96b   :  { %3460 = vadd.xlane.f32.xlu1 %v4423_v16 }
 0x9f0   :  { %v3459_v6 = vpop.xlane.xlu1 %3458 }
 0x9f1   :  { %4424 = vlog2.f32 %v3459_v6 }
 0x9f4   :  { %v3461_v41 = vpop.xlane.xlu1 %3460 }
 0x9f5   :  { %4426 = vlog2.f32 %v3461_v41 }
 0x9fe   :  { %v4425_v42 = vpop.eup %4424 }
 0x9ff   :  { %v3463_v17 = vmul.f32 0.6931472, %v4425_v42 }
 0xa01   :  { %v3466_v23 = vsub.f32 %v3452_v3, %v3463_v17 }
 0xa02   :  { %v4427_v4 = vpop.eup %4426 }
 0xa03   :  { %3468 = vst [vmem:[%s5907_s8] sm:$0xff] %v3466_v23  ;;  %v3465_v54 = vmul.f32 0.6931472, %v4427_v4 }
 0xa05   :  { %v3467_v48 = vsub.f32 %v3453_v2, %v3465_v54 }
 0xa07   :  { %3469 = vst [vmem:[%s5907_s8 + $0x8] sm:$0xff] %v3467_v48 }

</bundles_post_ra>
